<compile_context>
chip_gen: v7x
topology: tpu7x:2x2x1
jax: 0.10.0
libtpu: 0.0.40
codegen_flags: <defaults>
</compile_context>

<pallas_src>
import math
import functools

import jax
import jax.numpy as jnp
from jax.experimental import pallas as pl
from jax.experimental.pallas import tpu as pltpu

# ------------------------- model hyper-parameters -------------------------
NUM_HEADS = 4
EMBED_DIM = 32          # embedding_dimension
HEAD_SIZE = 8           # head_size
CONTEXT_LEN = 8         # context_length (T)
HIDDEN_DIM = 64         # hidden_dimension
DROPOUT_P = 0.1         # unused at inference

LN_EPS = 1e-5
NEG_INF = -1e9


def _layer_norm(y, gamma, beta):
    mu = jnp.mean(y, axis=-1, keepdims=True)
    var = jnp.mean((y - mu) ** 2, axis=-1, keepdims=True)
    return (y - mu) * jax.lax.rsqrt(var + LN_EPS) * gamma + beta


def encoder_kernel(
    x_ref, bias_ref,
    w_qkv_ref, w_o_ref, w_1_ref, w_2_ref,
    b_qkv_ref, b_o_ref, b_1_ref, b_2_ref,
    g1_ref, be1_ref, g2_ref, be2_ref,
    o_ref,
    *, num_heads, head_size, block_b, ctx_len, embed_dim, hidden_dim,
):
    Bb, T, E = block_b, ctx_len, embed_dim
    H, hs = num_heads, head_size
    D = H * hs                      # == E == 32
    M = Bb * T

    # (Bb, T, E) -> (Bb*T, E): layout-preserving merge of the two leading dims
    # (T == 8 sublanes, E stays in lanes) so every dense matmul sees a tall M.
    x = x_ref[...].reshape(M, E)

    # ----- fused Q/K/V projection: one (M, E) @ (E, 3D) MXU matmul -----
    qkv = jnp.dot(x, w_qkv_ref[...], preferred_element_type=jnp.float32) + b_qkv_ref[...]
    qkv3 = qkv.reshape(Bb, T, 3 * D)          # layout-preserving split

    # Stack heads along the leading (major/batch) axis: (H*Bb, T, hs).  This
    # yields a single batched QK contraction, a single softmax and a single PV
    # matmul for all heads, using only lane slices + major-axis concats.
    def stack_heads(base):
        return jnp.concatenate(
            [qkv3[:, :, base + h * hs: base + (h + 1) * hs] for h in range(H)],
            axis=0)

    q_bh = stack_heads(0)
    k_bh = stack_heads(D)
    v_bh = stack_heads(2 * D)

    # Additive key-padding bias (0 = valid key, NEG_INF = padded), materialized
    # once and shared by all heads: (H*Bb, 1, T).
    bias_b = bias_ref[...].reshape(Bb, 1, T)
    bias_bh = jnp.concatenate([bias_b] * H, axis=0)

    scale = 1.0 / math.sqrt(hs)
    s = jnp.einsum("btd,bsd->bts", q_bh, k_bh,
                   preferred_element_type=jnp.float32) * scale + bias_bh   # (H*Bb, T, T)
    s = s - jnp.max(s, axis=-1, keepdims=True)
    p = jnp.exp(s)
    # exact reciprocal: approx=True (EUP) risks the 1e-4 reference tolerance.
    p = p * pl.reciprocal(jnp.sum(p, axis=-1, keepdims=True), approx=False)
    o_bh = jnp.einsum("bts,bsd->btd", p, v_bh,
                      preferred_element_type=jnp.float32)                  # (H*Bb, T, hs)

    # heads back into lanes: (H*Bb, T, hs) -> (Bb, T, D) -> (M, D)
    concat = jnp.concatenate([o_bh[h * Bb:(h + 1) * Bb] for h in range(H)],
                             axis=-1).reshape(M, D)

    att = jnp.dot(concat, w_o_ref[...], preferred_element_type=jnp.float32) + b_o_ref[...]

    # ----- residual (out + dropout(out)) == 2*out at inference, LayerNorm 1 -----
    y1 = _layer_norm(att + att, g1_ref[...], be1_ref[...])

    # ----- FeedForward: Linear -> ReLU -> Linear -----
    h1 = jnp.maximum(
        jnp.dot(y1, w_1_ref[...], preferred_element_type=jnp.float32) + b_1_ref[...], 0.0)
    ff = jnp.dot(h1, w_2_ref[...], preferred_element_type=jnp.float32) + b_2_ref[...]

    # ----- residual + LayerNorm 2 -----
    y2 = _layer_norm(ff + ff, g2_ref[...], be2_ref[...])

    # Store as (Bb, T, E): layout-preserving reshape; see header for why the
    # lane-dense (Bb, 256) store was deliberately not adopted.
    o_ref[...] = y2.reshape(Bb, T, E).astype(o_ref.dtype)


def _prep_params(params):
    f32 = jnp.float32
    return dict(
        w_qkv=jnp.concatenate([params["wq"], params["wk"], params["wv"]], axis=1).astype(f32),
        w_o=params["wo"].astype(f32),
        w_1=params["w1"].astype(f32),
        w_2=params["w2"].astype(f32),
        b_qkv=jnp.concatenate([params["bq"], params["bk"], params["bv"]], axis=1).astype(f32),
        b_o=params["bo"].astype(f32),
        b_1=params["b1"].astype(f32),
        b_2=params["b2"].astype(f32),
        g1=params["g1"].astype(f32), be1=params["be1"].astype(f32),
        g2=params["g2"].astype(f32), be2=params["be2"].astype(f32),
    )


def encoder_forward(x, pad_mask, params, block_b=None):
    B, T, E = x.shape
    assert T == CONTEXT_LEN and E == EMBED_DIM

    # Batch many sequences per grid step to amortize per-step overhead and give
    # the MXU tall M = block_b*T tiles.  On the default path, cap block_b so
    # there are >= 2 grid steps (v7x has 2 TensorCores; "parallel" semantics
    # only help with >= 2 steps).  VMEM is nowhere near binding at these sizes.
    if block_b is None:
        block_b = 256
        if B > 8:
            half = max(8, (((B + 1) // 2) // 8) * 8)
            block_b = min(block_b, half)
    block_b = max(1, min(block_b, B))
    if block_b < B:
        block_b = max(8, (block_b // 8) * 8)   # sublane-align multi-block shapes
    n_blocks = pl.cdiv(B, block_b)
    Bp = n_blocks * block_b

    # additive key-padding bias, precomputed once (0 = valid, NEG_INF = padded key)
    key_bias = jnp.where(pad_mask > 0.0, 0.0, NEG_INF).astype(jnp.float32)

    if Bp != B:
        x = jnp.pad(x, ((0, Bp - B), (0, 0), (0, 0)))
        key_bias = jnp.pad(key_bias, ((0, Bp - B), (0, 0)))   # 0 bias = valid keys

    x = x.astype(jnp.float32)
    p = _prep_params(params)

    kernel = functools.partial(
        encoder_kernel,
        num_heads=NUM_HEADS, head_size=HEAD_SIZE, block_b=block_b,
        ctx_len=T, embed_dim=E, hidden_dim=HIDDEN_DIM,
    )

    def full_spec(a):
        nd = a.ndim
        return pl.BlockSpec(a.shape, lambda b, _nd=nd: (0,) * _nd)   # resident weights

    weight_order = ["w_qkv", "w_o", "w_1", "w_2", "b_qkv", "b_o", "b_1", "b_2",
                    "g1", "be1", "g2", "be2"]
    weights = [p[k] for k in weight_order]

    out = pl.pallas_call(
        kernel,
        out_shape=jax.ShapeDtypeStruct((Bp, T, E), jnp.float32),
        grid_spec=pl.GridSpec(
            grid=(n_blocks,),
            in_specs=[
                pl.BlockSpec((block_b, T, E), lambda b: (b, 0, 0)),   # x
                pl.BlockSpec((block_b, T), lambda b: (b, 0)),         # key-padding bias
            ] + [full_spec(w) for w in weights],
            out_specs=pl.BlockSpec((block_b, T, E), lambda b: (b, 0, 0)),
        ),
        compiler_params=pltpu.CompilerParams(
            dimension_semantics=("parallel",),   # shards grid steps across TCs (v7x megacore)
        ),
    )(x, key_bias, *weights)

    return out[:B]


# ------------------------- pure-JAX reference -------------------------
def encoder_reference(x, pad_mask, params):
    q = x @ params["wq"] + params["bq"]
    k = x @ params["wk"] + params["bk"]
    v = x @ params["wv"] + params["bv"]
    hs = HEAD_SIZE
    bias = jnp.where(pad_mask > 0.0, 0.0, NEG_INF)[:, None, :]
    outs = []
    for h in range(NUM_HEADS):
        qh, kh, vh = (t[..., h * hs:(h + 1) * hs] for t in (q, k, v))
        s = jnp.einsum("btd,bsd->bts", qh, kh) / math.sqrt(hs) + bias
        p = jax.nn.softmax(s, axis=-1)
        outs.append(jnp.einsum("bts,bsd->btd", p, vh))
    att = jnp.concatenate(outs, axis=-1) @ params["wo"] + params["bo"]

    def ln(y, g, b):
        mu = jnp.mean(y, axis=-1, keepdims=True)
        var = jnp.mean((y - mu) ** 2, axis=-1, keepdims=True)
        return (y - mu) * jax.lax.rsqrt(var + LN_EPS) * g + b

    y1 = ln(att + att, params["g1"], params["be1"])
    h1 = jnp.maximum(y1 @ params["w1"] + params["b1"], 0.0)
    ff = h1 @ params["w2"] + params["b2"]
    return ln(ff + ff, params["g2"], params["be2"])


def init_params(key):
    ks = jax.random.split(key, 12)
    HD = NUM_HEADS * HEAD_SIZE
    s = 0.02
    return {
        "wq": jax.random.normal(ks[0], (EMBED_DIM, HD), jnp.float32) * s,
        "bq": jax.random.normal(ks[1], (1, HD), jnp.float32) * s,
        "wk": jax.random.normal(ks[2], (EMBED_DIM, HD), jnp.float32) * s,
        "bk": jax.random.normal(ks[3], (1, HD), jnp.float32) * s,
        "wv": jax.random.normal(ks[4], (EMBED_DIM, HD), jnp.float32) * s,
        "bv": jax.random.normal(ks[5], (1, HD), jnp.float32) * s,
        "wo": jax.random.normal(ks[6], (HD, EMBED_DIM), jnp.float32) * s,
        "bo": jax.random.normal(ks[7], (1, EMBED_DIM), jnp.float32) * s,
        "g1": jnp.ones((1, EMBED_DIM), jnp.float32),
        "be1": jnp.zeros((1, EMBED_DIM), jnp.float32),
        "g2": jnp.ones((1, EMBED_DIM), jnp.float32),
        "be2": jnp.zeros((1, EMBED_DIM), jnp.float32),
        "w1": jax.random.normal(ks[8], (EMBED_DIM, HIDDEN_DIM), jnp.float32) * s,
        "b1": jax.random.normal(ks[9], (1, HIDDEN_DIM), jnp.float32) * s,
        "w2": jax.random.normal(ks[10], (HIDDEN_DIM, EMBED_DIM), jnp.float32) * s,
        "b2": jax.random.normal(ks[11], (1, EMBED_DIM), jnp.float32) * s,
    }


if __name__ == "__main__":
    key = jax.random.PRNGKey(0)
    k_x, k_p = jax.random.split(key)

    B, T, E = 20, CONTEXT_LEN, EMBED_DIM
    x = jax.random.normal(k_x, (B, T, E), jnp.float32)
    # pad_mask: some padded tokens in sequences 1 and 5
    pad_mask = jnp.ones((B, T), jnp.float32)
    pad_mask = pad_mask.at[1, -2:].set(0.0)
    pad_mask = pad_mask.at[5, -4:].set(0.0)

    params = init_params(k_p)

    # block_b=8 exercises a multi-step grid plus the batch-padding path
    out = encoder_forward(x, pad_mask, params, block_b=8)
    out = jax.block_until_ready(out)

    ref = encoder_reference(x, pad_mask, params)
    assert out.shape == (B, T, E)
    assert bool(jnp.all(jnp.isfinite(out)))
    assert bool(jnp.allclose(out, ref, atol=1e-4, rtol=1e-4)), "mismatch vs reference"

    print("KERNEL_OK")
</pallas_src>

<mosaic_0001>
module attributes {stable_mosaic.version = 11 : i64} {
  func.func @encoder_kernel(%arg0: i32, %arg1: memref<8x8x32xf32, #tpu.memory_space<vmem>>, %arg2: memref<8x8xf32, #tpu.memory_space<vmem>>, %arg3: memref<32x96xf32, #tpu.memory_space<vmem>>, %arg4: memref<32x32xf32, #tpu.memory_space<vmem>>, %arg5: memref<32x64xf32, #tpu.memory_space<vmem>>, %arg6: memref<64x32xf32, #tpu.memory_space<vmem>>, %arg7: memref<1x96xf32, #tpu.memory_space<vmem>>, %arg8: memref<1x32xf32, #tpu.memory_space<vmem>>, %arg9: memref<1x64xf32, #tpu.memory_space<vmem>>, %arg10: memref<1x32xf32, #tpu.memory_space<vmem>>, %arg11: memref<1x32xf32, #tpu.memory_space<vmem>>, %arg12: memref<1x32xf32, #tpu.memory_space<vmem>>, %arg13: memref<1x32xf32, #tpu.memory_space<vmem>>, %arg14: memref<1x32xf32, #tpu.memory_space<vmem>>, %arg15: memref<8x8x32xf32, #tpu.memory_space<vmem>>) attributes {dimension_semantics = [#tpu.dimension_semantics<parallel>], iteration_bounds = array<i64: 3>, scalar_prefetch = 0 : i64, scratch_operands = 0 : i64, tpu.core_type = #tpu.core_type<tc>, window_params = [{transform_indices = @transform_0, window_bounds = array<i64: 8, 8, 32>}, {transform_indices = @transform_1, window_bounds = array<i64: 8, 8>}, {pipeline_mode = #tpu.pipeline_mode<synchronous>, transform_indices = @transform_2, window_bounds = array<i64: 32, 96>}, {pipeline_mode = #tpu.pipeline_mode<synchronous>, transform_indices = @transform_3, window_bounds = array<i64: 32, 32>}, {pipeline_mode = #tpu.pipeline_mode<synchronous>, transform_indices = @transform_4, window_bounds = array<i64: 32, 64>}, {pipeline_mode = #tpu.pipeline_mode<synchronous>, transform_indices = @transform_5, window_bounds = array<i64: 64, 32>}, {pipeline_mode = #tpu.pipeline_mode<synchronous>, transform_indices = @transform_6, window_bounds = array<i64: 1, 96>}, {pipeline_mode = #tpu.pipeline_mode<synchronous>, transform_indices = @transform_7, window_bounds = array<i64: 1, 32>}, {pipeline_mode = #tpu.pipeline_mode<synchronous>, transform_indices = @transform_8, window_bounds = array<i64: 1, 64>}, {pipeline_mode = #tpu.pipeline_mode<synchronous>, transform_indices = @transform_9, window_bounds = array<i64: 1, 32>}, {pipeline_mode = #tpu.pipeline_mode<synchronous>, transform_indices = @transform_10, window_bounds = array<i64: 1, 32>}, {pipeline_mode = #tpu.pipeline_mode<synchronous>, transform_indices = @transform_11, window_bounds = array<i64: 1, 32>}, {pipeline_mode = #tpu.pipeline_mode<synchronous>, transform_indices = @transform_12, window_bounds = array<i64: 1, 32>}, {pipeline_mode = #tpu.pipeline_mode<synchronous>, transform_indices = @transform_13, window_bounds = array<i64: 1, 32>}, {transform_indices = @transform_14, window_bounds = array<i64: 8, 8, 32>}]} {
    %c0 = arith.constant 0 : index
    %c0_0 = arith.constant 0 : index
    %c0_1 = arith.constant 0 : index
    %0 = vector.load %arg1[%c0, %c0_0, %c0_1] : memref<8x8x32xf32, #tpu.memory_space<vmem>>, vector<8x8x32xf32>
    %1 = vector.shape_cast %0 : vector<8x8x32xf32> to vector<64x32xf32>
    %c0_2 = arith.constant 0 : index
    %c0_3 = arith.constant 0 : index
    %2 = vector.load %arg3[%c0_2, %c0_3] : memref<32x96xf32, #tpu.memory_space<vmem>>, vector<32x96xf32>
    %cst = arith.constant dense<0.000000e+00> : vector<64x96xf32>
    %3 = tpu.matmul %1, %2, %cst {dimension_numbers = #tpu.dot_dimension_numbers<[1], [0], [0], [1], [0, 0, 1, 1], [], []>} : vector<64x32xf32>, vector<32x96xf32>, vector<64x96xf32> -> vector<64x96xf32>
    %c0_4 = arith.constant 0 : index
    %c0_5 = arith.constant 0 : index
    %4 = vector.load %arg7[%c0_4, %c0_5] : memref<1x96xf32, #tpu.memory_space<vmem>>, vector<1x96xf32>
    %5 = vector.broadcast %4 : vector<1x96xf32> to vector<64x96xf32>
    %6 = arith.addf %3, %5 : vector<64x96xf32>
    %7 = vector.shape_cast %6 : vector<64x96xf32> to vector<8x8x96xf32>
    %8 = vector.extract_strided_slice %7 {offsets = [0, 0, 0], sizes = [8, 8, 8], strides = [1, 1, 1]} : vector<8x8x96xf32> to vector<8x8x8xf32>
    %9 = vector.extract_strided_slice %7 {offsets = [0, 0, 8], sizes = [8, 8, 8], strides = [1, 1, 1]} : vector<8x8x96xf32> to vector<8x8x8xf32>
    %10 = vector.extract_strided_slice %7 {offsets = [0, 0, 16], sizes = [8, 8, 8], strides = [1, 1, 1]} : vector<8x8x96xf32> to vector<8x8x8xf32>
    %11 = vector.extract_strided_slice %7 {offsets = [0, 0, 24], sizes = [8, 8, 8], strides = [1, 1, 1]} : vector<8x8x96xf32> to vector<8x8x8xf32>
    %12 = tpu.concatenate %8, %9, %10, %11 in 0 : vector<8x8x8xf32>, vector<8x8x8xf32>, vector<8x8x8xf32>, vector<8x8x8xf32> -> vector<32x8x8xf32>
    %13 = vector.extract_strided_slice %7 {offsets = [0, 0, 32], sizes = [8, 8, 8], strides = [1, 1, 1]} : vector<8x8x96xf32> to vector<8x8x8xf32>
    %14 = vector.extract_strided_slice %7 {offsets = [0, 0, 40], sizes = [8, 8, 8], strides = [1, 1, 1]} : vector<8x8x96xf32> to vector<8x8x8xf32>
    %15 = vector.extract_strided_slice %7 {offsets = [0, 0, 48], sizes = [8, 8, 8], strides = [1, 1, 1]} : vector<8x8x96xf32> to vector<8x8x8xf32>
    %16 = vector.extract_strided_slice %7 {offsets = [0, 0, 56], sizes = [8, 8, 8], strides = [1, 1, 1]} : vector<8x8x96xf32> to vector<8x8x8xf32>
    %17 = tpu.concatenate %13, %14, %15, %16 in 0 : vector<8x8x8xf32>, vector<8x8x8xf32>, vector<8x8x8xf32>, vector<8x8x8xf32> -> vector<32x8x8xf32>
    %18 = vector.extract_strided_slice %7 {offsets = [0, 0, 64], sizes = [8, 8, 8], strides = [1, 1, 1]} : vector<8x8x96xf32> to vector<8x8x8xf32>
    %19 = vector.extract_strided_slice %7 {offsets = [0, 0, 72], sizes = [8, 8, 8], strides = [1, 1, 1]} : vector<8x8x96xf32> to vector<8x8x8xf32>
    %20 = vector.extract_strided_slice %7 {offsets = [0, 0, 80], sizes = [8, 8, 8], strides = [1, 1, 1]} : vector<8x8x96xf32> to vector<8x8x8xf32>
    %21 = vector.extract_strided_slice %7 {offsets = [0, 0, 88], sizes = [8, 8, 8], strides = [1, 1, 1]} : vector<8x8x96xf32> to vector<8x8x8xf32>
    %22 = tpu.concatenate %18, %19, %20, %21 in 0 : vector<8x8x8xf32>, vector<8x8x8xf32>, vector<8x8x8xf32>, vector<8x8x8xf32> -> vector<32x8x8xf32>
    %c0_6 = arith.constant 0 : index
    %c0_7 = arith.constant 0 : index
    %23 = vector.load %arg2[%c0_6, %c0_7] : memref<8x8xf32, #tpu.memory_space<vmem>>, vector<8x8xf32>
    %24 = vector.shape_cast %23 : vector<8x8xf32> to vector<8x1x8xf32>
    %25 = tpu.concatenate %24, %24, %24, %24 in 0 : vector<8x1x8xf32>, vector<8x1x8xf32>, vector<8x1x8xf32>, vector<8x1x8xf32> -> vector<32x1x8xf32>
    "tpu.trace_start"() <{level = 10 : i32, message = "btd,bsd->bts"}> : () -> ()
    %cst_8 = arith.constant dense<0.000000e+00> : vector<32x8x8xf32>
    %26 = tpu.matmul %12, %17, %cst_8 {dimension_numbers = #tpu.dot_dimension_numbers<[2], [2], [1], [1], [0, 0, 0, 1, 1, 1], [0], [0]>} : vector<32x8x8xf32>, vector<32x8x8xf32>, vector<32x8x8xf32> -> vector<32x8x8xf32>
    "tpu.trace_stop"() : () -> ()
    %cst_9 = arith.constant 0.353553385 : f32
    %27 = vector.broadcast %cst_9 : f32 to vector<32x8x8xf32>
    %28 = arith.mulf %26, %27 : vector<32x8x8xf32>
    %29 = vector.broadcast %25 : vector<32x1x8xf32> to vector<32x8x8xf32>
    %30 = arith.addf %28, %29 : vector<32x8x8xf32>
    %cst_10 = arith.constant dense<0xFF800000> : vector<32x8xf32>
    %31 = vector.multi_reduction <maximumf>, %30, %cst_10 [2] : vector<32x8x8xf32> to vector<32x8xf32>
    %32 = vector.shape_cast %31 : vector<32x8xf32> to vector<32x8x1xf32>
    %33 = vector.broadcast %32 : vector<32x8x1xf32> to vector<32x8x8xf32>
    %34 = arith.subf %30, %33 : vector<32x8x8xf32>
    %35 = math.exp %34 : vector<32x8x8xf32>
    %cst_11 = arith.constant dense<0.000000e+00> : vector<32x8xf32>
    %36 = vector.multi_reduction <add>, %35, %cst_11 [2] : vector<32x8x8xf32> to vector<32x8xf32>
    %37 = vector.shape_cast %36 : vector<32x8xf32> to vector<32x8x1xf32>
    %38 = tpu.reciprocal %37 : vector<32x8x1xf32> -> vector<32x8x1xf32>
    %39 = vector.broadcast %38 : vector<32x8x1xf32> to vector<32x8x8xf32>
    %40 = arith.mulf %35, %39 : vector<32x8x8xf32>
    "tpu.trace_start"() <{level = 10 : i32, message = "bts,bsd->btd"}> : () -> ()
    %cst_12 = arith.constant dense<0.000000e+00> : vector<32x8x8xf32>
    %41 = tpu.matmul %40, %22, %cst_12 {dimension_numbers = #tpu.dot_dimension_numbers<[2], [1], [1], [2], [0, 0, 0, 1, 1, 2], [0], [0]>} : vector<32x8x8xf32>, vector<32x8x8xf32>, vector<32x8x8xf32> -> vector<32x8x8xf32>
    "tpu.trace_stop"() : () -> ()
    %42 = vector.extract_strided_slice %41 {offsets = [0, 0, 0], sizes = [8, 8, 8], strides = [1, 1, 1]} : vector<32x8x8xf32> to vector<8x8x8xf32>
    %43 = vector.extract_strided_slice %41 {offsets = [8, 0, 0], sizes = [8, 8, 8], strides = [1, 1, 1]} : vector<32x8x8xf32> to vector<8x8x8xf32>
    %44 = vector.extract_strided_slice %41 {offsets = [16, 0, 0], sizes = [8, 8, 8], strides = [1, 1, 1]} : vector<32x8x8xf32> to vector<8x8x8xf32>
    %45 = vector.extract_strided_slice %41 {offsets = [24, 0, 0], sizes = [8, 8, 8], strides = [1, 1, 1]} : vector<32x8x8xf32> to vector<8x8x8xf32>
    %46 = tpu.concatenate %42, %43, %44, %45 in 2 : vector<8x8x8xf32>, vector<8x8x8xf32>, vector<8x8x8xf32>, vector<8x8x8xf32> -> vector<8x8x32xf32>
    %47 = vector.shape_cast %46 : vector<8x8x32xf32> to vector<64x32xf32>
    %c0_13 = arith.constant 0 : index
    %c0_14 = arith.constant 0 : index
    %48 = vector.load %arg4[%c0_13, %c0_14] : memref<32x32xf32, #tpu.memory_space<vmem>>, vector<32x32xf32>
    %cst_15 = arith.constant dense<0.000000e+00> : vector<64x32xf32>
    %49 = tpu.matmul %47, %48, %cst_15 {dimension_numbers = #tpu.dot_dimension_numbers<[1], [0], [0], [1], [0, 0, 1, 1], [], []>} : vector<64x32xf32>, vector<32x32xf32>, vector<64x32xf32> -> vector<64x32xf32>
    %c0_16 = arith.constant 0 : index
    %c0_17 = arith.constant 0 : index
    %50 = vector.load %arg8[%c0_16, %c0_17] : memref<1x32xf32, #tpu.memory_space<vmem>>, vector<1x32xf32>
    %51 = vector.broadcast %50 : vector<1x32xf32> to vector<64x32xf32>
    %52 = arith.addf %49, %51 : vector<64x32xf32>
    %53 = arith.addf %52, %52 : vector<64x32xf32>
    %c0_18 = arith.constant 0 : index
    %c0_19 = arith.constant 0 : index
    %54 = vector.load %arg11[%c0_18, %c0_19] : memref<1x32xf32, #tpu.memory_space<vmem>>, vector<1x32xf32>
    %c0_20 = arith.constant 0 : index
    %c0_21 = arith.constant 0 : index
    %55 = vector.load %arg12[%c0_20, %c0_21] : memref<1x32xf32, #tpu.memory_space<vmem>>, vector<1x32xf32>
    %cst_22 = arith.constant dense<0.000000e+00> : vector<64xf32>
    %56 = vector.multi_reduction <add>, %53, %cst_22 [1] : vector<64x32xf32> to vector<64xf32>
    %57 = vector.shape_cast %56 : vector<64xf32> to vector<64x1xf32>
    %cst_23 = arith.constant 3.200000e+01 : f32
    %58 = vector.broadcast %cst_23 : f32 to vector<64x1xf32>
    %59 = arith.divf %57, %58 : vector<64x1xf32>
    %60 = vector.broadcast %59 : vector<64x1xf32> to vector<64x32xf32>
    %61 = arith.subf %53, %60 : vector<64x32xf32>
    %62 = arith.mulf %61, %61 : vector<64x32xf32>
    %cst_24 = arith.constant dense<0.000000e+00> : vector<64xf32>
    %63 = vector.multi_reduction <add>, %62, %cst_24 [1] : vector<64x32xf32> to vector<64xf32>
    %64 = vector.shape_cast %63 : vector<64xf32> to vector<64x1xf32>
    %cst_25 = arith.constant 3.200000e+01 : f32
    %65 = vector.broadcast %cst_25 : f32 to vector<64x1xf32>
    %66 = arith.divf %64, %65 : vector<64x1xf32>
    %67 = vector.broadcast %59 : vector<64x1xf32> to vector<64x32xf32>
    %68 = arith.subf %53, %67 : vector<64x32xf32>
    %cst_26 = arith.constant 9.99999974E-6 : f32
    %69 = vector.broadcast %cst_26 : f32 to vector<64x1xf32>
    %70 = arith.addf %66, %69 : vector<64x1xf32>
    %71 = math.rsqrt %70 : vector<64x1xf32>
    %72 = vector.broadcast %71 : vector<64x1xf32> to vector<64x32xf32>
    %73 = arith.mulf %68, %72 : vector<64x32xf32>
    %74 = vector.broadcast %54 : vector<1x32xf32> to vector<64x32xf32>
    %75 = arith.mulf %73, %74 : vector<64x32xf32>
    %76 = vector.broadcast %55 : vector<1x32xf32> to vector<64x32xf32>
    %77 = arith.addf %75, %76 : vector<64x32xf32>
    %c0_27 = arith.constant 0 : index
    %c0_28 = arith.constant 0 : index
    %78 = vector.load %arg5[%c0_27, %c0_28] : memref<32x64xf32, #tpu.memory_space<vmem>>, vector<32x64xf32>
    %cst_29 = arith.constant dense<0.000000e+00> : vector<64x64xf32>
    %79 = tpu.matmul %77, %78, %cst_29 {dimension_numbers = #tpu.dot_dimension_numbers<[1], [0], [0], [1], [0, 0, 1, 1], [], []>} : vector<64x32xf32>, vector<32x64xf32>, vector<64x64xf32> -> vector<64x64xf32>
    %c0_30 = arith.constant 0 : index
    %c0_31 = arith.constant 0 : index
    %80 = vector.load %arg9[%c0_30, %c0_31] : memref<1x64xf32, #tpu.memory_space<vmem>>, vector<1x64xf32>
    %81 = vector.broadcast %80 : vector<1x64xf32> to vector<64x64xf32>
    %82 = arith.addf %79, %81 : vector<64x64xf32>
    %cst_32 = arith.constant 0.000000e+00 : f32
    %83 = vector.broadcast %cst_32 : f32 to vector<64x64xf32>
    %84 = arith.maximumf %82, %83 : vector<64x64xf32>
    %c0_33 = arith.constant 0 : index
    %c0_34 = arith.constant 0 : index
    %85 = vector.load %arg6[%c0_33, %c0_34] : memref<64x32xf32, #tpu.memory_space<vmem>>, vector<64x32xf32>
    %cst_35 = arith.constant dense<0.000000e+00> : vector<64x32xf32>
    %86 = tpu.matmul %84, %85, %cst_35 {dimension_numbers = #tpu.dot_dimension_numbers<[1], [0], [0], [1], [0, 0, 1, 1], [], []>} : vector<64x64xf32>, vector<64x32xf32>, vector<64x32xf32> -> vector<64x32xf32>
    %c0_36 = arith.constant 0 : index
    %c0_37 = arith.constant 0 : index
    %87 = vector.load %arg10[%c0_36, %c0_37] : memref<1x32xf32, #tpu.memory_space<vmem>>, vector<1x32xf32>
    %88 = vector.broadcast %87 : vector<1x32xf32> to vector<64x32xf32>
    %89 = arith.addf %86, %88 : vector<64x32xf32>
    %90 = arith.addf %89, %89 : vector<64x32xf32>
    %c0_38 = arith.constant 0 : index
    %c0_39 = arith.constant 0 : index
    %91 = vector.load %arg13[%c0_38, %c0_39] : memref<1x32xf32, #tpu.memory_space<vmem>>, vector<1x32xf32>
    %c0_40 = arith.constant 0 : index
    %c0_41 = arith.constant 0 : index
    %92 = vector.load %arg14[%c0_40, %c0_41] : memref<1x32xf32, #tpu.memory_space<vmem>>, vector<1x32xf32>
    %cst_42 = arith.constant dense<0.000000e+00> : vector<64xf32>
    %93 = vector.multi_reduction <add>, %90, %cst_42 [1] : vector<64x32xf32> to vector<64xf32>
    %94 = vector.shape_cast %93 : vector<64xf32> to vector<64x1xf32>
    %cst_43 = arith.constant 3.200000e+01 : f32
    %95 = vector.broadcast %cst_43 : f32 to vector<64x1xf32>
    %96 = arith.divf %94, %95 : vector<64x1xf32>
    %97 = vector.broadcast %96 : vector<64x1xf32> to vector<64x32xf32>
    %98 = arith.subf %90, %97 : vector<64x32xf32>
    %99 = arith.mulf %98, %98 : vector<64x32xf32>
    %cst_44 = arith.constant dense<0.000000e+00> : vector<64xf32>
    %100 = vector.multi_reduction <add>, %99, %cst_44 [1] : vector<64x32xf32> to vector<64xf32>
    %101 = vector.shape_cast %100 : vector<64xf32> to vector<64x1xf32>
    %cst_45 = arith.constant 3.200000e+01 : f32
    %102 = vector.broadcast %cst_45 : f32 to vector<64x1xf32>
    %103 = arith.divf %101, %102 : vector<64x1xf32>
    %104 = vector.broadcast %96 : vector<64x1xf32> to vector<64x32xf32>
    %105 = arith.subf %90, %104 : vector<64x32xf32>
    %cst_46 = arith.constant 9.99999974E-6 : f32
    %106 = vector.broadcast %cst_46 : f32 to vector<64x1xf32>
    %107 = arith.addf %103, %106 : vector<64x1xf32>
    %108 = math.rsqrt %107 : vector<64x1xf32>
    %109 = vector.broadcast %108 : vector<64x1xf32> to vector<64x32xf32>
    %110 = arith.mulf %105, %109 : vector<64x32xf32>
    %111 = vector.broadcast %91 : vector<1x32xf32> to vector<64x32xf32>
    %112 = arith.mulf %110, %111 : vector<64x32xf32>
    %113 = vector.broadcast %92 : vector<1x32xf32> to vector<64x32xf32>
    %114 = arith.addf %112, %113 : vector<64x32xf32>
    %115 = vector.shape_cast %114 : vector<64x32xf32> to vector<8x8x32xf32>
    %c0_47 = arith.constant 0 : index
    %c0_48 = arith.constant 0 : index
    %c0_49 = arith.constant 0 : index
    %116 = vector.load %arg15[%c0_47, %c0_48, %c0_49] : memref<8x8x32xf32, #tpu.memory_space<vmem>>, vector<8x8x32xf32>
    tpu.vector_store %arg15[%c0_47, %c0_48, %c0_49], %115 {strides = array<i32>} : memref<8x8x32xf32, #tpu.memory_space<vmem>>, vector<8x8x32xf32>,
    return
  }
  func.func @transform_0(%arg0: i32) -> (i32, i32, i32) {
    %c0_i32 = arith.constant 0 : i32
    %c0_i32_0 = arith.constant 0 : i32
    %c0_i32_1 = arith.constant 0 : i32
    return %arg0, %c0_i32, %c0_i32_0 : i32, i32, i32
  }
  func.func @transform_1(%arg0: i32) -> (i32, i32) {
    %c0_i32 = arith.constant 0 : i32
    %c0_i32_0 = arith.constant 0 : i32
    return %arg0, %c0_i32 : i32, i32
  }
  func.func @transform_2(%arg0: i32) -> (i32, i32) {
    %c0_i32 = arith.constant 0 : i32
    %c0_i32_0 = arith.constant 0 : i32
    %c0_i32_1 = arith.constant 0 : i32
    return %c0_i32, %c0_i32_0 : i32, i32
  }
  func.func @transform_3(%arg0: i32) -> (i32, i32) {
    %c0_i32 = arith.constant 0 : i32
    %c0_i32_0 = arith.constant 0 : i32
    %c0_i32_1 = arith.constant 0 : i32
    return %c0_i32, %c0_i32_0 : i32, i32
  }
  func.func @transform_4(%arg0: i32) -> (i32, i32) {
    %c0_i32 = arith.constant 0 : i32
    %c0_i32_0 = arith.constant 0 : i32
    %c0_i32_1 = arith.constant 0 : i32
    return %c0_i32, %c0_i32_0 : i32, i32
  }
  func.func @transform_5(%arg0: i32) -> (i32, i32) {
    %c0_i32 = arith.constant 0 : i32
    %c0_i32_0 = arith.constant 0 : i32
    %c0_i32_1 = arith.constant 0 : i32
    return %c0_i32, %c0_i32_0 : i32, i32
  }
  func.func @transform_6(%arg0: i32) -> (i32, i32) {
    %c0_i32 = arith.constant 0 : i32
    %c0_i32_0 = arith.constant 0 : i32
    %c0_i32_1 = arith.constant 0 : i32
    return %c0_i32, %c0_i32_0 : i32, i32
  }
  func.func @transform_7(%arg0: i32) -> (i32, i32) {
    %c0_i32 = arith.constant 0 : i32
    %c0_i32_0 = arith.constant 0 : i32
    %c0_i32_1 = arith.constant 0 : i32
    return %c0_i32, %c0_i32_0 : i32, i32
  }
  func.func @transform_8(%arg0: i32) -> (i32, i32) {
    %c0_i32 = arith.constant 0 : i32
    %c0_i32_0 = arith.constant 0 : i32
    %c0_i32_1 = arith.constant 0 : i32
    return %c0_i32, %c0_i32_0 : i32, i32
  }
  func.func @transform_9(%arg0: i32) -> (i32, i32) {
    %c0_i32 = arith.constant 0 : i32
    %c0_i32_0 = arith.constant 0 : i32
    %c0_i32_1 = arith.constant 0 : i32
    return %c0_i32, %c0_i32_0 : i32, i32
  }
  func.func @transform_10(%arg0: i32) -> (i32, i32) {
    %c0_i32 = arith.constant 0 : i32
    %c0_i32_0 = arith.constant 0 : i32
    %c0_i32_1 = arith.constant 0 : i32
    return %c0_i32, %c0_i32_0 : i32, i32
  }
  func.func @transform_11(%arg0: i32) -> (i32, i32) {
    %c0_i32 = arith.constant 0 : i32
    %c0_i32_0 = arith.constant 0 : i32
    %c0_i32_1 = arith.constant 0 : i32
    return %c0_i32, %c0_i32_0 : i32, i32
  }
  func.func @transform_12(%arg0: i32) -> (i32, i32) {
    %c0_i32 = arith.constant 0 : i32
    %c0_i32_0 = arith.constant 0 : i32
    %c0_i32_1 = arith.constant 0 : i32
    return %c0_i32, %c0_i32_0 : i32, i32
  }
  func.func @transform_13(%arg0: i32) -> (i32, i32) {
    %c0_i32 = arith.constant 0 : i32
    %c0_i32_0 = arith.constant 0 : i32
    %c0_i32_1 = arith.constant 0 : i32
    return %c0_i32, %c0_i32_0 : i32, i32
  }
  func.func @transform_14(%arg0: i32) -> (i32, i32, i32) {
    %c0_i32 = arith.constant 0 : i32
    %c0_i32_0 = arith.constant 0 : i32
    %c0_i32_1 = arith.constant 0 : i32
    return %arg0, %c0_i32, %c0_i32_0 : i32, i32, i32
  }
}

</mosaic_0001>

<bundles_post_ra>
// kernel: tpu_custom_call.1
= control target key start
LH: loop header
LB: loop body
LE: loop exit
PB: predicated region body
PF: predicated region fallthrough
CT: control target
= control target key end

     0   :  { %s9689_s0 = inlined_call_operand.hbm [shape: f32[24,8,32], index: 0, kind: input, shape index: {}]   ;;  %s9690_s1 = inlined_call_operand.vmem [shape: f32[24,8], index: 1, kind: input, shape index: {}]   ;;  %s9691_s2 = inlined_call_operand.vmem [shape: f32[32,96], index: 2, kind: input, shape index: {}]   ;;  %s9692_s3 = inlined_call_operand.vmem [shape: f32[32,32], index: 3, kind: input, shape index: {}]   ;;  %s9693_s4 = inlined_call_operand.vmem [shape: f32[32,64], index: 4, kind: input, shape index: {}]   ;;  %s9694_s5 = inlined_call_operand.vmem [shape: f32[64,32], index: 5, kind: input, shape index: {}]   ;;  %s9695_s6 = inlined_call_operand.vmem [shape: f32[1,96], index: 6, kind: input, shape index: {}]   ;;  %s9696_s7 = inlined_call_operand.vmem [shape: f32[1,32], index: 7, kind: input, shape index: {}]   ;;  %s9697_s8 = inlined_call_operand.vmem [shape: f32[1,64], index: 8, kind: input, shape index: {}]   ;;  %s9698_s9 = inlined_call_operand.vmem [shape: f32[1,32], index: 9, kind: input, shape index: {}]   ;;  %s9699_s10 = inlined_call_operand.vmem [shape: f32[1,32], index: 10, kind: input, shape index: {}]   ;;  %s9700_s11 = inlined_call_operand.vmem [shape: f32[1,32], index: 11, kind: input, shape index: {}]   ;;  %s9701_s12 = inlined_call_operand.vmem [shape: f32[1,32], index: 12, kind: input, shape index: {}]   ;;  %s9702_s13 = inlined_call_operand.vmem [shape: f32[1,32], index: 13, kind: input, shape index: {}]   ;;  %s9703_s14 = inlined_call_operand.hbm [shape: f32[24,8,32], index: 14, kind: output, shape index: {}]  }
   0x1   :  { %9713 = sst [smem:[#allocation24_spill]] %s9703_s14 }
   0x2   :  { %19 = vsyncpa [#allocation3], 0 }
   0x3   :  { %21 = vsyncpa [#allocation3 + $0x1], 0 }
   0x4   :  { %22 = vsyncpa [#allocation4], 0 }
   0x5   :  { %24 = vsyncpa [#allocation4 + $0x1], 0  ;;  %s8220_s29 = smov 0   ;;  %s8222_s30 = smov 0  }
   0x6   :  { %s8224_s15 = smov 0   ;;  %s8226_s16 = smov 0  }
   0x7 LB: > { %9714 = sst [smem:[#allocation8_spill]] %s8115_s29  ;;  %s8241_s17 = sadd.s32 4294967295, %s8127_s16   ;;  %s8127_s16 = sphi %s8226_s16, %s9755_s16   ;;  %s8123_s15 = sphi %s8224_s15, %s9757_s15   ;;  %s8119_s30 = sphi %s8222_s30, %s9759_s30   ;;  %s8115_s29 = sphi %s8220_s29, %s9758_s29  }
   0x8   : > { %9715 = sst [smem:[#allocation9_spill]] %s8123_s15  ;;  %s7029_s18 = sadd.s32 4294967294, %s8127_s16  }
   0x9   : > { %s8245_s19 = sadd.s32 1, %s8127_s16   ;;  %s37_s20 = sadd.s32 1, %s8123_s15 }
   0xa   : > { %9716 = sst [smem:[#allocation10_spill]] %s8245_s19  ;;  %s34_s21 = ssub.s32 %s8127_s16, %s8245_s19 }
   0xb   : > { %p44_p0 = scmp.ne.s32.totalorder %s8123_s15, %s8119_s30  ;;  %p35_p1 = scmp.eq.s32.totalorder %s34_s21, 0 }
   0xc   : > { %p45_p2 = scmp.eq.s32.totalorder %s8127_s16, 0  ;;  %p50_p3 = scmp.ne.s32.totalorder %s8119_s30, %s8115_s29 }
   0xd   : > { %p51_p4 = scmp.eq.s32.totalorder %s8241_s17, 0  ;;  %p352_p7 = scmp.eq.s32.totalorder %s8241_s17, 2 }
   0xe   : > { %s8257_s22 = scalar_select %p35_p1, %s8123_s15, %s37_s20  }
   0xf   : > { %p8259_p5 = por %p45_p2, %p44_p0  ;;  %p8263_p6 = por %p51_p4, %p50_p3 }
  0x10   : > { %9717 = sst [smem:[#allocation11_spill]] %s8257_s22  ;;  %p358_p8 = scmp.eq.s32.totalorder %s7029_s18, 2 }
  0x11   : > { %p7822_p9 = scmp.lt.s32.totalorder %s8127_s16, 3  ;;  %p8269_p10 = por %p352_p7, %p44_p0 }
  0x12   : > { %p8273_p11 = por %p358_p8, %p50_p3  ;;  %s414_s27 = sand.u32 1, %s8123_s15  }
  0x13   : > { %s9720_s25 = scalar_select %p8269_p10, 1, 0 }
  0x14   : > { %s9721_s26 = scalar_select %p8273_p11, 1, 0 }
  0x15   : > { %s7180_s28 = sshll.u32 %s8127_s16, 10  ;;  %s7032_s20 = sshll.u32 %s414_s27, 6 }
  0x16   : > { %s8282_s19 = scalar_lea.hbm %s9689_s0, %s7180_s28  ;;  %s418_s18 = scalar_lea.vmem [#allocation2], %s7032_s20 }
  0x17   : > { %s425_s29 = sshll.u32 %s418_s18, 4  ;;  %p8286_p12 = pnand %p7822_p9, %p8259_p5  ;;  %s8290_s29 = int_to_ptr.vmem [resolvable:$true] %s425_s29 }
  0x18   : > { %s8292_s15 = scalar_lea.sflag [#allocation3], %s414_s27  ;;  %s8031_s22 = scalar_lea.hbm %s8282_s19, 1024 }
  0x19   : > { %p8032_p13 = scmp.ne.s32.totalorder %s8282_s19, %s8031_s22  ;;  %p8033_p0 = pneg %p8286_p12 }
  0x1a   : > { %s8036_s20 = scalar_lea.hbm %s9689_s0, 3072  ;;  %p8037_p3 = scmp.lt.u32.totalorder %s8282_s19, %s9689_s0 }
  0x1b   : > { %p8034_p1 = pnand %p8033_p0, %p8032_p13  ;;  %p8038_p4 = scmp.lt.u32.totalorder %s8036_s20, %s8031_s22 }
  0x1c   : > { %p8040_p7 = scmp.lt.u32.totalorder %s8031_s22, %s8282_s19 }
  0x1d   : > { %p8035_p2 = pneg %p8034_p1  ;;  %p8039_p5 = por %p8038_p4, %p8037_p3 }
  0x1f   : > { %p8041_p8 = por %p8040_p7, %p8039_p5 }
  0x21   : > { %p8042_p9 = pnand %p8041_p8, %p8035_p2 }
  0x23   : > { %8045 = shalt.err (!%p8042_p9)
}
  0x24   : > { %s8046_s27 = scalar_lea.vmem %s8290_s29, 1024  ;;  %s8129_s28 = smov [#allocation2]  }
  0x25   : > { %p8047_p13 = scmp.ne.s32.totalorder %s8290_s29, %s8046_s27  ;;  %s8051_s23 = sshll.u32 %s8129_s28, 4  ;;  %s8052_s23 = int_to_ptr.vmem [resolvable:$false] %s8051_s23 }
  0x26   : > { %s8053_s21 = scalar_lea.vmem %s8052_s23, 2048  ;;  %p8054_p10 = scmp.lt.s32.totalorder %s8290_s29, %s8052_s23 }
  0x27   : > { %p8049_p1 = pnand %p8047_p13, %p8033_p0  ;;  %p8055_p3 = scmp.lt.s32.totalorder %s8053_s21, %s8046_s27 }
  0x29   : > { %p8050_p11 = pneg %p8049_p1  ;;  %p8056_p4 = por %p8055_p3, %p8054_p10 }
  0x2b   : > { %p8057_p5 = pnand %p8056_p4, %p8050_p11 }
  0x2d   : > { %8060 = shalt.err (!%p8057_p5)
}
  0x2e   : > { %s8130_s22 = smov 128   ;;  %s8131_s20 = smov 8  }
  0x2f   : > { %7817 = dma.hbm_to_vmem [thread:$0]  (!%p8286_p12), %s8282_s19, 1024, %s8290_s29, %s8292_s15, %s8130_s22, %s8130_s22, %s8131_s20  }
  0x30   : > { %p7035_p0 = scmp.ge.s32.totalorder %s8127_s16, 1  ;;  %p440_p2 = scmp.lt.s32.totalorder %s8127_s16, 4 }
  0x32   : > { %p441_p7 = pnand %p7035_p0, %p440_p2 }
  0x34   : > { %444 = sbr.rel (%p441_p7) target bundleno = 2765 (0xacd), region = 76 }
  0x3b   : > { %s8323_s18 = sand.u32 1, %s8119_s30  }
  0x3c   : > { %s9710_s27 = sshll.u32 %s8323_s18, 6  ;;  %s447_s28 = scalar_lea.sflag [#allocation3], %s8323_s18 }
  0x3d   : > { %s450_s23 = scalar_lea.vmem [#allocation2], %s9710_s27 }
  0x3e   : > { %8106 = dma.done.wait (%p8263_p6), %s447_s28, 1024  }
  0x3f   : > { %8108 = vsyncadd (%p8263_p6), %s447_s28, 4294966272  ;;  %vm524_vm0 = vcmask 261120   ;;  %v513_v0 = vld [vmem:[%s9691_s2] sm:$0xff]  ;;  %v514_v1 = vld [vmem:[%s9691_s2 + $0x8] sm:$0xff]  ;;  %s8132_s28 = smov 112   ;;  %s8133_s14 = smov 120  }
  0x40   : > { %v515_v2 = vld [vmem:[%s9691_s2 + $0x10] sm:$0xff]  ;;  %v7770_v3 = vpack.c.bf16 %v514_v1, %v513_v0  ;;  %v516_v4 = vld [vmem:[%s9691_s2 + $0x18] sm:$0xff]  ;;  %v505_v5 = vld [vmem:[%s450_s23] sm:$0xff]  ;;  %v9711_v31 = vmov 0.0   ;;  %vm8136_vm1 = vmmov 0   ;;  %s8137_s29 = smov 96  }
  0x41   : > { %v7774_v6 = vpack.c.bf16 %v516_v4, %v515_v2  ;;  %7370 = vmatprep.mubr.msk.f32.mxu0 %vm524_vm0, %v505_v5  ;;  %v506_v7 = vld [vmem:[%s450_s23 + $0x8] sm:$0xff]  ;;  %v507_v8 = vld [vmem:[%s450_s23 + $0x10] sm:$0xff]  ;;  %v508_v9 = vld [vmem:[%s450_s23 + $0x18] sm:$0xff]  ;;  %7387 = vmatprep.subr.mxu1 %v9711_v31  ;;  %vm763_vm2 = vcmask 64512   ;;  %s8138_s15 = smov 64   ;;  %p500_p6 = scmp.lt.s32.totalorder %s8241_s17, 2 }
  0x42   : > { %7771 = vmatprep.subr.bf16.mxu0 %v7770_v3  ;;  %v509_v10 = vld [vmem:[%s450_s23 + $0x20] sm:$0xff]  ;;  %v510_v11 = vld [vmem:[%s450_s23 + $0x28] sm:$0xff]  ;;  %v511_v12 = vld [vmem:[%s450_s23 + $0x30] sm:$0xff]  ;;  %7389 = vmatprep.mubr.msk.f32.mxu1 %vm8136_vm1, %v9711_v31  ;;  %s8140_s27 = smov 8   ;;  %vm6186_vm3 = vcmask 130048   ;;  %vm6195_vm4 = vcmask 195584  }
  0x43   : > { %7773 = vmatpush3.bf16.msra.mxu0 %v7770_v3  ;;  %v512_v13 = vld [vmem:[%s450_s23 + $0x38] sm:$0xff]  ;;  %v7039_v14 = vld [vmem:[%s9695_s6] ss:$0 sm:$0xff]  ;;  %s8135_s23 = smov 104   ;;  %vm6650_vm5 = vcmask 523264   ;;  %s9748_s20 = sshll.u32 %s8323_s18, 6 }
  0x44   : > { %7775 = vmatprep.subr.bf16.mxu0 %v7774_v6  ;;  %s501_s19 = scalar_select %p500_p6, %s8241_s17, 2 }
  0x45   : > { %p9751_p11 = scmp.ne.s32.totalorder %s9720_s25, 0 }
  0x46   : > { %s7038_s21 = sshll.u32 %s501_s19, 3 }
  0x47   : > { %7777 = vmatpush3.bf16.msra.mxu0 %v7774_v6  ;;  %s503_s24 = scalar_lea.vmem %s9690_s1, %s7038_s21 }
  0x48   : > { %7382 = vmatprep.subr.mxu0 %v9711_v31 }
  0x4a   : > { %7371 = vmatmul.mubr.msk.f32.vlgmr.msra.gmra.mrb[0].mxu0 %vm524_vm0, %v506_v7 }
  0x4b   : > { %7373 = vmatprep.mubr.msk.f32.mxu0 %vm524_vm0, %v507_v8 }
  0x4e   : > { %7374 = vmatmul.mubr.msk.f32.gmra.mrb[2].mxu0 %vm524_vm0, %v508_v9 }
  0x4f   : > { %7376 = vmatprep.mubr.msk.f32.mxu0 %vm524_vm0, %v509_v10 }
  0x52   : > { %7377 = vmatmul.mubr.msk.f32.gmra.mrb[4].mxu0 %vm524_vm0, %v510_v11 }
  0x53   : > { %7379 = vmatprep.mubr.msk.f32.mxu0 %vm524_vm0, %v511_v12 }
  0x56   : > { %7380 = vmatmul.mubr.msk.f32.gmra.mrb[6].mxu0 %vm524_vm0, %v512_v13 }
  0x57   : > { %7384 = vmatprep.mubr.msk.f32.mxu0 %vm8136_vm1, %v9711_v31 }
 0x11d   : > { %v7372_v15 = vpop.f32.mrb[0].mxu0 }
 0x11e   : > { %v8356_v16 = vadd.f32 %v7372_v15, %v7039_v14  ;;  %v615_v17 = vpop.f32.mrb[1].mxu0 }
 0x11f   : > { %v8361_v19 = vadd.f32 %v7039_v14, %v615_v17 }
 0x120   : > { %680 = vrot.lane.b32.xlu1 %v8356_v16, %s8132_s28  ;;  %664 = vrot.lane.b32.xlu0 %v8356_v16, %s8133_s14 }
 0x121   : > { %v7375_v18 = vpop.f32.mrb[2].mxu0 }
 0x122   : > { %v8363_v20 = vadd.f32 %v7375_v18, %v7039_v14  ;;  %v625_v21 = vpop.f32.mrb[3].mxu0 }
 0x123   : > { %v8367_v23 = vadd.f32 %v7039_v14, %v625_v21 }
 0x124   : > { %668 = vrot.lane.b32.xlu1 %v8363_v20, %s8133_s14  ;;  %662 = vrot.lane.b32.xlu0 %v8361_v19, %s8133_s14 }
 0x125   : > { %v7378_v22 = vpop.f32.mrb[4].mxu0 }
 0x126   : > { %v635_v24 = vpop.f32.mrb[5].mxu0  ;;  %v8369_v25 = vadd.f32 %v7378_v22, %v7039_v14 }
 0x127   : > { %v8374_v26 = vadd.f32 %v7039_v14, %v635_v24 }
 0x128   : > { %666 = vrot.lane.b32.xlu1 %v8367_v23, %s8133_s14  ;;  %678 = vrot.lane.b32.xlu0 %v8361_v19, %s8132_s28 }
 0x129   : > { %v7381_v27 = vpop.f32.mrb[6].mxu0 }
 0x12a   : > { %v645_v28 = vpop.f32.mrb[7].mxu0  ;;  %v8376_v29 = vadd.f32 %v7381_v27, %v7039_v14 }
 0x12b   : > { %v8380_v30 = vadd.f32 %v7039_v14, %v645_v28  ;;  %v716_v28 = vlaneseq }
 0x12c   : > { %672 = vrot.lane.b32.xlu1 %v8369_v25, %s8133_s14  ;;  %670 = vrot.lane.b32.xlu0 %v8374_v26, %s8133_s14 }
 0x130   : > { %676 = vrot.lane.b32.xlu1 %v8376_v29, %s8133_s14  ;;  %674 = vrot.lane.b32.xlu0 %v8380_v30, %s8133_s14 }
 0x134   : > { %684 = vrot.lane.b32.xlu1 %v8363_v20, %s8132_s28  ;;  %682 = vrot.lane.b32.xlu0 %v8367_v23, %s8132_s28 }
 0x138   : > { %688 = vrot.lane.b32.xlu1 %v8369_v25, %s8132_s28  ;;  %686 = vrot.lane.b32.xlu0 %v8374_v26, %s8132_s28 }
 0x13c   : > { %692 = vrot.lane.b32.xlu1 %v8376_v29, %s8132_s28  ;;  %694 = vrot.lane.b32.xlu0 %v8361_v19, %s8135_s23 }
 0x140   : > { %696 = vrot.lane.b32.xlu1 %v8356_v16, %s8135_s23  ;;  %690 = vrot.lane.b32.xlu0 %v8380_v30, %s8132_s28  ;;  %s7181_s28 = sshll.u32 %s8241_s17, 10 }
 0x144   : > { %700 = vrot.lane.b32.xlu1 %v8363_v20, %s8135_s23  ;;  %698 = vrot.lane.b32.xlu0 %v8367_v23, %s8135_s23 }
 0x148   : > { %702 = vrot.lane.b32.xlu1 %v8374_v26, %s8135_s23  ;;  %838 = vrot.lane.b32.xlu0 %v8356_v16, %s8137_s29 }
 0x14c   : > { %761 = vrot.lane.b32.xlu1 %v8361_v19, %s8137_s29  ;;  %704 = vrot.lane.b32.xlu0 %v8369_v25, %s8135_s23 }
 0x150   : > { %706 = vrot.lane.b32.xlu1 %v8380_v30, %s8135_s23  ;;  %914 = vrot.lane.b32.xlu0 %v8367_v23, %s8137_s29 }
 0x154   : > { %990 = vrot.lane.b32.xlu1 %v8363_v20, %s8137_s29  ;;  %708 = vrot.lane.b32.xlu0 %v8376_v29, %s8135_s23 }
 0x158   : > { %1142 = vrot.lane.b32.xlu1 %v8369_v25, %s8137_s29  ;;  %1066 = vrot.lane.b32.xlu0 %v8374_v26, %s8137_s29 }
 0x15c   : > { %1294 = vrot.lane.b32.xlu1 %v8376_v29, %s8137_s29  ;;  %1218 = vrot.lane.b32.xlu0 %v8380_v30, %s8137_s29 }
 0x192   : > { %v8426_v32 = vpop.permute.xlu1 %680  ;;  %v8428_v33 = vpop.permute.xlu0 %664 }
 0x193   : > { %1446 = vrot.lane.b32.xlu1 %v8428_v33, %s8137_s29 }
 0x196   : > { %v8432_v34 = vpop.permute.xlu1 %668  ;;  %v8434_v35 = vpop.permute.xlu0 %662 }
 0x197   : > { %1598 = vrot.lane.b32.xlu1 %v8432_v34, %s8137_s29  ;;  %1370 = vrot.lane.b32.xlu0 %v8434_v35, %s8137_s29 }
 0x19a   : > { %v8440_v36 = vpop.permute.xlu1 %666  ;;  %v8442_v37 = vpop.permute.xlu0 %678 }
 0x19b   : > { %1522 = vrot.lane.b32.xlu0 %v8440_v36, %s8137_s29 }
 0x19e   : > { %v8446_v38 = vpop.permute.xlu1 %672  ;;  %v8448_v39 = vpop.permute.xlu0 %670 }
 0x19f   : > { %1750 = vrot.lane.b32.xlu1 %v8446_v38, %s8137_s29  ;;  %1674 = vrot.lane.b32.xlu0 %v8448_v39, %s8137_s29 }
 0x1a2   : > { %v8454_v40 = vpop.permute.xlu1 %676  ;;  %v8456_v41 = vpop.permute.xlu0 %674 }
 0x1a3   : > { %1902 = vrot.lane.b32.xlu1 %v8454_v40, %s8137_s29  ;;  %1826 = vrot.lane.b32.xlu0 %v8456_v41, %s8137_s29 }
 0x1a6   : > { %v8462_v42 = vpop.permute.xlu1 %684  ;;  %v8464_v43 = vpop.permute.xlu0 %682 }
 0x1a7   : > { %2054 = vrot.lane.b32.xlu1 %v8426_v32, %s8137_s29  ;;  %1978 = vrot.lane.b32.xlu0 %v8442_v37, %s8137_s29 }
 0x1aa   : > { %v8470_v44 = vpop.permute.xlu1 %688  ;;  %v8472_v45 = vpop.permute.xlu0 %686 }
 0x1ab   : > { %2206 = vrot.lane.b32.xlu1 %v8462_v42, %s8137_s29  ;;  %2130 = vrot.lane.b32.xlu0 %v8464_v43, %s8137_s29 }
 0x1ae   : > { %v8478_v46 = vpop.permute.xlu1 %692  ;;  %v8480_v47 = vpop.permute.xlu0 %694 }
 0x1af   : > { %2358 = vrot.lane.b32.xlu1 %v8470_v44, %s8137_s29  ;;  %2282 = vrot.lane.b32.xlu0 %v8472_v45, %s8137_s29 }
 0x1b2   : > { %v8486_v48 = vpop.permute.xlu1 %696  ;;  %v8488_v49 = vpop.permute.xlu0 %690 }
 0x1b3   : > { %2510 = vrot.lane.b32.xlu1 %v8478_v46, %s8137_s29  ;;  %2434 = vrot.lane.b32.xlu0 %v8488_v49, %s8137_s29 }
 0x1b6   : > { %v8494_v50 = vpop.permute.xlu1 %700  ;;  %v8496_v51 = vpop.permute.xlu0 %698 }
 0x1b7   : > { %2662 = vrot.lane.b32.xlu1 %v8486_v48, %s8137_s29  ;;  %2586 = vrot.lane.b32.xlu0 %v8480_v47, %s8137_s29 }
 0x1ba   : > { %v8502_v52 = vpop.permute.xlu1 %702  ;;  %v839_v53 = vpop.permute.xlu0 %838 }
 0x1bb   : > { %2814 = vrot.lane.b32.xlu1 %v8494_v50, %s8137_s29  ;;  %2738 = vrot.lane.b32.xlu0 %v8496_v51, %s8137_s29 }
 0x1bc   : > { %7388 = vmatpush3.xpose.msk.msra.mxu1 %vm763_vm2, %v839_v53 }
 0x1bd   : > { %7392 = vmatprep.subr.mxu1 %v9711_v31 }
 0x1be   : > { %v762_v54 = vpop.permute.xlu1 %761  ;;  %v8510_v55 = vpop.permute.xlu0 %704 }
 0x1bf   : > { %7390 = vmatmul.mubr.msk.f32.vlgmr.msra.gmra.mrb[0].mxu1 %vm763_vm2, %v8356_v16  ;;  %7383 = vmatpush3.xpose.msk.msra.mxu0 %vm763_vm2, %v762_v54 }
 0x1c0   : > { %2890 = vrot.lane.b32.xlu0 %v8502_v52, %s8137_s29  ;;  %2966 = vrot.lane.b32.xlu1 %v8510_v55, %s8137_s29 }
 0x1c1   : > { %7394 = vmatprep.mubr.msk.f32.mxu1 %vm8136_vm1, %v9711_v31  ;;  %7407 = vmatprep.subr.mxu0 %v9711_v31 }
 0x1c2   : > { %7385 = vmatmul.mubr.msk.f32.vlgmr.msra.gmra.mrb[8].mxu0 %vm763_vm2, %v8361_v19  ;;  %v8524_v56 = vpop.permute.xlu1 %706  ;;  %v915_v57 = vpop.permute.xlu0 %914 }
 0x1c3   : > { %7393 = vmatpush3.xpose.msk.msra.mxu1 %vm763_vm2, %v915_v57  ;;  %7409 = vmatprep.mubr.msk.f32.mxu0 %vm8136_vm1, %v9711_v31 }
 0x1c4   : > { %3042 = vrot.lane.b32.xlu0 %v8524_v56, %s8137_s29  ;;  %7397 = vmatprep.subr.mxu1 %v9711_v31 }
 0x1c6   : > { %v991_v58 = vpop.permute.xlu1 %990  ;;  %7395 = vmatmul.mubr.msk.f32.vlgmr.msra.gmra.mrb[2].mxu1 %vm763_vm2, %v8367_v23  ;;  %v8534_v59 = vpop.permute.xlu0 %708 }
 0x1c7   : > { %7398 = vmatpush3.xpose.msk.msra.mxu1 %vm763_vm2, %v991_v58  ;;  %3118 = vrot.lane.b32.xlu1 %v8534_v59, %s8137_s29 }
 0x1c8   : > { %3726 = vrot.lane.b32.xlu0 %v8356_v16, %s8138_s15  ;;  %7399 = vmatprep.mubr.msk.f32.mxu1 %vm8136_vm1, %v9711_v31 }
 0x1c9   : > { %7402 = vmatprep.subr.mxu1 %v9711_v31 }
 0x1ca   : > { %v1143_v60 = vpop.permute.xlu1 %1142  ;;  %7400 = vmatmul.mubr.msk.f32.vlgmr.msra.gmra.mrb[4].mxu1 %vm763_vm2, %v8363_v20  ;;  %v1067_v61 = vpop.permute.xlu0 %1066 }
 0x1cb   : > { %7408 = vmatpush3.xpose.msk.msra.mxu0 %vm763_vm2, %v1143_v60  ;;  %3650 = vrot.lane.b32.xlu1 %v8361_v19, %s8138_s15 }
 0x1cc   : > { %3878 = vrot.lane.b32.xlu0 %v8363_v20, %s8138_s15  ;;  %7403 = vmatpush3.xpose.msk.msra.mxu1 %vm763_vm2, %v1067_v61 }
 0x1cd   : > { %7404 = vmatprep.mubr.msk.f32.mxu1 %vm8136_vm1, %v9711_v31  ;;  %7417 = vmatprep.subr.mxu0 %v9711_v31 }
 0x1ce   : > { %7410 = vmatmul.mubr.msk.f32.vlgmr.msra.gmra.mrb[10].mxu0 %vm763_vm2, %v8369_v25  ;;  %v1295_v62 = vpop.permute.xlu1 %1294  ;;  %7412 = vmatprep.subr.mxu1 %v9711_v31  ;;  %v1219_v63 = vpop.permute.xlu0 %1218 }
 0x1cf   : > { %7405 = vmatmul.mubr.msk.f32.vlgmr.msra.gmra.mrb[6].mxu1 %vm763_vm2, %v8374_v26  ;;  %7418 = vmatpush3.xpose.msk.msra.mxu0 %vm763_vm2, %v1295_v62 }
 0x1d0   : > { %4030 = vrot.lane.b32.xlu0 %v8369_v25, %s8138_s15  ;;  %3802 = vrot.lane.b32.xlu1 %v8367_v23, %s8138_s15 }
 0x1d1   : > { %7413 = vmatpush3.xpose.msk.msra.mxu1 %vm763_vm2, %v1219_v63  ;;  %7414 = vmatprep.mubr.msk.f32.mxu1 %vm8136_vm1, %v9711_v31 }
 0x1d2   : > { %7419 = vmatprep.mubr.msk.f32.mxu0 %vm8136_vm1, %v9711_v31  ;;  %7427 = vmatprep.subr.mxu0 %v9711_v31 }
 0x1d3   : > { %7420 = vmatmul.mubr.msk.f32.vlgmr.msra.gmra.mrb[12].mxu0 %vm763_vm2, %v8376_v29  ;;  %7422 = vmatprep.subr.mxu1 %v9711_v31 }
 0x1d4   : > { %7415 = vmatmul.mubr.msk.f32.vlgmr.msra.gmra.mrb[8].mxu1 %vm763_vm2, %v8380_v30  ;;  %4182 = vrot.lane.b32.xlu0 %v8376_v29, %s8138_s15 }
 0x1d5   : > { %3954 = vrot.lane.b32.xlu1 %v8374_v26, %s8138_s15  ;;  %7429 = vmatprep.mubr.msk.f32.mxu0 %vm8136_vm1, %v9711_v31  ;;  %v8139_v26 = vmov 1966171168  }
 0x1d6   : > { %7424 = vmatprep.mubr.msk.f32.mxu1 %vm8136_vm1, %v9711_v31  ;;  %v714_v27 = vunpack.c.l.s4 %v8139_v26 }
 0x1d8   : > { %4334 = vrot.lane.b32.xlu0 %v8428_v33, %s8138_s15  ;;  %v715_v29 = vunpack.c.0.s8 %v714_v27 }
 0x1d9   : > { %4106 = vrot.lane.b32.xlu1 %v8380_v30, %s8138_s15  ;;  %v717_v30 = vshrl.u32 %v716_v28, 7 }
 0x1dc   : > { %4486 = vrot.lane.b32.xlu0 %v8432_v34, %s8138_s15 }
 0x1dd   : > { %4258 = vrot.lane.b32.xlu1 %v8434_v35, %s8138_s15 }
 0x1e0   : > { %4638 = vrot.lane.b32.xlu0 %v8446_v38, %s8138_s15 }
 0x1e1   : > { %4410 = vrot.lane.b32.xlu1 %v8440_v36, %s8138_s15 }
 0x1e4   : > { %4790 = vrot.lane.b32.xlu0 %v8454_v40, %s8138_s15 }
 0x1e5   : > { %4562 = vrot.lane.b32.xlu1 %v8448_v39, %s8138_s15 }
 0x1e8   : > { %4942 = vrot.lane.b32.xlu0 %v8426_v32, %s8138_s15 }
 0x1e9   : > { %4866 = vrot.lane.b32.xlu1 %v8442_v37, %s8138_s15 }
 0x1ec   : > { %5094 = vrot.lane.b32.xlu0 %v8462_v42, %s8138_s15 }
 0x1ed   : > { %5018 = vrot.lane.b32.xlu1 %v8464_v43, %s8138_s15 }
 0x1f0   : > { %5474 = vrot.lane.b32.xlu0 %v8480_v47, %s8138_s15 }
 0x1f1   : > { %5170 = vrot.lane.b32.xlu1 %v8472_v45, %s8138_s15 }
 0x1f4   : > { %5626 = vrot.lane.b32.xlu0 %v8496_v51, %s8138_s15 }
 0x1f5   : > { %5246 = vrot.lane.b32.xlu1 %v8470_v44, %s8138_s15 }
 0x1f8   : > { %5322 = vrot.lane.b32.xlu0 %v8488_v49, %s8138_s15 }
 0x1f9   : > { %5398 = vrot.lane.b32.xlu1 %v8478_v46, %s8138_s15 }
 0x1fd   : > { %5550 = vrot.lane.b32.xlu1 %v8486_v48, %s8138_s15 }
 0x201   : > { %5702 = vrot.lane.b32.xlu1 %v8494_v50, %s8138_s15 }
 0x205   : > { %4714 = vrot.lane.b32.xlu1 %v8456_v41, %s8138_s15  ;;  %v1447_v0 = vpop.permute.xlu1 %1446 }
 0x206   : > { %7428 = vmatpush3.xpose.msk.msra.mxu0 %vm763_vm2, %v1447_v0 }
 0x207   : > { %7437 = vmatprep.subr.mxu0 %v9711_v31 }
 0x209   : > { %7430 = vmatmul.mubr.msk.f32.vlgmr.msra.gmra.mrb[14].mxu0 %vm763_vm2, %v8428_v33  ;;  %v1599_v1 = vpop.permute.xlu1 %1598  ;;  %v1371_v2 = vpop.permute.xlu0 %1370  ;;  %v710_v33 = vld [vmem:[%s503_s24] sm:$0xff]  ;;  %s8142_s24 = smov 24  }
 0x20a   : > { %7423 = vmatpush3.xpose.msk.msra.mxu1 %vm763_vm2, %v1371_v2  ;;  %7438 = vmatpush3.xpose.msk.msra.mxu0 %vm763_vm2, %v1599_v1 }
 0x20b   : > { %7439 = vmatprep.mubr.msk.f32.mxu0 %vm8136_vm1, %v9711_v31  ;;  %7432 = vmatprep.subr.mxu1 %v9711_v31 }
 0x20c   : > { %7447 = vmatprep.subr.mxu0 %v9711_v31 }
 0x20d   : > { %7425 = vmatmul.mubr.msk.f32.vlgmr.msra.gmra.mrb[10].mxu1 %vm763_vm2, %v8434_v35  ;;  %7440 = vmatmul.mubr.msk.f32.vlgmr.msra.gmra.mrb[16].mxu0 %vm763_vm2, %v8432_v34  ;;  %v1523_v3 = vpop.permute.xlu0 %1522 }
 0x20e   : > { %7433 = vmatpush3.xpose.msk.msra.mxu1 %vm763_vm2, %v1523_v3  ;;  %7434 = vmatprep.mubr.msk.f32.mxu1 %vm8136_vm1, %v9711_v31 }
 0x20f   : > { %7442 = vmatprep.subr.mxu1 %v9711_v31  ;;  %7449 = vmatprep.mubr.msk.f32.mxu0 %vm8136_vm1, %v9711_v31 }
 0x211   : > { %v1751_v4 = vpop.permute.xlu1 %1750  ;;  %7435 = vmatmul.mubr.msk.f32.vlgmr.msra.gmra.mrb[12].mxu1 %vm763_vm2, %v8440_v36  ;;  %v1675_v5 = vpop.permute.xlu0 %1674 }
 0x212   : > { %7443 = vmatpush3.xpose.msk.msra.mxu1 %vm763_vm2, %v1675_v5  ;;  %7448 = vmatpush3.xpose.msk.msra.mxu0 %vm763_vm2, %v1751_v4 }
 0x213   : > { %7444 = vmatprep.mubr.msk.f32.mxu1 %vm8136_vm1, %v9711_v31  ;;  %7457 = vmatprep.subr.mxu0 %v9711_v31 }
 0x214   : > { %7452 = vmatprep.subr.mxu1 %v9711_v31 }
 0x215   : > { %7450 = vmatmul.mubr.msk.f32.vlgmr.msra.gmra.mrb[18].mxu0 %vm763_vm2, %v8446_v38  ;;  %v1903_v6 = vpop.permute.xlu1 %1902  ;;  %7445 = vmatmul.mubr.msk.f32.vlgmr.msra.gmra.mrb[14].mxu1 %vm763_vm2, %v8448_v39  ;;  %v1827_v7 = vpop.permute.xlu0 %1826  ;;  %v712_v39 = vcombine.high %v710_v33, %v710_v33 }
 0x216   : > { %7453 = vmatpush3.xpose.msk.msra.mxu1 %vm763_vm2, %v1827_v7  ;;  %7458 = vmatpush3.xpose.msk.msra.mxu0 %vm763_vm2, %v1903_v6 }
 0x217   : > { %7454 = vmatprep.mubr.msk.f32.mxu1 %vm8136_vm1, %v9711_v31  ;;  %7459 = vmatprep.mubr.msk.f32.mxu0 %vm8136_vm1, %v9711_v31 }
 0x218   : > { %7467 = vmatprep.subr.mxu0 %v9711_v31  ;;  %7462 = vmatprep.subr.mxu1 %v9711_v31 }
 0x219   : > { %7460 = vmatmul.mubr.msk.f32.vlgmr.msra.gmra.mrb[20].mxu0 %vm763_vm2, %v8454_v40  ;;  %v2055_v8 = vpop.permute.xlu1 %2054  ;;  %7455 = vmatmul.mubr.msk.f32.vlgmr.msra.gmra.mrb[16].mxu1 %vm763_vm2, %v8456_v41  ;;  %v1979_v9 = vpop.permute.xlu0 %1978 }
 0x21a   : > { %7463 = vmatpush3.xpose.msk.msra.mxu1 %vm763_vm2, %v1979_v9  ;;  %7468 = vmatpush3.xpose.msk.msra.mxu0 %vm763_vm2, %v2055_v8 }
 0x21b   : > { %7464 = vmatprep.mubr.msk.f32.mxu1 %vm8136_vm1, %v9711_v31  ;;  %7469 = vmatprep.mubr.msk.f32.mxu0 %vm8136_vm1, %v9711_v31 }
 0x21c   : > { %7477 = vmatprep.subr.mxu0 %v9711_v31  ;;  %7472 = vmatprep.subr.mxu1 %v9711_v31 }
 0x21d   : > { %7470 = vmatmul.mubr.msk.f32.vlgmr.msra.gmra.mrb[22].mxu0 %vm763_vm2, %v8426_v32  ;;  %v2207_v10 = vpop.permute.xlu1 %2206  ;;  %7465 = vmatmul.mubr.msk.f32.vlgmr.msra.gmra.mrb[18].mxu1 %vm763_vm2, %v8442_v37  ;;  %v2131_v11 = vpop.permute.xlu0 %2130  ;;  %v718_v32 = vsub.s32 %v715_v29, %v717_v30  ;;  %v3228_v37 = vsub.s32 0, %v717_v30 }
 0x21e   : > { %7473 = vmatpush3.xpose.msk.msra.mxu1 %vm763_vm2, %v2131_v11  ;;  %7478 = vmatpush3.xpose.msk.msra.mxu0 %vm763_vm2, %v2207_v10 }
 0x21f   : > { %7474 = vmatprep.mubr.msk.f32.mxu1 %vm8136_vm1, %v9711_v31  ;;  %7479 = vmatprep.mubr.msk.f32.mxu0 %vm8136_vm1, %v9711_v31  ;;  %v719_v34 = vrot.slane %v710_v33, %v718_v32 }
 0x220   : > { %7487 = vmatprep.subr.mxu0 %v9711_v31  ;;  %7482 = vmatprep.subr.mxu1 %v9711_v31 }
 0x221   : > { %7480 = vmatmul.mubr.msk.f32.vlgmr.msra.gmra.mrb[24].mxu0 %vm763_vm2, %v8462_v42  ;;  %v2359_v12 = vpop.permute.xlu1 %2358  ;;  %7475 = vmatmul.mubr.msk.f32.vlgmr.msra.gmra.mrb[20].mxu1 %vm763_vm2, %v8464_v43  ;;  %v2283_v13 = vpop.permute.xlu0 %2282  ;;  %v727_v35 = vcombine.high %v719_v34, %v719_v34  ;;  %v735_v38 = vrot.slane %v719_v34, %v718_v32 }
 0x222   : > { %7483 = vmatpush3.xpose.msk.msra.mxu1 %vm763_vm2, %v2283_v13  ;;  %7488 = vmatpush3.xpose.msk.msra.mxu0 %vm763_vm2, %v2359_v12 }
 0x223   : > { %7484 = vmatprep.mubr.msk.f32.mxu1 %vm8136_vm1, %v9711_v31  ;;  %7489 = vmatprep.mubr.msk.f32.mxu0 %vm8136_vm1, %v9711_v31  ;;  %v749_v36 = vrot.slane %v727_v35, %v718_v32 }
 0x224   : > { %7497 = vmatprep.subr.mxu0 %v9711_v31  ;;  %7492 = vmatprep.subr.mxu1 %v9711_v31 }
 0x225   : > { %7490 = vmatmul.mubr.msk.f32.vlgmr.msra.gmra.mrb[26].mxu0 %vm763_vm2, %v8470_v44  ;;  %v2511_v14 = vpop.permute.xlu1 %2510  ;;  %7485 = vmatmul.mubr.msk.f32.vlgmr.msra.gmra.mrb[22].mxu1 %vm763_vm2, %v8472_v45  ;;  %v2435_v15 = vpop.permute.xlu0 %2434  ;;  %v8777_v40 = vrot.slane %v749_v36, %v3228_v37  ;;  %v8779_v44 = vrot.slane %v735_v38, %v3228_v37  ;;  %v757_v45 = vcombine.high %v735_v38, %v735_v38 }
 0x226   : > { %7493 = vmatpush3.xpose.msk.msra.mxu1 %vm763_vm2, %v2435_v15  ;;  %7498 = vmatpush3.xpose.msk.msra.mxu0 %vm763_vm2, %v2511_v14  ;;  %v759_v3 = vcombine.high %v749_v36, %v749_v36 }
 0x227   : > { %7494 = vmatprep.mubr.msk.f32.mxu1 %vm8136_vm1, %v9711_v31  ;;  %7499 = vmatprep.mubr.msk.f32.mxu0 %vm8136_vm1, %v9711_v31  ;;  %v8789_v54 = vrot.slane %v757_v45, %v3228_v37 }
 0x228   : > { %7507 = vmatprep.subr.mxu0 %v9711_v31  ;;  %7502 = vmatprep.subr.mxu1 %v9711_v31  ;;  %v8802_v9 = vrot.slane %v759_v3, %v3228_v37 }
 0x229   : > { %7500 = vmatmul.mubr.msk.f32.vlgmr.msra.gmra.mrb[28].mxu0 %vm763_vm2, %v8478_v46  ;;  %v2663_v16 = vpop.permute.xlu1 %2662  ;;  %7495 = vmatmul.mubr.msk.f32.vlgmr.msra.gmra.mrb[24].mxu1 %vm763_vm2, %v8488_v49  ;;  %v2587_v17 = vpop.permute.xlu0 %2586  ;;  %v726_v46 = vrot.slane %v712_v39, %v718_v32 }
 0x22a   : > { %7503 = vmatpush3.xpose.msk.msra.mxu1 %vm763_vm2, %v2587_v17  ;;  %7508 = vmatpush3.xpose.msk.msra.mxu0 %vm763_vm2, %v2663_v16 }
 0x22b   : > { %7504 = vmatprep.mubr.msk.f32.mxu1 %vm8136_vm1, %v9711_v31  ;;  %7509 = vmatprep.mubr.msk.f32.mxu0 %vm8136_vm1, %v9711_v31  ;;  %v728_v57 = vcombine.high %v726_v46, %v726_v46  ;;  %v742_v2 = vrot.slane %v726_v46, %v718_v32 }
 0x22c   : > { %7517 = vmatprep.subr.mxu0 %v9711_v31  ;;  %7512 = vmatprep.subr.mxu1 %v9711_v31 }
 0x22d   : > { %7510 = vmatmul.mubr.msk.f32.vlgmr.msra.gmra.mrb[30].mxu0 %vm763_vm2, %v8486_v48  ;;  %v2815_v18 = vpop.permute.xlu1 %2814  ;;  %7505 = vmatmul.mubr.msk.f32.vlgmr.msra.gmra.mrb[26].mxu1 %vm763_vm2, %v8480_v47  ;;  %v2739_v19 = vpop.permute.xlu0 %2738  ;;  %v756_v0 = vrot.slane %v728_v57, %v718_v32  ;;  %v8800_v8 = vrot.slane %v742_v2, %v3228_v37  ;;  %v758_v14 = vcombine.high %v742_v2, %v742_v2 }
 0x22e   : > { %7513 = vmatpush3.xpose.msk.msra.mxu1 %vm763_vm2, %v2739_v19  ;;  %7518 = vmatpush3.xpose.msk.msra.mxu0 %vm763_vm2, %v2815_v18 }
 0x22f   : > { %7514 = vmatprep.mubr.msk.f32.mxu1 %vm8136_vm1, %v9711_v31  ;;  %7519 = vmatprep.mubr.msk.f32.mxu0 %vm8136_vm1, %v9711_v31  ;;  %v8798_v6 = vrot.slane %v756_v0, %v3228_v37  ;;  %v760_v15 = vcombine.high %v756_v0, %v756_v0 }
 0x230   : > { %7527 = vmatprep.subr.mxu0 %v9711_v31  ;;  %7522 = vmatprep.subr.mxu1 %v9711_v31 }
 0x231   : > { %7520 = vmatmul.mubr.msk.f32.vlgmr.msra.gmra.mrb[32].mxu0 %vm763_vm2, %v8494_v50  ;;  %7515 = vmatmul.mubr.msk.f32.vlgmr.msra.gmra.mrb[28].mxu1 %vm763_vm2, %v8496_v51 }
 0x232   : > { %v2967_v20 = vpop.permute.xlu1 %2966  ;;  %v2891_v21 = vpop.permute.xlu0 %2890  ;;  %7524 = vmatprep.mubr.msk.f32.mxu1 %vm8136_vm1, %v9711_v31  ;;  %7529 = vmatprep.mubr.msk.f32.mxu0 %vm8136_vm1, %v9711_v31 }
 0x233   : > { %7523 = vmatpush3.xpose.msk.msra.mxu1 %vm763_vm2, %v2891_v21  ;;  %7528 = vmatpush3.xpose.msk.msra.mxu0 %vm763_vm2, %v2967_v20 }
 0x234   : > { %7532 = vmatprep.subr.mxu1 %v9711_v31  ;;  %7537 = vmatprep.subr.mxu0 %v9711_v31 }
 0x236   : > { %7525 = vmatmul.mubr.msk.f32.vlgmr.msra.gmra.mrb[30].mxu1 %vm763_vm2, %v8502_v52  ;;  %7530 = vmatmul.mubr.msk.f32.vlgmr.msra.gmra.mrb[34].mxu0 %vm763_vm2, %v8510_v55  ;;  %v3043_v22 = vpop.permute.xlu0 %3042 }
 0x237   : > { %7533 = vmatpush3.xpose.msk.msra.mxu1 %vm763_vm2, %v3043_v22  ;;  %7534 = vmatprep.mubr.msk.f32.mxu1 %vm8136_vm1, %v9711_v31 }
 0x238   : > { %7539 = vmatprep.mubr.msk.f32.mxu0 %vm8136_vm1, %v9711_v31  ;;  %7542 = vmatprep.subr.mxu1 %v9711_v31 }
 0x239   : > { %v3119_v23 = vpop.permute.xlu1 %3118 }
 0x23a   : > { %7535 = vmatmul.mubr.msk.f32.vlgmr.msra.gmra.mrb[32].mxu1 %vm763_vm2, %v8524_v56  ;;  %7538 = vmatpush3.xpose.msk.msra.mxu0 %vm763_vm2, %v3119_v23  ;;  %v3727_v24 = vpop.permute.xlu0 %3726  ;;  %v8815_v23 = vrot.slane %v758_v14, %v3228_v37 }
 0x23b   : > { %7547 = vmatprep.subr.mxu0 %v9711_v31  ;;  %7544 = vmatprep.mubr.msk.f32.mxu1 %vm8136_vm1, %v9711_v31 }
 0x23d   : > { %7540 = vmatmul.mubr.msk.f32.vlgmr.msra.gmra.mrb[36].mxu0 %vm763_vm2, %v8534_v59  ;;  %v3651_v25 = vpop.permute.xlu1 %3650 }
 0x23e   : > { %7543 = vmatpush3.msra.mxu1 %v3651_v25  ;;  %7548 = vmatpush3.msra.mxu0 %v3727_v24  ;;  %v8817_v24 = vrot.slane %v760_v15, %v3228_v37  ;;  %v8837_v39 = vpop.permute.xlu0 %3878 }
 0x23f   : > { %7549 = vmatprep.mubr.msk.f32.mxu0 %vm8136_vm1, %v9711_v31  ;;  %7557 = vmatprep.subr.mxu0 %v9711_v31 }
 0x240   : > { %7552 = vmatprep.subr.mxu1 %v9711_v31 }
 0x242   : > { %v8833_v37 = vpop.permute.xlu1 %3802  ;;  %v8841_v46 = vpop.permute.xlu0 %4030 }
 0x247   : > { %v8835_v38 = vpop.permute.xlu1 %3954 }
 0x292   : > { %v910_v41 = vpop.f32.mrb[0].mxu1 }
 0x293   : > { %v3195_v42 = vmul.f32 0.35355338, %v910_v41  ;;  %v7391_v43 = vpop.f32.mrb[1].mxu1  ;;  %v8839_v41 = vpop.permute.xlu1 %4106 }
 0x295   : > { %v834_v47 = vpop.f32.mrb[8].mxu0  ;;  %v8782_v48 = vadd.f32 %v8777_v40, %v3195_v42 }
 0x296   : > { %v3194_v49 = vmul.f32 0.35355338, %v834_v47  ;;  %v7386_v50 = vpop.f32.mrb[9].mxu0 }
 0x297   : > { %v3301_v51 = vsel %vm763_vm2, %v8782_v48, -inf  ;;  %v8843_v47 = vpop.permute.xlu1 %4258 }
 0x298   : > { %3302 = vmax.xlane.f32.xlu1 %v3301_v51  ;;  %v8787_v53 = vadd.f32 %v8779_v44, %v3194_v49 }
 0x299   : > { %v986_v58 = vpop.f32.mrb[2].mxu1 }
 0x29a   : > { %v3196_v60 = vmul.f32 0.35355338, %v986_v58  ;;  %v7396_v61 = vpop.f32.mrb[3].mxu1  ;;  %v3298_v62 = vsel %vm763_vm2, %v8787_v53, -inf }
 0x29b   : > { %3299 = vmax.xlane.f32.xlu0 %v3298_v62  ;;  %v8856_v3 = vpop.permute.xlu1 %4410 }
 0x29c   : > { %v8794_v63 = vadd.f32 %v8789_v54, %v3196_v60 }
 0x29d   : > { %v1062_v1 = vpop.f32.mrb[4].mxu1 }
 0x29e   : > { %v7401_v4 = vpop.f32.mrb[5].mxu1  ;;  %v3304_v5 = vsel %vm763_vm2, %v8794_v63, -inf  ;;  %v3197_v10 = vmul.f32 0.35355338, %v1062_v1 }
 0x29f   : > { %3305 = vmax.xlane.f32.xlu0 %v3304_v5 }
 0x2a0   : > { %v8813_v22 = vadd.f32 %v8802_v9, %v3197_v10 }
 0x2a1   : > { %v1214_v7 = vpop.f32.mrb[10].mxu0 }
 0x2a2   : > { %v1138_v11 = vpop.f32.mrb[6].mxu1  ;;  %v3199_v12 = vmul.f32 0.35355338, %v1214_v7  ;;  %v7411_v13 = vpop.f32.mrb[11].mxu0  ;;  %v3307_v32 = vsel %vm763_vm2, %v8813_v22, -inf }
 0x2a3   : > { %v3198_v16 = vmul.f32 0.35355338, %v1138_v11  ;;  %v7406_v17 = vpop.f32.mrb[7].mxu1  ;;  %v8862_v11 = vpop.permute.xlu0 %4182 }
 0x2a4   : > { %v8805_v18 = vadd.f32 %v8798_v6, %v3199_v12 }
 0x2a5   : > { %v8808_v19 = vadd.f32 %v8800_v8, %v3198_v16 }
 0x2a6   : > { %v1366_v20 = vpop.f32.mrb[12].mxu0  ;;  %v3313_v21 = vsel %vm763_vm2, %v8805_v18, -inf }
 0x2a7   : > { %v1290_v25 = vpop.f32.mrb[8].mxu1  ;;  %v3201_v26 = vmul.f32 0.35355338, %v1366_v20  ;;  %v7421_v27 = vpop.f32.mrb[13].mxu0  ;;  %3314 = vmax.xlane.f32.xlu0 %v3313_v21  ;;  %v3310_v28 = vsel %vm763_vm2, %v8808_v19, -inf }
 0x2a8   : > { %v3200_v29 = vmul.f32 0.35355338, %v1290_v25  ;;  %v7416_v30 = vpop.f32.mrb[9].mxu1  ;;  %3311 = vmax.xlane.f32.xlu1 %v3310_v28  ;;  %v8869_v25 = vpop.permute.xlu1 %4562 }
 0x2a9   : > { %v8827_v34 = vadd.f32 %v8817_v24, %v3201_v26 }
 0x2aa   : > { %v8824_v33 = vadd.f32 %v8815_v23, %v3200_v29 }
 0x2ab   : > { %3308 = vmax.xlane.f32.xlu0 %v3307_v32  ;;  %v3319_v36 = vsel %vm763_vm2, %v8827_v34, -inf }
 0x2ac   : > { %v3316_v35 = vsel %vm763_vm2, %v8824_v33, -inf }
 0x2ad   : > { %3317 = vmax.xlane.f32.xlu1 %v3316_v35 }
 0x2af   : > { %3320 = vmax.xlane.f32.xlu0 %v3319_v36 }
 0x2dc   : > { %v1518_v42 = vpop.f32.mrb[14].mxu0 }
 0x2dd   : > { %v3203_v43 = vmul.f32 0.35355338, %v1518_v42  ;;  %v7431_v45 = vpop.f32.mrb[15].mxu0 }
 0x2de   : > { %v8881_v45 = vpop.permute.xlu0 %4334 }
 0x2df   : > { %v8846_v49 = vadd.f32 %v8777_v40, %v3203_v43 }
 0x2e0   : > { %v1442_v50 = vpop.f32.mrb[10].mxu1  ;;  %v1670_v51 = vpop.f32.mrb[16].mxu0 }
 0x2e1   : > { %v3202_v57 = vmul.f32 0.35355338, %v1442_v50  ;;  %v3205_v58 = vmul.f32 0.35355338, %v1670_v51  ;;  %v7426_v60 = vpop.f32.mrb[11].mxu1  ;;  %v7441_v61 = vpop.f32.mrb[17].mxu0 }
 0x2e2   : > { %v3325_v62 = vsel %vm763_vm2, %v8846_v49, -inf }
 0x2e3   : > { %3326 = vmax.xlane.f32.xlu0 %v3325_v62  ;;  %v8851_v0 = vadd.f32 %v8802_v9, %v3205_v58  ;;  %v8854_v1 = vadd.f32 %v8779_v44, %v3202_v57 }
 0x2e4   : > { %v1594_v2 = vpop.f32.mrb[12].mxu1 }
 0x2e5   : > { %v3204_v4 = vmul.f32 0.35355338, %v1594_v2  ;;  %v7436_v5 = vpop.f32.mrb[13].mxu1  ;;  %v3331_v7 = vsel %vm763_vm2, %v8851_v0, -inf  ;;  %v3322_v10 = vsel %vm763_vm2, %v8854_v1, -inf }
 0x2e6   : > { %3323 = vmax.xlane.f32.xlu1 %v3322_v10 }
 0x2e7   : > { %3332 = vmax.xlane.f32.xlu0 %v3331_v7  ;;  %v8865_v12 = vadd.f32 %v8789_v54, %v3204_v4  ;;  %v8893_v7 = vpop.permute.xlu1 %4866 }
 0x2e8   : > { %v1746_v13 = vpop.f32.mrb[14].mxu1  ;;  %v1822_v14 = vpop.f32.mrb[18].mxu0  ;;  %9723 = vst [vmem:[#allocation12_spill] sm:$0xff] %v8893_v7 }
 0x2e9   : > { %v3206_v15 = vmul.f32 0.35355338, %v1746_v13  ;;  %v3207_v16 = vmul.f32 0.35355338, %v1822_v14  ;;  %v7446_v17 = vpop.f32.mrb[15].mxu1  ;;  %v7451_v20 = vpop.f32.mrb[19].mxu0 }
 0x2ea   : > { %v3328_v21 = vsel %vm763_vm2, %v8865_v12, -inf }
 0x2eb   : > { %3329 = vmax.xlane.f32.xlu1 %v3328_v21  ;;  %v8872_v26 = vadd.f32 %v8798_v6, %v3207_v16  ;;  %v8875_v27 = vadd.f32 %v8800_v8, %v3206_v15 }
 0x2ec   : > { %v1898_v28 = vpop.f32.mrb[16].mxu1  ;;  %v1974_v29 = vpop.f32.mrb[20].mxu0 }
 0x2ed   : > { %v3208_v30 = vmul.f32 0.35355338, %v1898_v28  ;;  %v3209_v32 = vmul.f32 0.35355338, %v1974_v29  ;;  %v7456_v35 = vpop.f32.mrb[17].mxu1  ;;  %v7461_v36 = vpop.f32.mrb[21].mxu0 }
 0x2ee   : > { %v3337_v42 = vsel %vm763_vm2, %v8872_v26, -inf  ;;  %v3334_v43 = vsel %vm763_vm2, %v8875_v27, -inf }
 0x2ef   : > { %v8884_v50 = vadd.f32 %v8815_v23, %v3208_v30  ;;  %v8887_v51 = vadd.f32 %v8817_v24, %v3209_v32  ;;  %3338 = vmax.xlane.f32.xlu0 %v3337_v42  ;;  %3335 = vmax.xlane.f32.xlu1 %v3334_v43  ;;  %v8905_v30 = vpop.permute.xlu0 %4486 }
 0x2f0   : > { %v2050_v57 = vpop.f32.mrb[18].mxu1  ;;  %v2126_v58 = vpop.f32.mrb[22].mxu0 }
 0x2f1   : > { %v3210_v60 = vmul.f32 0.35355338, %v2050_v57  ;;  %v3211_v61 = vmul.f32 0.35355338, %v2126_v58  ;;  %v7466_v62 = vpop.f32.mrb[19].mxu1  ;;  %v7471_v2 = vpop.f32.mrb[23].mxu0 }
 0x2f2   : > { %v3343_v4 = vsel %vm763_vm2, %v8887_v51, -inf  ;;  %v3340_v5 = vsel %vm763_vm2, %v8884_v50, -inf  ;;  %v8917_v2 = vpop.permute.xlu1 %5018 }
 0x2f3   : > { %v8896_v10 = vadd.f32 %v8779_v44, %v3210_v60  ;;  %v8899_v13 = vadd.f32 %v8777_v40, %v3211_v61  ;;  %3344 = vmax.xlane.f32.xlu0 %v3343_v4  ;;  %3341 = vmax.xlane.f32.xlu1 %v3340_v5  ;;  %9724 = vst [vmem:[#allocation13_spill] sm:$0xff] %v8917_v2 }
 0x2f4   : > { %v2202_v14 = vpop.f32.mrb[20].mxu1  ;;  %v2278_v15 = vpop.f32.mrb[24].mxu0 }
 0x2f5   : > { %v3212_v16 = vmul.f32 0.35355338, %v2202_v14  ;;  %v3213_v17 = vmul.f32 0.35355338, %v2278_v15  ;;  %v7476_v20 = vpop.f32.mrb[21].mxu1  ;;  %v7481_v21 = vpop.f32.mrb[25].mxu0 }
 0x2f6   : > { %v3349_v28 = vsel %vm763_vm2, %v8899_v13, -inf  ;;  %v3346_v29 = vsel %vm763_vm2, %v8896_v10, -inf }
 0x2f7   : > { %v8908_v32 = vadd.f32 %v8789_v54, %v3212_v16  ;;  %v8911_v35 = vadd.f32 %v8802_v9, %v3213_v17  ;;  %3350 = vmax.xlane.f32.xlu0 %v3349_v28  ;;  %3347 = vmax.xlane.f32.xlu1 %v3346_v29 }
 0x2f8   : > { %v2354_v36 = vpop.f32.mrb[22].mxu1  ;;  %v2430_v42 = vpop.f32.mrb[26].mxu0 }
 0x2f9   : > { %v3214_v43 = vmul.f32 0.35355338, %v2354_v36  ;;  %v3215_v57 = vmul.f32 0.35355338, %v2430_v42  ;;  %v7486_v58 = vpop.f32.mrb[23].mxu1  ;;  %v7491_v60 = vpop.f32.mrb[27].mxu0 }
 0x2fa   : > { %v3355_v61 = vsel %vm763_vm2, %v8911_v35, -inf  ;;  %v3352_v62 = vsel %vm763_vm2, %v8908_v32, -inf  ;;  %v8929_v36 = vpop.permute.xlu0 %4638 }
 0x2fb   : > { %v8920_v4 = vadd.f32 %v8800_v8, %v3214_v43  ;;  %v8923_v5 = vadd.f32 %v8798_v6, %v3215_v57  ;;  %3356 = vmax.xlane.f32.xlu0 %v3355_v61  ;;  %3353 = vmax.xlane.f32.xlu1 %v3352_v62 }
 0x2fc   : > { %v2506_v14 = vpop.f32.mrb[24].mxu1  ;;  %v2582_v15 = vpop.f32.mrb[28].mxu0 }
 0x2fd   : > { %v3216_v16 = vmul.f32 0.35355338, %v2506_v14  ;;  %v3217_v17 = vmul.f32 0.35355338, %v2582_v15  ;;  %v7496_v20 = vpop.f32.mrb[25].mxu1  ;;  %v7501_v21 = vpop.f32.mrb[29].mxu0 }
 0x2fe   : > { %v3361_v28 = vsel %vm763_vm2, %v8923_v5, -inf  ;;  %v3358_v29 = vsel %vm763_vm2, %v8920_v4, -inf  ;;  %v8937_v15 = vpop.permute.xlu1 %5170  ;;  %v8949_v31 = vpop.permute.xlu0 %4790 }
 0x2ff   : > { %v8932_v42 = vadd.f32 %v8815_v23, %v3216_v16  ;;  %v8935_v43 = vadd.f32 %v8817_v24, %v3217_v17  ;;  %3362 = vmax.xlane.f32.xlu0 %v3361_v28  ;;  %3359 = vmax.xlane.f32.xlu1 %v3358_v29  ;;  %9725 = vst [vmem:[#allocation14_spill] sm:$0xff] %v8937_v15 }
 0x300   : > { %v2658_v57 = vpop.f32.mrb[26].mxu1  ;;  %v2734_v58 = vpop.f32.mrb[30].mxu0 }
 0x301   : > { %v3218_v60 = vmul.f32 0.35355338, %v2658_v57  ;;  %v3219_v61 = vmul.f32 0.35355338, %v2734_v58  ;;  %v7506_v62 = vpop.f32.mrb[27].mxu1  ;;  %v7511_v14 = vpop.f32.mrb[31].mxu0 }
 0x302   : > { %v3367_v20 = vsel %vm763_vm2, %v8935_v43, -inf  ;;  %v3364_v16 = vsel %vm763_vm2, %v8932_v42, -inf }
 0x303   : > { %v8944_v21 = vadd.f32 %v8779_v44, %v3218_v60  ;;  %v8947_v17 = vadd.f32 %v8777_v40, %v3219_v61  ;;  %3368 = vmax.xlane.f32.xlu0 %v3367_v20  ;;  %3365 = vmax.xlane.f32.xlu1 %v3364_v16  ;;  %v8961_v61 = vpop.permute.xlu1 %5246 }
 0x304   : > { %v2810_v28 = vpop.f32.mrb[28].mxu1  ;;  %v2886_v29 = vpop.f32.mrb[32].mxu0  ;;  %9726 = vst [vmem:[#allocation15_spill] sm:$0xff] %v8961_v61 }
 0x305   : > { %v3220_v57 = vmul.f32 0.35355338, %v2810_v28  ;;  %v3221_v58 = vmul.f32 0.35355338, %v2886_v29  ;;  %v7516_v62 = vpop.f32.mrb[29].mxu1  ;;  %v7521_v14 = vpop.f32.mrb[33].mxu0 }
 0x306   : > { %v3373_v15 = vsel %vm763_vm2, %v8947_v17, -inf  ;;  %v3370_v44 = vsel %vm763_vm2, %v8944_v21, -inf }
 0x307   : > { %v8956_v60 = vadd.f32 %v8789_v54, %v3220_v57  ;;  %v8959_v40 = vadd.f32 %v8802_v9, %v3221_v58  ;;  %3374 = vmax.xlane.f32.xlu0 %v3373_v15  ;;  %3371 = vmax.xlane.f32.xlu1 %v3370_v44  ;;  %v8967_v9 = vpop.permute.xlu0 %4942 }
 0x308   : > { %9727 = vst [vmem:[#allocation16_spill] sm:$0xff] %v8967_v9 }
 0x309   : > { %v2962_v20 = vpop.f32.mrb[30].mxu1  ;;  %v3038_v16 = vpop.f32.mrb[34].mxu0  ;;  %v3379_v28 = vsel %vm763_vm2, %v8959_v40, -inf  ;;  %v3376_v29 = vsel %vm763_vm2, %v8956_v60, -inf }
 0x30a   : > { %v3222_v62 = vmul.f32 0.35355338, %v2962_v20  ;;  %v3223_v14 = vmul.f32 0.35355338, %v3038_v16  ;;  %v7526_v2 = vpop.f32.mrb[31].mxu1  ;;  %v7531_v54 = vpop.f32.mrb[35].mxu0 }
 0x30b   : > { %3380 = vmax.xlane.f32.xlu0 %v3379_v28  ;;  %3377 = vmax.xlane.f32.xlu1 %v3376_v29  ;;  %v8979_v2 = vpop.permute.xlu1 %5398  ;;  %v8981_v29 = vpop.permute.xlu0 %5094 }
 0x30c   : > { %v8970_v15 = vadd.f32 %v8800_v8, %v3222_v62  ;;  %v8973_v57 = vadd.f32 %v8798_v6, %v3223_v14  ;;  %9728 = vst [vmem:[#allocation17_spill] sm:$0xff] %v8979_v2  ;;  %9729 = vst [vmem:[#allocation18_spill] sm:$0xff] %v8981_v29 }
 0x30d   : > { %v3114_v58 = vpop.f32.mrb[32].mxu1 }
 0x30e   : > { %v7536_v44 = vpop.f32.mrb[33].mxu1  ;;  %v3385_v61 = vsel %vm763_vm2, %v8973_v57, -inf  ;;  %v3382_v20 = vsel %vm763_vm2, %v8970_v15, -inf }
 0x30f   : > { %3386 = vmax.xlane.f32.xlu0 %v3385_v61  ;;  %3383 = vmax.xlane.f32.xlu1 %v3382_v20  ;;  %v8983_v8 = vpop.permute.xlu1 %5550  ;;  %v8985_v6 = vpop.permute.xlu0 %5474 }
 0x310   : > { %v3190_v16 = vpop.f32.mrb[36].mxu0  ;;  %9730 = vst [vmem:[#allocation19_spill] sm:$0xff] %v8983_v8  ;;  %9731 = vst [vmem:[#allocation20_spill] sm:$0xff] %v8985_v6 }
 0x311   : > { %v7541_v28 = vpop.f32.mrb[37].mxu0  ;;  %v3225_v8 = vmul.f32 0.35355338, %v3190_v16 }
 0x313   : > { %v8987_v62 = vpop.permute.xlu1 %5702  ;;  %v8989_v14 = vpop.permute.xlu0 %5626 }
 0x314   : > { %9732 = vst [vmem:[#allocation21_spill] sm:$0xff] %v8987_v62  ;;  %9733 = vst [vmem:[#allocation22_spill] sm:$0xff] %v8989_v14  ;;  %v3224_v62 = vmul.f32 0.35355338, %v3114_v58  ;;  %v9000_v14 = vadd.f32 %v8817_v24, %v3225_v8 }
 0x317   : > { %v8991_v54 = vpop.permute.xlu1 %4714  ;;  %v8993_v44 = vpop.permute.xlu0 %5322 }
 0x318   : > { %9734 = vst [vmem:[#allocation23_spill] sm:$0xff] %v8993_v44 }
 0x325   : > { %v3303_v9 = vpop.xlane.xlu1 %3302 }
 0x326   : > { %v3395_v61 = vsub.f32 %v8782_v48, %v3303_v9  ;;  %v9007_v48 = vadd.f32 %v8815_v23, %v3224_v62  ;;  %v3391_v9 = vsel %vm763_vm2, %v9000_v14, -inf }
 0x328   : > { %v3428_v20 = vmul.f32 1.442695, %v3395_v61  ;;  %v3300_v2 = vpop.xlane.xlu0 %3299  ;;  %v3388_v24 = vsel %vm763_vm2, %v9007_v48, -inf }
 0x329   : > { %v3394_v28 = vsub.f32 %v8787_v53, %v3300_v2 }
 0x32a   : > { %7871 = vpow2.f32 %v3428_v20 }
 0x32b   : > { %v3426_v29 = vmul.f32 1.442695, %v3394_v28 }
 0x32c   : > { %v3306_v58 = vpop.xlane.xlu0 %3305 }
 0x32d   : > { %7873 = vpow2.f32 %v3426_v29  ;;  %v3396_v8 = vsub.f32 %v8794_v63, %v3306_v58 }
 0x32f   : > { %v3430_v20 = vmul.f32 1.442695, %v3396_v8 }
 0x334   : > { %v8997_v6 = vpop.eup %7871  ;;  %v3315_v23 = vpop.xlane.xlu0 %3314 }
 0x335   : > { %v3493_v44 = vsel %vm763_vm2, %v8997_v6, 0.0  ;;  %v3399_v16 = vsub.f32 %v8805_v18, %v3315_v23  ;;  %v3312_v29 = vpop.xlane.xlu1 %3311 }
 0x336   : > { %3494 = vadd.xlane.f32.xlu0 %v3493_v44  ;;  %v3398_v28 = vsub.f32 %v8808_v19, %v3312_v29 }
 0x337   : > { %v9004_v7 = vpop.eup %7873  ;;  %v3436_v62 = vmul.f32 1.442695, %v3399_v16 }
 0x338   : > { %v3490_v53 = vsel %vm763_vm2, %v9004_v7, 0.0  ;;  %v3309_v2 = vpop.xlane.xlu0 %3308 }
 0x339   : > { %3491 = vadd.xlane.f32.xlu1 %v3490_v53  ;;  %v3397_v44 = vsub.f32 %v8813_v22, %v3309_v2  ;;  %7875 = vpow2.f32 %v3436_v62 }
 0x33a   : > { %3392 = vmax.xlane.f32.xlu0 %v3391_v9  ;;  %v3318_v53 = vpop.xlane.xlu1 %3317  ;;  %7877 = vpow2.f32 %v3430_v20 }
 0x33c   : > { %v3321_v61 = vpop.xlane.xlu0 %3320 }
 0x33d   : > { %3389 = vmax.xlane.f32.xlu1 %v3388_v24  ;;  %v3401_v9 = vsub.f32 %v8827_v34, %v3321_v61  ;;  %v3400_v24 = vsub.f32 %v8824_v33, %v3318_v53 }
 0x33f   : > { %v3440_v18 = vmul.f32 1.442695, %v3401_v9  ;;  %v3438_v63 = vmul.f32 1.442695, %v3400_v24 }
 0x343   : > { %v9025_v58 = vpop.eup %7875 }
 0x344   : > { %v9027_v22 = vpop.eup %7877  ;;  %v3505_v19 = vsel %vm763_vm2, %v9025_v58, 0.0 }
 0x345   : > { %v3496_v33 = vsel %vm763_vm2, %v9027_v22, 0.0 }
 0x34e   : > { %5854 = vrot.lane.b32.xlu1 %v8510_v55, %s8138_s15  ;;  %v3432_v55 = vmul.f32 1.442695, %v3397_v44 }
 0x350   : > { %5778 = vrot.lane.b32.xlu0 %v8502_v52, %s8138_s15  ;;  %v3434_v52 = vmul.f32 1.442695, %v3398_v28  ;;  %7879 = vpow2.f32 %v3432_v55 }
 0x352   : > { %7881 = vpow2.f32 %v3434_v52 }
 0x353   : > { %7883 = vpow2.f32 %v3440_v18 }
 0x354   : > { %7885 = vpow2.f32 %v3438_v63 }
 0x35a   : > { %v9031_v23 = vpop.eup %7879 }
 0x35b   : > { %v3499_v29 = vsel %vm763_vm2, %v9031_v23, 0.0 }
 0x35c   : > { %v9036_v16 = vpop.eup %7881 }
 0x35d   : > { %v9040_v8 = vpop.eup %7883  ;;  %v3502_v28 = vsel %vm763_vm2, %v9036_v16, 0.0 }
 0x35e   : > { %v9046_v53 = vpop.eup %7885  ;;  %v3511_v9 = vsel %vm763_vm2, %v9040_v8, 0.0 }
 0x36f   : > { %3506 = vadd.xlane.f32.xlu0 %v3505_v19 }
 0x370   : > { %v3327_v34 = vpop.xlane.xlu0 %3326 }
 0x371   : > { %v3403_v2 = vsub.f32 %v8846_v49, %v3327_v34 }
 0x372   : > { %3497 = vadd.xlane.f32.xlu1 %v3496_v33 }
 0x373   : > { %v3444_v62 = vmul.f32 1.442695, %v3403_v2  ;;  %3500 = vadd.xlane.f32.xlu0 %v3499_v29  ;;  %v3324_v44 = vpop.xlane.xlu1 %3323 }
 0x374   : > { %v3402_v61 = vsub.f32 %v8854_v1, %v3324_v44  ;;  %v3333_v20 = vpop.xlane.xlu0 %3332 }
 0x375   : > { %7887 = vpow2.f32 %v3444_v62  ;;  %v3405_v49 = vsub.f32 %v8851_v0, %v3333_v20  ;;  %v3508_v0 = vsel %vm763_vm2, %v9046_v53, 0.0 }
 0x376   : > { %v3442_v55 = vmul.f32 1.442695, %v3402_v61  ;;  %3503 = vadd.xlane.f32.xlu1 %v3502_v28 }
 0x377   : > { %v3448_v52 = vmul.f32 1.442695, %v3405_v49  ;;  %3512 = vadd.xlane.f32.xlu0 %v3511_v9 }
 0x378   : > { %7889 = vpow2.f32 %v3442_v55  ;;  %v3330_v24 = vpop.xlane.xlu1 %3329 }
 0x379   : > { %7891 = vpow2.f32 %v3448_v52  ;;  %v3404_v1 = vsub.f32 %v8865_v12, %v3330_v24 }
 0x37a   : > { %3509 = vadd.xlane.f32.xlu1 %v3508_v0 }
 0x37b   : > { %v3446_v18 = vmul.f32 1.442695, %v3404_v1 }
 0x37c   : > { %v3336_v63 = vpop.xlane.xlu1 %3335  ;;  %v3339_v19 = vpop.xlane.xlu0 %3338 }
 0x37d   : > { %7893 = vpow2.f32 %v3446_v18  ;;  %v3406_v34 = vsub.f32 %v8875_v27, %v3336_v63  ;;  %v3407_v2 = vsub.f32 %v8872_v26, %v3339_v19 }
 0x37f   : > { %v9055_v33 = vpop.eup %7887  ;;  %v3450_v29 = vmul.f32 1.442695, %v3406_v34  ;;  %v3452_v62 = vmul.f32 1.442695, %v3407_v2 }
 0x380   : > { %v3342_v44 = vpop.xlane.xlu1 %3341  ;;  %v3345_v61 = vpop.xlane.xlu0 %3344  ;;  %v3517_v12 = vsel %vm763_vm2, %v9055_v33, 0.0 }
 0x381   : > { %7895 = vpow2.f32 %v3450_v29  ;;  %v3408_v20 = vsub.f32 %v8884_v50, %v3342_v44  ;;  %v3409_v49 = vsub.f32 %v8887_v51, %v3345_v61  ;;  %3518 = vadd.xlane.f32.xlu0 %v3517_v12 }
 0x382   : > { %v9061_v28 = vpop.eup %7889  ;;  %7897 = vpow2.f32 %v3452_v62 }
 0x383   : > { %v9063_v27 = vpop.eup %7891  ;;  %v3454_v26 = vmul.f32 1.442695, %v3408_v20  ;;  %v3456_v55 = vmul.f32 1.442695, %v3409_v49  ;;  %v3514_v9 = vsel %vm763_vm2, %v9061_v28, 0.0 }
 0x384   : > { %v3348_v52 = vpop.xlane.xlu1 %3347  ;;  %v3351_v24 = vpop.xlane.xlu0 %3350  ;;  %3515 = vadd.xlane.f32.xlu1 %v3514_v9  ;;  %v3523_v1 = vsel %vm763_vm2, %v9063_v27, 0.0 }
 0x385   : > { %7899 = vpow2.f32 %v3454_v26  ;;  %v3410_v50 = vsub.f32 %v8896_v10, %v3348_v52  ;;  %v3411_v51 = vsub.f32 %v8899_v13, %v3351_v24  ;;  %3524 = vadd.xlane.f32.xlu0 %v3523_v1 }
 0x386   : > { %7901 = vpow2.f32 %v3456_v55 }
 0x387   : > { %v9071_v0 = vpop.eup %7893  ;;  %v3458_v18 = vmul.f32 1.442695, %v3410_v50  ;;  %v3460_v63 = vmul.f32 1.442695, %v3411_v51 }
 0x388   : > { %v3354_v19 = vpop.xlane.xlu1 %3353  ;;  %v3357_v34 = vpop.xlane.xlu0 %3356  ;;  %v3520_v2 = vsel %vm763_vm2, %v9071_v0, 0.0 }
 0x389   : > { %7903 = vpow2.f32 %v3458_v18  ;;  %v3412_v29 = vsub.f32 %v8908_v32, %v3354_v19  ;;  %v3413_v62 = vsub.f32 %v8911_v35, %v3357_v34  ;;  %3521 = vadd.xlane.f32.xlu1 %v3520_v2 }
 0x38a   : > { %7905 = vpow2.f32 %v3460_v63 }
 0x38b   : > { %v9077_v10 = vpop.eup %7895  ;;  %v3462_v13 = vmul.f32 1.442695, %v3412_v29  ;;  %v3464_v44 = vmul.f32 1.442695, %v3413_v62 }
 0x38c   : > { %v9079_v61 = vpop.eup %7897  ;;  %v3360_v12 = vpop.xlane.xlu1 %3359  ;;  %v3526_v49 = vsel %vm763_vm2, %v9077_v10, 0.0 }
 0x38d   : > { %v3363_v20 = vpop.xlane.xlu0 %3362  ;;  %7907 = vpow2.f32 %v3462_v13  ;;  %v3414_v26 = vsub.f32 %v8920_v4, %v3360_v12  ;;  %3527 = vadd.xlane.f32.xlu1 %v3526_v49  ;;  %v3529_v35 = vsel %vm763_vm2, %v9079_v61, 0.0 }
 0x38e   : > { %v3415_v32 = vsub.f32 %v8923_v5, %v3363_v20  ;;  %7909 = vpow2.f32 %v3464_v44  ;;  %3530 = vadd.xlane.f32.xlu0 %v3529_v35 }
 0x38f   : > { %v9087_v55 = vpop.eup %7899  ;;  %v3466_v9 = vmul.f32 1.442695, %v3414_v26 }
 0x390   : > { %v3468_v52 = vmul.f32 1.442695, %v3415_v32  ;;  %v9089_v24 = vpop.eup %7901  ;;  %v3366_v1 = vpop.xlane.xlu1 %3365  ;;  %v3532_v51 = vsel %vm763_vm2, %v9087_v55, 0.0 }
 0x391   : > { %v3369_v50 = vpop.xlane.xlu0 %3368  ;;  %7911 = vpow2.f32 %v3466_v9  ;;  %v3416_v4 = vsub.f32 %v8932_v42, %v3366_v1  ;;  %3533 = vadd.xlane.f32.xlu1 %v3532_v51  ;;  %v3535_v18 = vsel %vm763_vm2, %v9089_v24, 0.0 }
 0x392   : > { %v3417_v5 = vsub.f32 %v8935_v43, %v3369_v50  ;;  %7913 = vpow2.f32 %v3468_v52  ;;  %3536 = vadd.xlane.f32.xlu0 %v3535_v18 }
 0x393   : > { %v9097_v63 = vpop.eup %7903  ;;  %v3470_v19 = vmul.f32 1.442695, %v3416_v4 }
 0x394   : > { %v3472_v34 = vmul.f32 1.442695, %v3417_v5  ;;  %v9099_v2 = vpop.eup %7905  ;;  %v3372_v29 = vpop.xlane.xlu1 %3371  ;;  %v3538_v13 = vsel %vm763_vm2, %v9097_v63, 0.0 }
 0x395   : > { %v3375_v62 = vpop.xlane.xlu0 %3374  ;;  %7915 = vpow2.f32 %v3470_v19  ;;  %v3418_v42 = vsub.f32 %v8944_v21, %v3372_v29  ;;  %3539 = vadd.xlane.f32.xlu1 %v3538_v13  ;;  %v3541_v44 = vsel %vm763_vm2, %v9099_v2, 0.0 }
 0x396   : > { %v3419_v43 = vsub.f32 %v8947_v17, %v3375_v62  ;;  %7917 = vpow2.f32 %v3472_v34  ;;  %3542 = vadd.xlane.f32.xlu0 %v3541_v44 }
 0x397   : > { %v9107_v12 = vpop.eup %7907  ;;  %v3474_v20 = vmul.f32 1.442695, %v3418_v42 }
 0x398   : > { %v3476_v49 = vmul.f32 1.442695, %v3419_v43  ;;  %v9109_v26 = vpop.eup %7909  ;;  %v3378_v32 = vpop.xlane.xlu1 %3377  ;;  %v3544_v9 = vsel %vm763_vm2, %v9107_v12, 0.0 }
 0x399   : > { %v3381_v35 = vpop.xlane.xlu0 %3380  ;;  %7919 = vpow2.f32 %v3474_v20  ;;  %v3420_v21 = vsub.f32 %v8956_v60, %v3378_v32  ;;  %3545 = vadd.xlane.f32.xlu1 %v3544_v9  ;;  %v3547_v52 = vsel %vm763_vm2, %v9109_v26, 0.0 }
 0x39a   : > { %v3421_v17 = vsub.f32 %v8959_v40, %v3381_v35  ;;  %7921 = vpow2.f32 %v3476_v49  ;;  %3548 = vadd.xlane.f32.xlu0 %v3547_v52 }
 0x39b   : > { %v9117_v1 = vpop.eup %7911  ;;  %v3478_v50 = vmul.f32 1.442695, %v3420_v21 }
 0x39c   : > { %v3480_v51 = vmul.f32 1.442695, %v3421_v17  ;;  %v9119_v4 = vpop.eup %7913  ;;  %v3384_v5 = vpop.xlane.xlu1 %3383  ;;  %v3550_v19 = vsel %vm763_vm2, %v9117_v1, 0.0 }
 0x39d   : > { %v3387_v18 = vpop.xlane.xlu0 %3386  ;;  %7923 = vpow2.f32 %v3478_v50  ;;  %v3422_v60 = vsub.f32 %v8970_v15, %v3384_v5  ;;  %3551 = vadd.xlane.f32.xlu1 %v3550_v19  ;;  %v3553_v34 = vsel %vm763_vm2, %v9119_v4, 0.0 }
 0x39e   : > { %v3423_v40 = vsub.f32 %v8973_v57, %v3387_v18  ;;  %7925 = vpow2.f32 %v3480_v51  ;;  %3554 = vadd.xlane.f32.xlu0 %v3553_v34 }
 0x39f   : > { %v9127_v29 = vpop.eup %7915  ;;  %v3482_v62 = vmul.f32 1.442695, %v3422_v60 }
 0x3a0   : > { %v3484_v13 = vmul.f32 1.442695, %v3423_v40  ;;  %v9129_v42 = vpop.eup %7917  ;;  %v3556_v43 = vsel %vm763_vm2, %v9127_v29, 0.0 }
 0x3a1   : > { %7927 = vpow2.f32 %v3482_v62  ;;  %3557 = vadd.xlane.f32.xlu1 %v3556_v43  ;;  %v3559_v15 = vsel %vm763_vm2, %v9129_v42, 0.0 }
 0x3a2   : > { %7929 = vpow2.f32 %v3484_v13  ;;  %3560 = vadd.xlane.f32.xlu0 %v3559_v15 }
 0x3a3   : > { %v9135_v57 = vpop.eup %7919 }
 0x3a4   : > { %v9137_v44 = vpop.eup %7921  ;;  %v3562_v20 = vsel %vm763_vm2, %v9135_v57, 0.0 }
 0x3a5   : > { %3563 = vadd.xlane.f32.xlu1 %v3562_v20  ;;  %v3565_v49 = vsel %vm763_vm2, %v9137_v44, 0.0 }
 0x3a6   : > { %3566 = vadd.xlane.f32.xlu0 %v3565_v49 }
 0x3a7   : > { %v9143_v32 = vpop.eup %7923 }
 0x3a8   : > { %v9145_v35 = vpop.eup %7925  ;;  %v3568_v9 = vsel %vm763_vm2, %v9143_v32, 0.0 }
 0x3a9   : > { %3569 = vadd.xlane.f32.xlu1 %v3568_v9  ;;  %v3571_v21 = vsel %vm763_vm2, %v9145_v35, 0.0  ;;  %v9735_v9 = vmov 0.0  }
 0x3aa   : > { %3572 = vadd.xlane.f32.xlu0 %v3571_v21 }
 0x3ab   : > { %v9151_v17 = vpop.eup %7927 }
 0x3ac   : > { %v9153_v52 = vpop.eup %7929  ;;  %v3574_v50 = vsel %vm763_vm2, %v9151_v17, 0.0 }
 0x3ad   : > { %3575 = vadd.xlane.f32.xlu1 %v3574_v50  ;;  %v3577_v51 = vsel %vm763_vm2, %v9153_v52, 0.0 }
 0x3ae   : > { %3578 = vadd.xlane.f32.xlu0 %v3577_v51 }
 0x3c3   : > { %v3495_v5 = vpop.xlane.xlu0 %3494 }
 0x3c4   : > { %7931 = vrcp.f32 %v3495_v5 }
 0x3c6   : > { %v3492_v18 = vpop.xlane.xlu1 %3491 }
 0x3c7   : > { %7933 = vrcp.f32 %v3492_v18  ;;  %v3393_v19 = vpop.xlane.xlu0 %3392 }
 0x3c8   : > { %v3425_v60 = vsub.f32 %v9000_v14, %v3393_v19 }
 0x3ca   : > { %v3488_v40 = vmul.f32 1.442695, %v3425_v60  ;;  %v3390_v34 = vpop.xlane.xlu1 %3389 }
 0x3cb   : > { %v3424_v62 = vsub.f32 %v9007_v48, %v3390_v34 }
 0x3cc   : > { %7935 = vpow2.f32 %v3488_v40 }
 0x3cd   : > { %v3486_v13 = vmul.f32 1.442695, %v3424_v62 }
 0x3ce   : > { %v7932_v43 = vpop.eup %7931  ;;  %v9187_v48 = vpop.permute.xlu1 %5854 }
 0x3cf   : > { %v3619_v15 = vmul.f32 %v7932_v43, %v8997_v6  ;;  %7937 = vpow2.f32 %v3486_v13 }
 0x3d1   : > { %v7934_v20 = vpop.eup %7933  ;;  %7550 = vmatmul.mubr.msk.f32.vlgmr.msra.gmra.mrb[38].mxu0 %vm763_vm2, %v3619_v15 }
 0x3d2   : > { %v3618_v49 = vmul.f32 %v7934_v20, %v9004_v7  ;;  %7558 = vmatpush3.msra.mxu0 %v8837_v39  ;;  %7559 = vmatprep.mubr.msk.f32.mxu0 %vm8136_vm1, %v9735_v9 }
 0x3d3   : > { %7567 = vmatprep.subr.mxu0 %v9735_v9 }
 0x3d4   : > { %7545 = vmatmul.mubr.msk.f32.vlgmr.msra.gmra.mrb[34].mxu1 %vm763_vm2, %v3618_v49 }
 0x3d5   : > { %7553 = vmatpush3.msra.mxu1 %v8833_v37  ;;  %7554 = vmatprep.mubr.msk.f32.mxu1 %vm8136_vm1, %v9735_v9  ;;  %v9185_v37 = vpop.permute.xlu0 %5778 }
 0x3d6   : > { %v9172_v6 = vpop.eup %7935  ;;  %7562 = vmatprep.subr.mxu1 %v9735_v9 }
 0x3d7   : > { %v3583_v7 = vsel %vm763_vm2, %v9172_v6, 0.0 }
 0x3d8   : > { %3584 = vadd.xlane.f32.xlu0 %v3583_v7 }
 0x3d9   : > { %v9177_v39 = vpop.eup %7937 }
 0x3da   : > { %v3580_v14 = vsel %vm763_vm2, %v9177_v39, 0.0 }
 0x3db   : > { %3581 = vadd.xlane.f32.xlu1 %v3580_v14 }
 0x3ec   : > { %6006 = vrot.lane.b32.xlu1 %v8534_v59, %s8138_s15 }
 0x3ee   : > { %5930 = vrot.lane.b32.xlu0 %v8524_v56, %s8138_s15  ;;  %s8141_s15 = smov 16  }
 0x3fc   : > { %v3507_v21 = vpop.xlane.xlu0 %3506 }
 0x3ff   : > { %v3498_v50 = vpop.xlane.xlu1 %3497 }
 0x400   : > { %7939 = vrcp.f32 %v3498_v50  ;;  %v3501_v51 = vpop.xlane.xlu0 %3500 }
 0x401   : > { %7941 = vrcp.f32 %v3501_v51 }
 0x402   : > { %7943 = vrcp.f32 %v3507_v21 }
 0x403   : > { %v3504_v5 = vpop.xlane.xlu1 %3503 }
 0x404   : > { %7945 = vrcp.f32 %v3504_v5  ;;  %v3513_v18 = vpop.xlane.xlu0 %3512 }
 0x405   : > { %7947 = vrcp.f32 %v3513_v18 }
 0x407   : > { %v3510_v19 = vpop.xlane.xlu1 %3509 }
 0x408   : > { %7949 = vrcp.f32 %v3510_v19 }
 0x40a   : > { %v7940_v59 = vpop.eup %7939 }
 0x40b   : > { %v7942_v60 = vpop.eup %7941  ;;  %v3620_v56 = vmul.f32 %v7940_v59, %v9027_v22 }
 0x40c   : > { %v3621_v40 = vmul.f32 %v7942_v60, %v9031_v23  ;;  %v7944_v34 = vpop.eup %7943  ;;  %v9737_v60 = vld [vmem:[#allocation16_spill] sm:$0xff] }
 0x40d   : > { %7555 = vmatmul.mubr.msk.f32.vlgmr.msra.gmra.mrb[36].mxu1 %vm763_vm2, %v3620_v56  ;;  %v3623_v22 = vmul.f32 %v7944_v34, %v9025_v58 }
 0x40e   : > { %v7946_v62 = vpop.eup %7945  ;;  %7560 = vmatmul.mubr.msk.f32.vlgmr.msra.gmra.mrb[40].mxu0 %vm763_vm2, %v3621_v40  ;;  %7563 = vmatpush3.msra.mxu1 %v8835_v38  ;;  %v3519_v13 = vpop.xlane.xlu0 %3518 }
 0x40f   : > { %v3622_v43 = vmul.f32 %v7946_v62, %v9036_v16  ;;  %7568 = vmatpush3.msra.mxu0 %v8841_v46  ;;  %7951 = vrcp.f32 %v3519_v13  ;;  %7564 = vmatprep.mubr.msk.f32.mxu1 %vm8136_vm1, %v9735_v9  ;;  %v7948_v23 = vpop.eup %7947  ;;  %v9738_v62 = vld [vmem:[#allocation13_spill] sm:$0xff] }
 0x410   : > { %7569 = vmatprep.mubr.msk.f32.mxu0 %vm8136_vm1, %v9735_v9  ;;  %7572 = vmatprep.subr.mxu1 %v9735_v9  ;;  %v3625_v15 = vmul.f32 %v7948_v23, %v9040_v8 }
 0x411   : > { %7577 = vmatprep.subr.mxu0 %v9735_v9  ;;  %7565 = vmatmul.mubr.msk.f32.vlgmr.msra.gmra.mrb[38].mxu1 %vm763_vm2, %v3622_v43  ;;  %v3516_v38 = vpop.xlane.xlu1 %3515  ;;  %v9739_v43 = vld [vmem:[#allocation18_spill] sm:$0xff] }
 0x412   : > { %v7950_v16 = vpop.eup %7949  ;;  %7573 = vmatpush3.msra.mxu1 %v8839_v41  ;;  %7953 = vrcp.f32 %v3516_v38  ;;  %7570 = vmatmul.mubr.msk.f32.vlgmr.msra.gmra.mrb[42].mxu0 %vm763_vm2, %v3623_v22  ;;  %v3525_v46 = vpop.xlane.xlu0 %3524 }
 0x413   : > { %v3624_v58 = vmul.f32 %v7950_v16, %v9046_v53  ;;  %7578 = vmatpush3.msra.mxu0 %v8862_v11  ;;  %7955 = vrcp.f32 %v3525_v46  ;;  %7574 = vmatprep.mubr.msk.f32.mxu1 %vm8136_vm1, %v9735_v9  ;;  %v9740_v16 = vld [vmem:[#allocation14_spill] sm:$0xff] }
 0x414   : > { %7579 = vmatprep.mubr.msk.f32.mxu0 %vm8136_vm1, %v9735_v9  ;;  %7582 = vmatprep.subr.mxu1 %v9735_v9 }
 0x415   : > { %7587 = vmatprep.subr.mxu0 %v9735_v9  ;;  %7575 = vmatmul.mubr.msk.f32.vlgmr.msra.gmra.mrb[40].mxu1 %vm763_vm2, %v3624_v58  ;;  %v9741_v58 = vld [vmem:[#allocation15_spill] sm:$0xff] }
 0x416   : > { %7583 = vmatpush3.msra.mxu1 %v8843_v47  ;;  %v3522_v41 = vpop.xlane.xlu1 %3521  ;;  %7580 = vmatmul.mubr.msk.f32.vlgmr.msra.gmra.mrb[44].mxu0 %vm763_vm2, %v3625_v15 }
 0x417   : > { %7957 = vrcp.f32 %v3522_v41  ;;  %7588 = vmatpush3.msra.mxu0 %v8881_v45  ;;  %7589 = vmatprep.mubr.msk.f32.mxu0 %vm8136_vm1, %v9735_v9 }
 0x418   : > { %7597 = vmatprep.subr.mxu0 %v9735_v9  ;;  %7584 = vmatprep.mubr.msk.f32.mxu1 %vm8136_vm1, %v9735_v9 }
 0x419   : > { %v7952_v11 = vpop.eup %7951  ;;  %7592 = vmatprep.subr.mxu1 %v9735_v9 }
 0x41a   : > { %v3627_v8 = vmul.f32 %v7952_v11, %v9055_v33  ;;  %v3528_v47 = vpop.xlane.xlu1 %3527 }
 0x41b   : > { %7959 = vrcp.f32 %v3528_v47  ;;  %v3531_v53 = vpop.xlane.xlu0 %3530 }
 0x41c   : > { %v7954_v20 = vpop.eup %7953  ;;  %7961 = vrcp.f32 %v3531_v53  ;;  %7590 = vmatmul.mubr.msk.f32.vlgmr.msra.gmra.mrb[46].mxu0 %vm763_vm2, %v3627_v8  ;;  %v9742_v8 = vld [vmem:[#allocation23_spill] sm:$0xff]  ;;  %v9743_v53 = vld [vmem:[#allocation17_spill] sm:$0xff] }
 0x41d   : > { %v7956_v45 = vpop.eup %7955  ;;  %v3626_v49 = vmul.f32 %v7954_v20, %v9061_v28  ;;  %7598 = vmatpush3.msra.mxu0 %v8905_v30  ;;  %7599 = vmatprep.mubr.msk.f32.mxu0 %vm8136_vm1, %v9735_v9 }
 0x41e   : > { %v3629_v7 = vmul.f32 %v7956_v45, %v9063_v27  ;;  %v3534_v14 = vpop.xlane.xlu1 %3533  ;;  %7607 = vmatprep.subr.mxu0 %v9735_v9 }
 0x41f   : > { %7963 = vrcp.f32 %v3534_v14  ;;  %v3537_v33 = vpop.xlane.xlu0 %3536  ;;  %7585 = vmatmul.mubr.msk.f32.vlgmr.msra.gmra.mrb[42].mxu1 %vm763_vm2, %v3626_v49 }
 0x420   : > { %7965 = vrcp.f32 %v3537_v33  ;;  %7593 = vmatpush3.msra.mxu1 %v8856_v3  ;;  %7600 = vmatmul.mubr.msk.f32.vlgmr.msra.gmra.mrb[48].mxu0 %vm763_vm2, %v3629_v7  ;;  %v9744_v7 = vld [vmem:[#allocation20_spill] sm:$0xff]  ;;  %v9745_v33 = vld [vmem:[#allocation19_spill] sm:$0xff] }
 0x421   : > { %v7958_v28 = vpop.eup %7957  ;;  %7608 = vmatpush3.msra.mxu0 %v8929_v36  ;;  %7594 = vmatprep.mubr.msk.f32.mxu1 %vm8136_vm1, %v9735_v9 }
 0x422   : > { %v3628_v30 = vmul.f32 %v7958_v28, %v9071_v0  ;;  %v3540_v27 = vpop.xlane.xlu1 %3539  ;;  %7602 = vmatprep.subr.mxu1 %v9735_v9  ;;  %7609 = vmatprep.mubr.msk.f32.mxu0 %vm8136_vm1, %v9735_v9 }
 0x423   : > { %7967 = vrcp.f32 %v3540_v27  ;;  %v3543_v21 = vpop.xlane.xlu0 %3542  ;;  %7617 = vmatprep.subr.mxu0 %v9735_v9 }
 0x424   : > { %7969 = vrcp.f32 %v3543_v21  ;;  %7595 = vmatmul.mubr.msk.f32.vlgmr.msra.gmra.mrb[44].mxu1 %vm763_vm2, %v3628_v30 }
 0x425   : > { %v7960_v3 = vpop.eup %7959  ;;  %7603 = vmatpush3.msra.mxu1 %v8869_v25  ;;  %7604 = vmatprep.mubr.msk.f32.mxu1 %vm8136_vm1, %v9735_v9 }
 0x426   : > { %v7962_v36 = vpop.eup %7961  ;;  %v3630_v0 = vmul.f32 %v7960_v3, %v9077_v10  ;;  %v3546_v50 = vpop.xlane.xlu1 %3545  ;;  %7612 = vmatprep.subr.mxu1 %v9735_v9  ;;  %v9747_v3 = vld [vmem:[#allocation21_spill] sm:$0xff] }
 0x427   : > { %v3631_v51 = vmul.f32 %v7962_v36, %v9079_v61  ;;  %7971 = vrcp.f32 %v3546_v50  ;;  %v3549_v5 = vpop.xlane.xlu0 %3548 }
 0x428   : > { %7973 = vrcp.f32 %v3549_v5  ;;  %7605 = vmatmul.mubr.msk.f32.vlgmr.msra.gmra.mrb[46].mxu1 %vm763_vm2, %v3630_v0 }
 0x429   : > { %v7964_v18 = vpop.eup %7963  ;;  %7610 = vmatmul.mubr.msk.f32.vlgmr.msra.gmra.mrb[50].mxu0 %vm763_vm2, %v3631_v51  ;;  %7613 = vmatpush3.msra.mxu1 %v8991_v54 }
 0x42a   : > { %v7966_v25 = vpop.eup %7965  ;;  %v3632_v19 = vmul.f32 %v7964_v18, %v9087_v55  ;;  %7618 = vmatpush3.msra.mxu0 %v8949_v31  ;;  %v3552_v10 = vpop.xlane.xlu1 %3551  ;;  %7614 = vmatprep.mubr.msk.f32.mxu1 %vm8136_vm1, %v9735_v9  ;;  %v9736_v31 = vld [vmem:[#allocation12_spill] sm:$0xff] }
 0x42b   : > { %v3633_v61 = vmul.f32 %v7966_v25, %v9089_v24  ;;  %7975 = vrcp.f32 %v3552_v10  ;;  %v3555_v59 = vpop.xlane.xlu0 %3554  ;;  %7619 = vmatprep.mubr.msk.f32.mxu0 %vm8136_vm1, %v9735_v9  ;;  %7622 = vmatprep.subr.mxu1 %v9735_v9 }
 0x42c   : > { %7977 = vrcp.f32 %v3555_v59  ;;  %7627 = vmatprep.subr.mxu0 %v9735_v9  ;;  %7615 = vmatmul.mubr.msk.f32.vlgmr.msra.gmra.mrb[48].mxu1 %vm763_vm2, %v3632_v19 }
 0x42d   : > { %v7968_v54 = vpop.eup %7967  ;;  %7620 = vmatmul.mubr.msk.f32.vlgmr.msra.gmra.mrb[52].mxu0 %vm763_vm2, %v3633_v61  ;;  %7623 = vmatpush3.msra.mxu1 %v9736_v31 }
 0x42e   : > { %v7970_v55 = vpop.eup %7969  ;;  %v3634_v24 = vmul.f32 %v7968_v54, %v9097_v63  ;;  %7628 = vmatpush3.msra.mxu0 %v9737_v60  ;;  %v3558_v56 = vpop.xlane.xlu1 %3557  ;;  %7624 = vmatprep.mubr.msk.f32.mxu1 %vm8136_vm1, %v9735_v9 }
 0x42f   : > { %v3635_v40 = vmul.f32 %v7970_v55, %v9099_v2  ;;  %7979 = vrcp.f32 %v3558_v56  ;;  %v3561_v34 = vpop.xlane.xlu0 %3560  ;;  %7629 = vmatprep.mubr.msk.f32.mxu0 %vm8136_vm1, %v9735_v9  ;;  %7632 = vmatprep.subr.mxu1 %v9735_v9 }
 0x430   : > { %7981 = vrcp.f32 %v3561_v34  ;;  %7637 = vmatprep.subr.mxu0 %v9735_v9  ;;  %7625 = vmatmul.mubr.msk.f32.vlgmr.msra.gmra.mrb[50].mxu1 %vm763_vm2, %v3634_v24 }
 0x431   : > { %v7972_v63 = vpop.eup %7971  ;;  %7630 = vmatmul.mubr.msk.f32.vlgmr.msra.gmra.mrb[54].mxu0 %vm763_vm2, %v3635_v40  ;;  %7633 = vmatpush3.msra.mxu1 %v9738_v62 }
 0x432   : > { %v7974_v13 = vpop.eup %7973  ;;  %v3636_v2 = vmul.f32 %v7972_v63, %v9107_v12  ;;  %7638 = vmatpush3.msra.mxu0 %v9739_v43  ;;  %v3564_v22 = vpop.xlane.xlu1 %3563  ;;  %7634 = vmatprep.mubr.msk.f32.mxu1 %vm8136_vm1, %v9735_v9 }
 0x433   : > { %v3637_v23 = vmul.f32 %v7974_v13, %v9109_v26  ;;  %7983 = vrcp.f32 %v3564_v22  ;;  %v3567_v38 = vpop.xlane.xlu0 %3566  ;;  %7639 = vmatprep.mubr.msk.f32.mxu0 %vm8136_vm1, %v9735_v9  ;;  %7642 = vmatprep.subr.mxu1 %v9735_v9 }
 0x434   : > { %7985 = vrcp.f32 %v3567_v38  ;;  %7647 = vmatprep.subr.mxu0 %v9735_v9  ;;  %7635 = vmatmul.mubr.msk.f32.vlgmr.msra.gmra.mrb[52].mxu1 %vm763_vm2, %v3636_v2 }
 0x435   : > { %v7976_v12 = vpop.eup %7975  ;;  %7640 = vmatmul.mubr.msk.f32.vlgmr.msra.gmra.mrb[56].mxu0 %vm763_vm2, %v3637_v23  ;;  %7643 = vmatpush3.msra.mxu1 %v9740_v16 }
 0x436   : > { %v7978_v46 = vpop.eup %7977  ;;  %v3638_v26 = vmul.f32 %v7976_v12, %v9117_v1  ;;  %7648 = vmatpush3.msra.mxu0 %v9741_v58  ;;  %v3570_v15 = vpop.xlane.xlu1 %3569  ;;  %7644 = vmatprep.mubr.msk.f32.mxu1 %vm8136_vm1, %v9735_v9 }
 0x437   : > { %v3639_v41 = vmul.f32 %v7978_v46, %v9119_v4  ;;  %7987 = vrcp.f32 %v3570_v15  ;;  %v3573_v11 = vpop.xlane.xlu0 %3572  ;;  %7649 = vmatprep.mubr.msk.f32.mxu0 %vm8136_vm1, %v9735_v9  ;;  %7652 = vmatprep.subr.mxu1 %v9735_v9 }
 0x438   : > { %7989 = vrcp.f32 %v3573_v11  ;;  %7657 = vmatprep.subr.mxu0 %v9735_v9  ;;  %7645 = vmatmul.mubr.msk.f32.vlgmr.msra.gmra.mrb[54].mxu1 %vm763_vm2, %v3638_v26  ;;  %v6204_v11 = vld [vmem:[%s9692_s3] sm:$0xff] }
 0x439   : > { %v7980_v1 = vpop.eup %7979  ;;  %7650 = vmatmul.mubr.msk.f32.vlgmr.msra.gmra.mrb[58].mxu0 %vm763_vm2, %v3639_v41  ;;  %7653 = vmatpush3.msra.mxu1 %v9742_v8 }
 0x43a   : > { %v7982_v47 = vpop.eup %7981  ;;  %v3640_v4 = vmul.f32 %v7980_v1, %v9127_v29  ;;  %7658 = vmatpush3.msra.mxu0 %v9743_v53  ;;  %v3576_v20 = vpop.xlane.xlu1 %3575  ;;  %7654 = vmatprep.mubr.msk.f32.mxu1 %vm8136_vm1, %v9735_v9  ;;  %v6205_v1 = vld [vmem:[%s9692_s3 + $0x8] sm:$0xff] }
 0x43b   : > { %v3641_v45 = vmul.f32 %v7982_v47, %v9129_v42  ;;  %7991 = vrcp.f32 %v3576_v20  ;;  %v3579_v49 = vpop.xlane.xlu0 %3578  ;;  %7659 = vmatprep.mubr.msk.f32.mxu0 %vm8136_vm1, %v9735_v9  ;;  %7662 = vmatprep.subr.mxu1 %v9735_v9  ;;  %v7778_v47 = vpack.c.bf16 %v6205_v1, %v6204_v11 }
 0x43c   : > { %7993 = vrcp.f32 %v3579_v49  ;;  %7667 = vmatprep.subr.mxu0 %v9735_v9  ;;  %7655 = vmatmul.mubr.msk.f32.vlgmr.msra.gmra.mrb[56].mxu1 %vm763_vm2, %v3640_v4  ;;  %v6207_v49 = vld [vmem:[%s9692_s3 + $0x18] sm:$0xff] }
 0x43d   : > { %v7984_v29 = vpop.eup %7983  ;;  %7660 = vmatmul.mubr.msk.f32.vlgmr.msra.gmra.mrb[60].mxu0 %vm763_vm2, %v3641_v45  ;;  %7663 = vmatpush3.msra.mxu1 %v9744_v7  ;;  %v6206_v45 = vld [vmem:[%s9692_s3 + $0x10] sm:$0xff] }
 0x43e   : > { %v7986_v14 = vpop.eup %7985  ;;  %v3642_v42 = vmul.f32 %v7984_v29, %v9135_v57  ;;  %7668 = vmatpush3.msra.mxu0 %v9745_v33  ;;  %7664 = vmatprep.mubr.msk.f32.mxu1 %vm8136_vm1, %v9735_v9  ;;  %v9746_v57 = vld [vmem:[#allocation22_spill] sm:$0xff]  ;;  %v7782_v7 = vpack.c.bf16 %v6207_v49, %v6206_v45 }
 0x43f   : > { %v3643_v28 = vmul.f32 %v7986_v14, %v9137_v44  ;;  %7669 = vmatprep.mubr.msk.f32.mxu0 %vm8136_vm1, %v9735_v9  ;;  %7672 = vmatprep.subr.mxu1 %v9735_v9 }
 0x440   : > { %7677 = vmatprep.subr.mxu0 %v9735_v9  ;;  %7665 = vmatmul.mubr.msk.f32.vlgmr.msra.gmra.mrb[58].mxu1 %vm763_vm2, %v3642_v42 }
 0x441   : > { %v7988_v30 = vpop.eup %7987  ;;  %7670 = vmatmul.mubr.msk.f32.vlgmr.msra.gmra.mrb[62].mxu0 %vm763_vm2, %v3643_v28  ;;  %7673 = vmatpush3.msra.mxu1 %v9746_v57 }
 0x442   : > { %v7990_v27 = vpop.eup %7989  ;;  %v3644_v21 = vmul.f32 %v7988_v30, %v9143_v32  ;;  %7678 = vmatpush3.msra.mxu0 %v9747_v3  ;;  %7674 = vmatprep.mubr.msk.f32.mxu1 %vm8136_vm1, %v9735_v9 }
 0x443   : > { %v3645_v44 = vmul.f32 %v7990_v27, %v9145_v35  ;;  %7679 = vmatprep.mubr.msk.f32.mxu0 %vm8136_vm1, %v9735_v9  ;;  %7682 = vmatprep.subr.mxu1 %v9735_v9 }
 0x444   : > { %7687 = vmatprep.subr.mxu0 %v9735_v9  ;;  %7675 = vmatmul.mubr.msk.f32.vlgmr.msra.gmra.mrb[60].mxu1 %vm763_vm2, %v3644_v21 }
 0x445   : > { %v7992_v36 = vpop.eup %7991  ;;  %7680 = vmatmul.mubr.msk.f32.vlgmr.msra.gmra.mrb[64].mxu0 %vm763_vm2, %v3645_v44  ;;  %7683 = vmatpush3.msra.mxu1 %v9185_v37 }
 0x446   : > { %v7994_v32 = vpop.eup %7993  ;;  %v3646_v0 = vmul.f32 %v7992_v36, %v9151_v17  ;;  %7688 = vmatpush3.msra.mxu0 %v9187_v48  ;;  %7684 = vmatprep.mubr.msk.f32.mxu1 %vm8136_vm1, %v9735_v9 }
 0x447   : > { %v3647_v35 = vmul.f32 %v7994_v32, %v9153_v52  ;;  %7689 = vmatprep.mubr.msk.f32.mxu0 %vm8136_vm1, %v9735_v9  ;;  %7692 = vmatprep.subr.mxu1 %v9735_v9 }
 0x448   : > { %7685 = vmatmul.mubr.msk.f32.vlgmr.msra.gmra.mrb[62].mxu1 %vm763_vm2, %v3646_v0  ;;  %7697 = vmatprep.subr.mxu0 %v9735_v9 }
 0x449   : > { %7690 = vmatmul.mubr.msk.f32.vlgmr.msra.gmra.mrb[66].mxu0 %vm763_vm2, %v3647_v35  ;;  %7694 = vmatprep.mubr.msk.f32.mxu1 %vm8136_vm1, %v9735_v9 }
 0x44a   : > { %7699 = vmatprep.mubr.msk.f32.mxu0 %vm8136_vm1, %v9735_v9 }
 0x465   : > { %v3585_v17 = vpop.xlane.xlu0 %3584 }
 0x466   : > { %7995 = vrcp.f32 %v3585_v17 }
 0x468   : > { %v3582_v52 = vpop.xlane.xlu1 %3581 }
 0x469   : > { %7997 = vrcp.f32 %v3582_v52  ;;  %v5931_v37 = vpop.permute.xlu0 %5930 }
 0x46a   : > { %7693 = vmatpush3.msra.mxu1 %v5931_v37 }
 0x46b   : > { %7779 = vmatprep.subr.bf16.mxu1 %v7778_v47 }
 0x46c   : > { %v6007_v48 = vpop.permute.xlu1 %6006 }
 0x46d   : > { %7698 = vmatpush3.msra.mxu0 %v6007_v48 }
 0x470   : > { %v7996_v50 = vpop.eup %7995 }
 0x471   : > { %v3649_v51 = vmul.f32 %v7996_v50, %v9172_v6 }
 0x473   : > { %v7998_v5 = vpop.eup %7997  ;;  %7700 = vmatmul.mubr.msk.f32.vlgmr.msra.gmra.mrb[68].mxu0 %vm763_vm2, %v3649_v51 }
 0x474   : > { %v3648_v18 = vmul.f32 %v7998_v5, %v9177_v39 }
 0x476   : > { %7695 = vmatmul.mubr.msk.f32.vlgmr.msra.gmra.mrb[64].mxu1 %vm763_vm2, %v3648_v18 }
 0x477   : > { %7781 = vmatpush3.bf16.msra.mxu1 %v7778_v47 }
 0x478   : > { %7783 = vmatprep.subr.bf16.mxu1 %v7782_v7 }
 0x47b   : > { %7785 = vmatpush3.bf16.msra.mxu1 %v7782_v7 }
 0x4a4   : > { %v9357_v25 = vpop.f32.mrb[38].mxu0 }
 0x4a5   : > { %v7551_v9 = vpop.f32.mrb[39].mxu0 }
 0x4a7   : > { %v9359_v19 = vpop.f32.mrb[34].mxu1 }
 0x4a8   : > { %v7546_v10 = vpop.f32.mrb[35].mxu1 }
 0x4e0   : > { %v9361_v61 = vpop.f32.mrb[36].mxu1 }
 0x4e1   : > { %v9363_v59 = vpop.f32.mrb[40].mxu0  ;;  %v7556_v54 = vpop.f32.mrb[37].mxu1 }
 0x4e2   : > { %v7561_v31 = vpop.f32.mrb[41].mxu0 }
 0x4e4   : > { %v9365_v6 = vpop.f32.mrb[38].mxu1 }
 0x4e5   : > { %v9367_v55 = vpop.f32.mrb[42].mxu0  ;;  %v7566_v24 = vpop.f32.mrb[39].mxu1 }
 0x4e6   : > { %v7571_v39 = vpop.f32.mrb[43].mxu0 }
 0x4e8   : > { %v9369_v60 = vpop.f32.mrb[40].mxu1 }
 0x4e9   : > { %v9371_v56 = vpop.f32.mrb[44].mxu0  ;;  %v7576_v40 = vpop.f32.mrb[41].mxu1 }
 0x4ea   : > { %v7581_v34 = vpop.f32.mrb[45].mxu0 }
 0x4ef   : > { %v4406_v63 = vpop.f32.mrb[46].mxu0 }
 0x4f0   : > { %6092 = vrot.lane.b32.xlu1 %v4406_v63, %s8140_s27  ;;  %v7591_v62 = vpop.f32.mrb[47].mxu0 }
 0x4f2   : > { %v4330_v13 = vpop.f32.mrb[42].mxu1 }
 0x4f3   : > { %v4558_v2 = vpop.f32.mrb[48].mxu0  ;;  %v7586_v43 = vpop.f32.mrb[43].mxu1  ;;  %6090 = vrot.lane.b32.xlu0 %v4330_v13, %s8140_s27 }
 0x4f4   : > { %6096 = vrot.lane.b32.xlu1 %v4558_v2, %s8140_s27  ;;  %v7601_v22 = vpop.f32.mrb[49].mxu0 }
 0x4f7   : > { %v4482_v23 = vpop.f32.mrb[44].mxu1 }
 0x4f8   : > { %v7596_v38 = vpop.f32.mrb[45].mxu1  ;;  %6094 = vrot.lane.b32.xlu0 %v4482_v23, %s8140_s27 }
 0x4fb   : > { %v4634_v12 = vpop.f32.mrb[46].mxu1 }
 0x4fc   : > { %v4710_v16 = vpop.f32.mrb[50].mxu0  ;;  %v7606_v46 = vpop.f32.mrb[47].mxu1  ;;  %6098 = vrot.lane.b32.xlu0 %v4634_v12, %s8140_s27 }
 0x4fd   : > { %6100 = vrot.lane.b32.xlu1 %v4710_v16, %s8140_s27  ;;  %v7611_v26 = vpop.f32.mrb[51].mxu0 }
 0x4ff   : > { %v4786_v58 = vpop.f32.mrb[48].mxu1 }
 0x500   : > { %v4862_v15 = vpop.f32.mrb[52].mxu0  ;;  %v7616_v41 = vpop.f32.mrb[49].mxu1  ;;  %6102 = vrot.lane.b32.xlu0 %v4786_v58, %s8140_s27 }
 0x501   : > { %6104 = vrot.lane.b32.xlu1 %v4862_v15, %s8140_s27  ;;  %v7621_v8 = vpop.f32.mrb[53].mxu0 }
 0x503   : > { %v4938_v4 = vpop.f32.mrb[50].mxu1 }
 0x504   : > { %v5014_v53 = vpop.f32.mrb[54].mxu0  ;;  %v7626_v20 = vpop.f32.mrb[51].mxu1  ;;  %6122 = vrot.lane.b32.xlu0 %v4938_v4, %s8141_s15 }
 0x505   : > { %6124 = vrot.lane.b32.xlu1 %v5014_v53, %s8141_s15  ;;  %v7631_v29 = vpop.f32.mrb[55].mxu0 }
 0x507   : > { %v5090_v14 = vpop.f32.mrb[52].mxu1 }
 0x508   : > { %v5166_v42 = vpop.f32.mrb[56].mxu0  ;;  %v7636_v33 = vpop.f32.mrb[53].mxu1  ;;  %6126 = vrot.lane.b32.xlu0 %v5090_v14, %s8141_s15 }
 0x509   : > { %6128 = vrot.lane.b32.xlu1 %v5166_v42, %s8141_s15  ;;  %v7641_v28 = vpop.f32.mrb[57].mxu0 }
 0x50b   : > { %v5242_v30 = vpop.f32.mrb[54].mxu1 }
 0x50c   : > { %v5318_v57 = vpop.f32.mrb[58].mxu0  ;;  %v7646_v27 = vpop.f32.mrb[55].mxu1  ;;  %6130 = vrot.lane.b32.xlu0 %v5242_v30, %s8141_s15 }
 0x50d   : > { %6132 = vrot.lane.b32.xlu1 %v5318_v57, %s8141_s15  ;;  %v7651_v21 = vpop.f32.mrb[59].mxu0 }
 0x50f   : > { %v5394_v3 = vpop.f32.mrb[56].mxu1 }
 0x510   : > { %v5470_v44 = vpop.f32.mrb[60].mxu0  ;;  %v7656_v36 = vpop.f32.mrb[57].mxu1  ;;  %6134 = vrot.lane.b32.xlu0 %v5394_v3, %s8141_s15 }
 0x511   : > { %6136 = vrot.lane.b32.xlu1 %v5470_v44, %s8141_s15  ;;  %v7661_v32 = vpop.f32.mrb[61].mxu0  ;;  %s9749_s15 = sld [smem:[#allocation24_spill]] }
 0x513   : > { %v5546_v0 = vpop.f32.mrb[58].mxu1 }
 0x514   : > { %v5622_v35 = vpop.f32.mrb[62].mxu0  ;;  %v7666_v17 = vpop.f32.mrb[59].mxu1  ;;  %6154 = vrot.lane.b32.xlu0 %v5546_v0, %s8142_s24  ;;  %v7144_v0 = vld [vmem:[%s9696_s7] ss:$0 sm:$0xff] }
 0x515   : > { %6156 = vrot.lane.b32.xlu1 %v5622_v35, %s8142_s24  ;;  %v7671_v52 = vpop.f32.mrb[63].mxu0 }
 0x517   : > { %v5698_v37 = vpop.f32.mrb[60].mxu1  ;;  %s9750_s19 = smov %s9749_s15  ;;  %s9639_s21 = scalar_lea.hbm %s9749_s15, %s7181_s28 }
 0x518   : > { %v5774_v48 = vpop.f32.mrb[64].mxu0  ;;  %v7676_v50 = vpop.f32.mrb[61].mxu1  ;;  %6158 = vrot.lane.b32.xlu0 %v5698_v37, %s8142_s24 }
 0x519   : > { %6160 = vrot.lane.b32.xlu1 %v5774_v48, %s8142_s24  ;;  %v7681_v51 = vpop.f32.mrb[65].mxu0 }
 0x51b   : > { %v5850_v5 = vpop.f32.mrb[62].mxu1 }
 0x51c   : > { %v5926_v18 = vpop.f32.mrb[66].mxu0  ;;  %6162 = vrot.lane.b32.xlu0 %v5850_v5, %s8142_s24  ;;  %v7686_v9 = vpop.f32.mrb[63].mxu1 }
 0x51d   : > { %6164 = vrot.lane.b32.xlu1 %v5926_v18, %s8142_s24  ;;  %v7691_v10 = vpop.f32.mrb[67].mxu0 }
 0x546   : > { %v6078_v54 = vpop.f32.mrb[68].mxu0 }
 0x547   : > { %6168 = vrot.lane.b32.xlu1 %v6078_v54, %s8142_s24  ;;  %v7701_v31 = vpop.f32.mrb[69].mxu0 }
 0x549   : > { %v6002_v24 = vpop.f32.mrb[64].mxu1 }
 0x54a   : > { %6166 = vrot.lane.b32.xlu0 %v6002_v24, %s8142_s24  ;;  %v7696_v39 = vpop.f32.mrb[65].mxu1  ;;  %s9614_s24 = scalar_lea.vmem [#allocation5], %s9748_s20  ;;  %s8143_s20 = smov [#allocation5]  }
 0x54b   : > { %s6944_s14 = sshll.u32 %s9614_s24, 4  ;;  %s8065_s23 = sshll.u32 %s8143_s20, 4  ;;  %s9641_s14 = int_to_ptr.vmem [resolvable:$true] %s6944_s14  ;;  %s8066_s23 = int_to_ptr.vmem [resolvable:$false] %s8065_s23 }
 0x54c   : > { %s8061_s22 = scalar_lea.vmem %s9641_s14, 1024  ;;  %s8067_s28 = scalar_lea.vmem %s8066_s23, 2048 }
 0x54d   : > { %p8062_p10 = scmp.ne.s32.totalorder %s9641_s14, %s8061_s22  ;;  %p8068_p9 = scmp.lt.s32.totalorder %s9641_s14, %s8066_s23 }
 0x54e   : > { %p8069_p13 = scmp.lt.s32.totalorder %s8067_s28, %s8061_s22 }
 0x54f   : > { %p8063_p12 = pnand %p8062_p10, %p9751_p11 }
 0x550   : > { %p8070_p1 = por %p8069_p13, %p8068_p9 }
 0x551   : > { %p8064_p8 = pneg %p8063_p12 }
 0x553   : > { %p8071_p3 = pnand %p8070_p1, %p8064_p8 }
 0x562   : > { %v6093_v40 = vpop.permute.xlu1 %6092 }
 0x563   : > { %v6179_v8 = vsel %vm763_vm2, %v9357_v25, %v6093_v40 }
 0x565   : > { %v6091_v34 = vpop.permute.xlu0 %6090 }
 0x566   : > { %v6097_v62 = vpop.permute.xlu1 %6096  ;;  %v6178_v1 = vsel %vm763_vm2, %v9359_v19, %v6091_v34 }
 0x567   : > { %v6181_v25 = vsel %vm763_vm2, %v9363_v59, %v6097_v62 }
 0x56a   : > { %v6095_v63 = vpop.permute.xlu0 %6094 }
 0x56b   : > { %v6180_v45 = vsel %vm763_vm2, %v9361_v61, %v6095_v63 }
 0x56e   : > { %v6099_v13 = vpop.permute.xlu0 %6098 }
 0x56f   : > { %v6101_v2 = vpop.permute.xlu1 %6100  ;;  %v6182_v61 = vsel %vm763_vm2, %v9365_v6, %v6099_v13 }
 0x570   : > { %v6183_v59 = vsel %vm763_vm2, %v9367_v55, %v6101_v2 }
 0x572   : > { %v6103_v43 = vpop.permute.xlu0 %6102 }
 0x573   : > { %v6105_v22 = vpop.permute.xlu1 %6104  ;;  %v6184_v23 = vsel %vm763_vm2, %v9369_v60, %v6103_v43 }
 0x574   : > { %v6185_v38 = vsel %vm763_vm2, %v9371_v56, %v6105_v22 }
 0x576   : > { %v6123_v12 = vpop.permute.xlu0 %6122 }
 0x577   : > { %v6125_v16 = vpop.permute.xlu1 %6124  ;;  %v6187_v60 = vsel %vm6186_vm3, %v6178_v1, %v6123_v12 }
 0x578   : > { %v6188_v56 = vsel %vm6186_vm3, %v6179_v8, %v6125_v16 }
 0x57a   : > { %v6127_v46 = vpop.permute.xlu0 %6126 }
 0x57b   : > { %v6129_v26 = vpop.permute.xlu1 %6128  ;;  %v6189_v19 = vsel %vm6186_vm3, %v6180_v45, %v6127_v46 }
 0x57c   : > { %v6190_v29 = vsel %vm6186_vm3, %v6181_v25, %v6129_v26 }
 0x57e   : > { %v6131_v58 = vpop.permute.xlu0 %6130 }
 0x57f   : > { %v6133_v15 = vpop.permute.xlu1 %6132  ;;  %v6191_v33 = vsel %vm6186_vm3, %v6182_v61, %v6131_v58 }
 0x580   : > { %v6192_v30 = vsel %vm6186_vm3, %v6183_v59, %v6133_v15 }
 0x582   : > { %v6135_v41 = vpop.permute.xlu0 %6134 }
 0x583   : > { %v6137_v11 = vpop.permute.xlu1 %6136  ;;  %v6193_v3 = vsel %vm6186_vm3, %v6184_v23, %v6135_v41 }
 0x584   : > { %v6194_v55 = vsel %vm6186_vm3, %v6185_v38, %v6137_v11 }
 0x586   : > { %v6155_v47 = vpop.permute.xlu0 %6154 }
 0x587   : > { %v6157_v4 = vpop.permute.xlu1 %6156  ;;  %v6196_v53 = vsel %vm6195_vm4, %v6187_v60, %v6155_v47 }
 0x588   : > { %v6197_v20 = vsel %vm6195_vm4, %v6188_v56, %v6157_v4  ;;  %7710 = vmatprep.mubr.msk.f32.mxu1 %vm524_vm0, %v6196_v53 }
 0x589   : > { %7711 = vmatmul.mubr.msk.f32.vlgmr.msra.gmra.mrb[66].mxu1 %vm524_vm0, %v6197_v20 }
 0x58a   : > { %v6159_v49 = vpop.permute.xlu0 %6158 }
 0x58b   : > { %v6161_v7 = vpop.permute.xlu1 %6160  ;;  %v6198_v14 = vsel %vm6195_vm4, %v6189_v19, %v6159_v49 }
 0x58c   : > { %v6199_v42 = vsel %vm6195_vm4, %v6190_v29, %v6161_v7  ;;  %7713 = vmatprep.mubr.msk.f32.mxu1 %vm524_vm0, %v6198_v14 }
 0x58d   : > { %7714 = vmatmul.mubr.msk.f32.gmra.mrb[68].mxu1 %vm524_vm0, %v6199_v42 }
 0x58e   : > { %v6163_v28 = vpop.permute.xlu0 %6162 }
 0x58f   : > { %v6165_v57 = vpop.permute.xlu1 %6164  ;;  %v6200_v27 = vsel %vm6195_vm4, %v6191_v33, %v6163_v28 }
 0x590   : > { %v6201_v21 = vsel %vm6195_vm4, %v6192_v30, %v6165_v57  ;;  %7716 = vmatprep.mubr.msk.f32.mxu1 %vm524_vm0, %v6200_v27 }
 0x591   : > { %7717 = vmatmul.mubr.msk.f32.gmra.mrb[70].mxu1 %vm524_vm0, %v6201_v21 }
 0x5b9   : > { %v6169_v6 = vpop.permute.xlu1 %6168 }
 0x5ba   : > { %v6203_v32 = vsel %vm6195_vm4, %v6194_v55, %v6169_v6 }
 0x5bc   : > { %v6167_v44 = vpop.permute.xlu0 %6166 }
 0x5bd   : > { %v6202_v36 = vsel %vm6195_vm4, %v6193_v3, %v6167_v44 }
 0x5be   : > { %7719 = vmatprep.mubr.msk.f32.mxu1 %vm524_vm0, %v6202_v36 }
 0x5bf   : > { %7720 = vmatmul.mubr.msk.f32.gmra.mrb[72].mxu1 %vm524_vm0, %v6203_v32  ;;  %v6487_v32 = vld [vmem:[%s9693_s4] sm:$0xff] }
 0x65c   : > { %v7712_v35 = vpop.f32.mrb[66].mxu1 }
 0x65d   : > { %v6311_v17 = vadd.f32 %v7712_v35, %v7144_v0  ;;  %v6305_v52 = vpop.f32.mrb[67].mxu1 }
 0x65e   : > { %v6306_v37 = vadd.f32 %v7144_v0, %v6305_v52  ;;  %v6490_v52 = vld [vmem:[%s9693_s4 + $0x18] sm:$0xff] }
 0x65f   : > { %v6345_v48 = vadd.f32 %v6311_v17, %v6311_v17  ;;  %v6489_v17 = vld [vmem:[%s9693_s4 + $0x10] sm:$0xff] }
 0x660   : > { %v6344_v50 = vadd.f32 %v6306_v37, %v6306_v37  ;;  %v7715_v51 = vpop.f32.mrb[68].mxu1  ;;  %v7790_v37 = vpack.c.bf16 %v6490_v52, %v6489_v17 }
 0x661   : > { %v6315_v5 = vpop.f32.mrb[69].mxu1  ;;  %v6357_v18 = vsel %vm524_vm0, %v6345_v48, 0.0  ;;  %v6321_v9 = vadd.f32 %v7715_v51, %v7144_v0 }
 0x662   : > { %v6316_v10 = vadd.f32 %v7144_v0, %v6315_v5  ;;  %6358 = vadd.xlane.f32.xlu1 %v6357_v18  ;;  %v6354_v54 = vsel %vm524_vm0, %v6344_v50, 0.0 }
 0x663   : > { %6355 = vadd.xlane.f32.xlu0 %v6354_v54  ;;  %v6347_v40 = vadd.f32 %v6321_v9, %v6321_v9 }
 0x664   : > { %v6346_v31 = vadd.f32 %v6316_v10, %v6316_v10  ;;  %v7718_v24 = vpop.f32.mrb[70].mxu1 }
 0x665   : > { %v6325_v39 = vpop.f32.mrb[71].mxu1  ;;  %v6331_v34 = vadd.f32 %v7718_v24, %v7144_v0  ;;  %v6363_v43 = vsel %vm524_vm0, %v6347_v40, 0.0 }
 0x666   : > { %v6326_v63 = vadd.f32 %v7144_v0, %v6325_v39  ;;  %v6360_v62 = vsel %vm524_vm0, %v6346_v31, 0.0  ;;  %v6635_v39 = vld [vmem:[%s9694_s5] sm:$0xff] }
 0x667   : > { %6361 = vadd.xlane.f32.xlu0 %v6360_v62  ;;  %v6349_v2 = vadd.f32 %v6331_v34, %v6331_v34  ;;  %v6637_v34 = vld [vmem:[%s9694_s5 + $0x10] sm:$0xff]  ;;  %v6638_v62 = vld [vmem:[%s9694_s5 + $0x18] sm:$0xff] }
 0x668   : > { %v6348_v13 = vadd.f32 %v6326_v63, %v6326_v63 }
 0x669   : > { %v6369_v23 = vsel %vm524_vm0, %v6349_v2, 0.0 }
 0x66a   : > { %v6366_v22 = vsel %vm524_vm0, %v6348_v13, 0.0 }
 0x66b   : > { %6364 = vadd.xlane.f32.xlu0 %v6363_v43  ;;  %6367 = vadd.xlane.f32.xlu1 %v6366_v22  ;;  %v6640_v43 = vld [vmem:[%s9694_s5 + $0x28] sm:$0xff] }
 0x66f   : > { %6370 = vadd.xlane.f32.xlu0 %v6369_v23 }
 0x692   : > { %v7721_v38 = vpop.f32.mrb[72].mxu1 }
 0x693   : > { %v6341_v12 = vadd.f32 %v7721_v38, %v7144_v0  ;;  %v6335_v16 = vpop.f32.mrb[73].mxu1 }
 0x694   : > { %v6336_v46 = vadd.f32 %v7144_v0, %v6335_v16  ;;  %v6488_v0 = vld [vmem:[%s9693_s4 + $0x8] sm:$0xff] }
 0x695   : > { %v6351_v26 = vadd.f32 %v6341_v12, %v6341_v12  ;;  %v7786_v35 = vpack.c.bf16 %v6488_v0, %v6487_v32 }
 0x696   : > { %v6350_v58 = vadd.f32 %v6336_v46, %v6336_v46 }
 0x697   : > { %v6375_v15 = vsel %vm524_vm0, %v6351_v26, 0.0  ;;  %7787 = vmatprep.subr.bf16.mxu0 %v7786_v35 }
 0x698   : > { %6376 = vadd.xlane.f32.xlu0 %v6375_v15  ;;  %v6372_v41 = vsel %vm524_vm0, %v6350_v58, 0.0  ;;  %7789 = vmatpush3.bf16.msra.mxu0 %v7786_v35 }
 0x699   : > { %6373 = vadd.xlane.f32.xlu1 %v6372_v41  ;;  %7791 = vmatprep.subr.bf16.mxu0 %v7790_v37 }
 0x69c   : > { %7793 = vmatpush3.bf16.msra.mxu0 %v7790_v37 }
 0x6ef   : > { %v6359_v11 = vpop.xlane.xlu1 %6358 }
 0x6f0   : > { %v6380_v1 = vmul.f32 0.03125, %v6359_v11  ;;  %v6356_v8 = vpop.xlane.xlu0 %6355 }
 0x6f1   : > { %v6379_v60 = vmul.f32 0.03125, %v6356_v8 }
 0x6f2   : > { %v9444_v47 = vsub.f32 %v6345_v48, %v6380_v1 }
 0x6f3   : > { %v9446_v56 = vsub.f32 %v6344_v50, %v6379_v60 }
 0x6f4   : > { %v6362_v4 = vpop.xlane.xlu0 %6361  ;;  %v6396_v53 = vmul.f32 %v9444_v47, %v9444_v47 }
 0x6f5   : > { %v6381_v20 = vmul.f32 0.03125, %v6362_v4  ;;  %v6395_v45 = vmul.f32 %v9446_v56, %v9446_v56 }
 0x6f6   : > { %v6406_v25 = vsel %vm524_vm0, %v6396_v53, 0.0 }
 0x6f7   : > { %v9453_v19 = vsub.f32 %v6346_v31, %v6381_v20  ;;  %6407 = vadd.xlane.f32.xlu0 %v6406_v25  ;;  %v6403_v49 = vsel %vm524_vm0, %v6395_v45, 0.0 }
 0x6f8   : > { %v6368_v29 = vpop.xlane.xlu1 %6367  ;;  %6404 = vadd.xlane.f32.xlu1 %v6403_v49  ;;  %v6365_v7 = vpop.xlane.xlu0 %6364  ;;  %v7153_v49 = vld [vmem:[%s9699_s10] ss:$0 sm:$0xff] }
 0x6f9   : > { %v6383_v14 = vmul.f32 0.03125, %v6368_v29  ;;  %v6382_v42 = vmul.f32 0.03125, %v6365_v7  ;;  %v6397_v61 = vmul.f32 %v9453_v19, %v9453_v19 }
 0x6fb   : > { %v9458_v59 = vsub.f32 %v6348_v13, %v6383_v14  ;;  %v9460_v33 = vsub.f32 %v6347_v40, %v6382_v42  ;;  %v6409_v28 = vsel %vm524_vm0, %v6397_v61, 0.0  ;;  %v6636_v40 = vld [vmem:[%s9694_s5 + $0x8] sm:$0xff]  ;;  %v7798_v13 = vpack.c.bf16 %v6638_v62, %v6637_v34  ;;  %v7154_v61 = vld [vmem:[%s9700_s11] ss:$0 sm:$0xff] }
 0x6fc   : > { %6410 = vadd.xlane.f32.xlu1 %v6409_v28  ;;  %v6371_v30 = vpop.xlane.xlu0 %6370  ;;  %v7794_v63 = vpack.c.bf16 %v6636_v40, %v6635_v39 }
 0x6fd   : > { %v6384_v57 = vmul.f32 0.03125, %v6371_v30  ;;  %v6399_v27 = vmul.f32 %v9458_v59, %v9458_v59  ;;  %v6398_v21 = vmul.f32 %v9460_v33, %v9460_v33 }
 0x6fe   : > { %7795 = vmatprep.subr.bf16.mxu1 %v7794_v63 }
 0x6ff   : > { %v9467_v6 = vsub.f32 %v6349_v2, %v6384_v57  ;;  %v6415_v3 = vsel %vm524_vm0, %v6399_v27, 0.0  ;;  %v6412_v44 = vsel %vm524_vm0, %v6398_v21, 0.0  ;;  %v6639_v2 = vld [vmem:[%s9694_s5 + $0x20] sm:$0xff]  ;;  %7797 = vmatpush3.bf16.msra.mxu1 %v7794_v63 }
 0x700   : > { %6416 = vadd.xlane.f32.xlu1 %v6415_v3  ;;  %6413 = vadd.xlane.f32.xlu0 %v6412_v44  ;;  %v7802_v22 = vpack.c.bf16 %v6640_v43, %v6639_v2  ;;  %v6642_v2 = vld [vmem:[%s9694_s5 + $0x38] sm:$0xff] }
 0x701   : > { %v6400_v55 = vmul.f32 %v9467_v6, %v9467_v6  ;;  %7799 = vmatprep.subr.bf16.mxu1 %v7798_v13 }
 0x703   : > { %v6418_v36 = vsel %vm524_vm0, %v6400_v55, 0.0  ;;  %7801 = vmatpush3.bf16.msra.mxu1 %v7798_v13  ;;  %v6641_v13 = vld [vmem:[%s9694_s5 + $0x30] sm:$0xff] }
 0x704   : > { %6419 = vadd.xlane.f32.xlu0 %v6418_v36  ;;  %7803 = vmatprep.subr.bf16.mxu1 %v7802_v22  ;;  %v7806_v43 = vpack.c.bf16 %v6642_v2, %v6641_v13 }
 0x707   : > { %7805 = vmatpush3.bf16.msra.mxu1 %v7802_v22 }
 0x708   : > { %7807 = vmatprep.subr.bf16.mxu1 %v7806_v43 }
 0x70b   : > { %7809 = vmatpush3.bf16.msra.mxu1 %v7806_v43 }
 0x725   : > { %v6377_v48 = vpop.xlane.xlu0 %6376 }
 0x726   : > { %v6386_v50 = vmul.f32 0.03125, %v6377_v48  ;;  %v6374_v51 = vpop.xlane.xlu1 %6373 }
 0x727   : > { %v6385_v5 = vmul.f32 0.03125, %v6374_v51 }
 0x728   : > { %v9486_v18 = vsub.f32 %v6351_v26, %v6386_v50 }
 0x729   : > { %v9488_v9 = vsub.f32 %v6350_v58, %v6385_v5 }
 0x72a   : > { %v6402_v10 = vmul.f32 %v9486_v18, %v9486_v18 }
 0x72b   : > { %v6401_v54 = vmul.f32 %v9488_v9, %v9488_v9 }
 0x72c   : > { %v6424_v31 = vsel %vm524_vm0, %v6402_v10, 0.0 }
 0x72d   : > { %6425 = vadd.xlane.f32.xlu0 %v6424_v31  ;;  %v6421_v24 = vsel %vm524_vm0, %v6401_v54, 0.0 }
 0x72e   : > { %6422 = vadd.xlane.f32.xlu1 %v6421_v24 }
 0x784   : > { %v6408_v23 = vpop.xlane.xlu0 %6407 }
 0x785   : > { %v6428_v38 = vmul.f32 0.03125, %v6408_v23  ;;  %v6405_v12 = vpop.xlane.xlu1 %6404 }
 0x786   : > { %v6427_v16 = vmul.f32 0.03125, %v6405_v12 }
 0x787   : > { %v6436_v46 = vadd.f32 1e-05, %v6428_v38 }
 0x788   : > { %v6435_v26 = vadd.f32 1e-05, %v6427_v16 }
 0x789   : > { %7999 = vrsqrt.f32 %v6436_v46  ;;  %v6411_v58 = vpop.xlane.xlu1 %6410 }
 0x78a   : > { %8001 = vrsqrt.f32 %v6435_v26  ;;  %v6429_v15 = vmul.f32 0.03125, %v6411_v58 }
 0x78c   : > { %v6437_v41 = vadd.f32 1e-05, %v6429_v15 }
 0x78d   : > { %v6417_v11 = vpop.xlane.xlu1 %6416  ;;  %v6414_v1 = vpop.xlane.xlu0 %6413 }
 0x78e   : > { %8003 = vrsqrt.f32 %v6437_v41  ;;  %v6431_v8 = vmul.f32 0.03125, %v6417_v11  ;;  %v6430_v60 = vmul.f32 0.03125, %v6414_v1 }
 0x790   : > { %v6439_v4 = vadd.f32 1e-05, %v6431_v8  ;;  %v6438_v53 = vadd.f32 1e-05, %v6430_v60 }
 0x791   : > { %v6420_v20 = vpop.xlane.xlu0 %6419 }
 0x792   : > { %8005 = vrsqrt.f32 %v6439_v4  ;;  %v6432_v45 = vmul.f32 0.03125, %v6420_v20 }
 0x793   : > { %v8000_v25 = vpop.eup %7999  ;;  %8007 = vrsqrt.f32 %v6438_v53 }
 0x794   : > { %v8002_v29 = vpop.eup %8001  ;;  %v6452_v7 = vmul.f32 %v8000_v25, %v9444_v47  ;;  %v6440_v14 = vadd.f32 1e-05, %v6432_v45 }
 0x795   : > { %v6451_v42 = vmul.f32 %v8002_v29, %v9446_v56 }
 0x796   : > { %8009 = vrsqrt.f32 %v6440_v14  ;;  %v6466_v28 = vmul.f32 %v7153_v49, %v6452_v7 }
 0x797   : > { %v6465_v30 = vmul.f32 %v7153_v49, %v6451_v42  ;;  %v7164_v42 = vld [vmem:[%s9698_s9] ss:$0 sm:$0xff] }
 0x798   : > { %v8004_v57 = vpop.eup %8003  ;;  %v6480_v3 = vadd.f32 %v7154_v61, %v6466_v28 }
 0x799   : > { %v6479_v27 = vadd.f32 %v7154_v61, %v6465_v30  ;;  %v6453_v21 = vmul.f32 %v8004_v57, %v9453_v19 }
 0x79b   : > { %7730 = vmatprep.mubr.msk.f32.mxu0 %vm524_vm0, %v6479_v27  ;;  %v6467_v44 = vmul.f32 %v7153_v49, %v6453_v21 }
 0x79c   : > { %v8006_v55 = vpop.eup %8005  ;;  %7731 = vmatmul.mubr.msk.f32.vlgmr.msra.gmra.mrb[70].mxu0 %vm524_vm0, %v6480_v3 }
 0x79d   : > { %v8008_v47 = vpop.eup %8007  ;;  %v6481_v56 = vadd.f32 %v7154_v61, %v6467_v44  ;;  %v6455_v36 = vmul.f32 %v8006_v55, %v9458_v59 }
 0x79e   : > { %v6454_v32 = vmul.f32 %v8008_v47, %v9460_v33 }
 0x79f   : > { %7733 = vmatprep.mubr.msk.f32.mxu0 %vm524_vm0, %v6481_v56  ;;  %v6469_v0 = vmul.f32 %v7153_v49, %v6455_v36 }
 0x7a0   : > { %v8010_v35 = vpop.eup %8009  ;;  %v6468_v17 = vmul.f32 %v7153_v49, %v6454_v32 }
 0x7a1   : > { %v6483_v52 = vadd.f32 %v7154_v61, %v6469_v0  ;;  %v6456_v19 = vmul.f32 %v8010_v35, %v9467_v6 }
 0x7a2   : > { %v6482_v37 = vadd.f32 %v7154_v61, %v6468_v17 }
 0x7a3   : > { %v6470_v48 = vmul.f32 %v7153_v49, %v6456_v19 }
 0x7a4   : > { %7734 = vmatmul.mubr.msk.f32.gmra.mrb[72].mxu0 %vm524_vm0, %v6482_v37 }
 0x7a5   : > { %7736 = vmatprep.mubr.msk.f32.mxu0 %vm524_vm0, %v6483_v52  ;;  %v6484_v50 = vadd.f32 %v7154_v61, %v6470_v48 }
 0x7a8   : > { %7737 = vmatmul.mubr.msk.f32.gmra.mrb[74].mxu0 %vm524_vm0, %v6484_v50 }
 0x7ba   : > { %v6426_v59 = vpop.xlane.xlu0 %6425 }
 0x7bb   : > { %v6434_v51 = vmul.f32 0.03125, %v6426_v59  ;;  %v6423_v33 = vpop.xlane.xlu1 %6422 }
 0x7bc   : > { %v6433_v5 = vmul.f32 0.03125, %v6423_v33 }
 0x7bd   : > { %v6442_v10 = vadd.f32 1e-05, %v6434_v51 }
 0x7be   : > { %v6441_v54 = vadd.f32 1e-05, %v6433_v5 }
 0x7bf   : > { %8011 = vrsqrt.f32 %v6442_v10 }
 0x7c0   : > { %8013 = vrsqrt.f32 %v6441_v54 }
 0x7c9   : > { %v8012_v31 = vpop.eup %8011 }
 0x7ca   : > { %v8014_v24 = vpop.eup %8013  ;;  %v6458_v6 = vmul.f32 %v8012_v31, %v9486_v18  ;;  %v7155_v18 = vld [vmem:[%s9697_s8] ss:$0 sm:$0xff] }
 0x7cb   : > { %v6457_v39 = vmul.f32 %v8014_v24, %v9488_v9 }
 0x7cc   : > { %v6472_v40 = vmul.f32 %v7153_v49, %v6458_v6 }
 0x7cd   : > { %v6471_v34 = vmul.f32 %v7153_v49, %v6457_v39 }
 0x7ce   : > { %v6486_v62 = vadd.f32 %v7154_v61, %v6472_v40 }
 0x7cf   : > { %v6485_v63 = vadd.f32 %v7154_v61, %v6471_v34 }
 0x7d1   : > { %7739 = vmatprep.mubr.msk.f32.mxu0 %vm524_vm0, %v6485_v63 }
 0x7d2   : > { %7740 = vmatmul.mubr.msk.f32.gmra.mrb[76].mxu0 %vm524_vm0, %v6486_v62 }
 0x86f   : > { %v7732_v9 = vpop.f32.mrb[70].mxu0 }
 0x870   : > { %v6594_v22 = vadd.f32 %v7732_v9, %v7155_v18  ;;  %v6588_v23 = vpop.f32.mrb[71].mxu0 }
 0x871   : > { %v6589_v38 = vadd.f32 %v7155_v18, %v6588_v23 }
 0x872   : > { %v6628_v16 = vmax.f32 %v6594_v22, 0.0 }
 0x873   : > { %v6627_v12 = vmax.f32 %v6589_v38, 0.0 }
 0x875   : > { %7758 = vmatprep.mubr.msk.f32.mxu1 %vm6650_vm5, %v6627_v12 }
 0x876   : > { %7759 = vmatmul.mubr.msk.f32.vlgmr.msra.gmra.mrb[74].mxu1 %vm6650_vm5, %v6628_v16 }
 0x877   : > { %v7735_v46 = vpop.f32.mrb[72].mxu0 }
 0x878   : > { %v6604_v26 = vadd.f32 %v7735_v46, %v7155_v18  ;;  %v6598_v58 = vpop.f32.mrb[73].mxu0 }
 0x879   : > { %v6599_v15 = vadd.f32 %v7155_v18, %v6598_v58 }
 0x87a   : > { %v6630_v1 = vmax.f32 %v6604_v26, 0.0 }
 0x87b   : > { %v6629_v41 = vmax.f32 %v6599_v15, 0.0  ;;  %v7738_v11 = vpop.f32.mrb[74].mxu0 }
 0x87c   : > { %v6614_v8 = vadd.f32 %v7738_v11, %v7155_v18  ;;  %v6608_v60 = vpop.f32.mrb[75].mxu0 }
 0x87d   : > { %v6609_v4 = vadd.f32 %v7155_v18, %v6608_v60  ;;  %7761 = vmatprep.mubr.msk.f32.mxu1 %vm6650_vm5, %v6629_v41 }
 0x87e   : > { %7762 = vmatmul.mubr.msk.f32.gmra.mrb[76].mxu1 %vm6650_vm5, %v6630_v1  ;;  %v6632_v20 = vmax.f32 %v6614_v8, 0.0 }
 0x87f   : > { %v6631_v53 = vmax.f32 %v6609_v4, 0.0 }
 0x881   : > { %7764 = vmatprep.mubr.msk.f32.mxu1 %vm6650_vm5, %v6631_v53 }
 0x882   : > { %7765 = vmatmul.mubr.msk.f32.gmra.mrb[78].mxu1 %vm6650_vm5, %v6632_v20 }
 0x8a5   : > { %v7741_v45 = vpop.f32.mrb[76].mxu0 }
 0x8a6   : > { %v6624_v25 = vadd.f32 %v7741_v45, %v7155_v18  ;;  %v6618_v49 = vpop.f32.mrb[77].mxu0 }
 0x8a7   : > { %v6619_v29 = vadd.f32 %v7155_v18, %v6618_v49 }
 0x8a8   : > { %v6634_v14 = vmax.f32 %v6624_v25, 0.0 }
 0x8a9   : > { %v6633_v7 = vmax.f32 %v6619_v29, 0.0 }
 0x8ab   : > { %7767 = vmatprep.mubr.msk.f32.mxu1 %vm6650_vm5, %v6633_v7 }
 0x8ac   : > { %7768 = vmatmul.mubr.msk.f32.gmra.mrb[80].mxu1 %vm6650_vm5, %v6634_v14 }
 0x949   : > { %v7760_v61 = vpop.f32.mrb[74].mxu1 }
 0x94a   : > { %v6747_v28 = vadd.f32 %v7760_v61, %v7164_v42  ;;  %v6741_v30 = vpop.f32.mrb[75].mxu1 }
 0x94b   : > { %v6742_v57 = vadd.f32 %v7164_v42, %v6741_v30 }
 0x94c   : > { %v6781_v27 = vadd.f32 %v6747_v28, %v6747_v28 }
 0x94d   : > { %v6780_v21 = vadd.f32 %v6742_v57, %v6742_v57 }
 0x94e   : > { %v6793_v3 = vsel %vm524_vm0, %v6781_v27, 0.0 }
 0x94f   : > { %6794 = vadd.xlane.f32.xlu0 %v6793_v3  ;;  %v6790_v44 = vsel %vm524_vm0, %v6780_v21, 0.0 }
 0x950   : > { %6791 = vadd.xlane.f32.xlu1 %v6790_v44 }
 0x951   : > { %v7763_v55 = vpop.f32.mrb[76].mxu1 }
 0x952   : > { %v6757_v47 = vadd.f32 %v7763_v55, %v7164_v42  ;;  %v6751_v56 = vpop.f32.mrb[77].mxu1 }
 0x953   : > { %v6752_v36 = vadd.f32 %v7164_v42, %v6751_v56 }
 0x954   : > { %v6783_v32 = vadd.f32 %v6757_v47, %v6757_v47 }
 0x955   : > { %v6782_v0 = vadd.f32 %v6752_v36, %v6752_v36  ;;  %v7766_v35 = vpop.f32.mrb[78].mxu1 }
 0x956   : > { %v6767_v17 = vadd.f32 %v7766_v35, %v7164_v42  ;;  %v6761_v52 = vpop.f32.mrb[79].mxu1  ;;  %v6799_v19 = vsel %vm524_vm0, %v6783_v32, 0.0 }
 0x957   : > { %v6762_v37 = vadd.f32 %v7164_v42, %v6761_v52  ;;  %6800 = vadd.xlane.f32.xlu0 %v6799_v19  ;;  %v6796_v48 = vsel %vm524_vm0, %v6782_v0, 0.0 }
 0x958   : > { %v6785_v50 = vadd.f32 %v6767_v17, %v6767_v17  ;;  %6797 = vadd.xlane.f32.xlu1 %v6796_v48 }
 0x959   : > { %v6784_v59 = vadd.f32 %v6762_v37, %v6762_v37 }
 0x95a   : > { %v6805_v51 = vsel %vm524_vm0, %v6785_v50, 0.0 }
 0x95b   : > { %6806 = vadd.xlane.f32.xlu0 %v6805_v51  ;;  %v6802_v33 = vsel %vm524_vm0, %v6784_v59, 0.0 }
 0x95c   : > { %6803 = vadd.xlane.f32.xlu1 %v6802_v33 }
 0x97f   : > { %v7769_v5 = vpop.f32.mrb[80].mxu1 }
 0x980   : > { %v6777_v10 = vadd.f32 %v7769_v5, %v7164_v42  ;;  %v6771_v54 = vpop.f32.mrb[81].mxu1 }
 0x981   : > { %v6772_v31 = vadd.f32 %v7164_v42, %v6771_v54 }
 0x982   : > { %v6787_v24 = vadd.f32 %v6777_v10, %v6777_v10  ;;  %v7173_v10 = vld [vmem:[%s9701_s12] ss:$0 sm:$0xff] }
 0x983   : > { %v6786_v6 = vadd.f32 %v6772_v31, %v6772_v31 }
 0x984   : > { %v6811_v39 = vsel %vm524_vm0, %v6787_v24, 0.0 }
 0x985   : > { %6812 = vadd.xlane.f32.xlu0 %v6811_v39  ;;  %v6808_v40 = vsel %vm524_vm0, %v6786_v6, 0.0  ;;  %v7174_v39 = vld [vmem:[%s9702_s13] ss:$0 sm:$0xff] }
 0x986   : > { %6809 = vadd.xlane.f32.xlu1 %v6808_v40 }
 0x9dc   : > { %v6795_v34 = vpop.xlane.xlu0 %6794 }
 0x9dd   : > { %v6815_v63 = vmul.f32 0.03125, %v6795_v34  ;;  %v6792_v62 = vpop.xlane.xlu1 %6791 }
 0x9de   : > { %v6814_v13 = vmul.f32 0.03125, %v6792_v62 }
 0x9df   : > { %v9564_v2 = vsub.f32 %v6781_v27, %v6815_v63 }
 0x9e0   : > { %v9566_v43 = vsub.f32 %v6780_v21, %v6814_v13 }
 0x9e1   : > { %v6831_v18 = vmul.f32 %v9564_v2, %v9564_v2 }
 0x9e2   : > { %v6830_v9 = vmul.f32 %v9566_v43, %v9566_v43 }
 0x9e3   : > { %v6841_v22 = vsel %vm524_vm0, %v6831_v18, 0.0 }
 0x9e4   : > { %v6801_v23 = vpop.xlane.xlu0 %6800  ;;  %6842 = vadd.xlane.f32.xlu0 %v6841_v22  ;;  %v6838_v38 = vsel %vm524_vm0, %v6830_v9, 0.0 }
 0x9e5   : > { %v6817_v12 = vmul.f32 0.03125, %v6801_v23  ;;  %v6798_v16 = vpop.xlane.xlu1 %6797  ;;  %6839 = vadd.xlane.f32.xlu1 %v6838_v38 }
 0x9e6   : > { %v6816_v46 = vmul.f32 0.03125, %v6798_v16 }
 0x9e7   : > { %v9574_v26 = vsub.f32 %v6783_v32, %v6817_v12 }
 0x9e8   : > { %v9576_v58 = vsub.f32 %v6782_v0, %v6816_v46  ;;  %v6807_v15 = vpop.xlane.xlu0 %6806 }
 0x9e9   : > { %v6819_v41 = vmul.f32 0.03125, %v6807_v15  ;;  %v6804_v11 = vpop.xlane.xlu1 %6803  ;;  %v6833_v1 = vmul.f32 %v9574_v26, %v9574_v26 }
 0x9ea   : > { %v6818_v8 = vmul.f32 0.03125, %v6804_v11  ;;  %v6832_v60 = vmul.f32 %v9576_v58, %v9576_v58 }
 0x9eb   : > { %v9582_v4 = vsub.f32 %v6785_v50, %v6819_v41  ;;  %v6847_v53 = vsel %vm524_vm0, %v6833_v1, 0.0 }
 0x9ec   : > { %v9585_v20 = vsub.f32 %v6784_v59, %v6818_v8  ;;  %6848 = vadd.xlane.f32.xlu0 %v6847_v53  ;;  %v6844_v45 = vsel %vm524_vm0, %v6832_v60, 0.0 }
 0x9ed   : > { %6845 = vadd.xlane.f32.xlu1 %v6844_v45  ;;  %v6835_v25 = vmul.f32 %v9582_v4, %v9582_v4 }
 0x9ee   : > { %v6834_v49 = vmul.f32 %v9585_v20, %v9585_v20 }
 0x9ef   : > { %v6853_v29 = vsel %vm524_vm0, %v6835_v25, 0.0 }
 0x9f0   : > { %6854 = vadd.xlane.f32.xlu0 %v6853_v29  ;;  %v6850_v7 = vsel %vm524_vm0, %v6834_v49, 0.0 }
 0x9f1   : > { %6851 = vadd.xlane.f32.xlu1 %v6850_v7 }
 0xa12   : > { %v6813_v14 = vpop.xlane.xlu0 %6812 }
 0xa13   : > { %v6821_v42 = vmul.f32 0.03125, %v6813_v14  ;;  %v6810_v61 = vpop.xlane.xlu1 %6809 }
 0xa14   : > { %v6820_v28 = vmul.f32 0.03125, %v6810_v61 }
 0xa15   : > { %v9594_v30 = vsub.f32 %v6787_v24, %v6821_v42 }
 0xa16   : > { %v9596_v57 = vsub.f32 %v6786_v6, %v6820_v28 }
 0xa17   : > { %v6837_v27 = vmul.f32 %v9594_v30, %v9594_v30 }
 0xa18   : > { %v6836_v21 = vmul.f32 %v9596_v57, %v9596_v57 }
 0xa19   : > { %v6859_v3 = vsel %vm524_vm0, %v6837_v27, 0.0 }
 0xa1a   : > { %6860 = vadd.xlane.f32.xlu0 %v6859_v3  ;;  %v6856_v44 = vsel %vm524_vm0, %v6836_v21, 0.0 }
 0xa1b   : > { %6857 = vadd.xlane.f32.xlu1 %v6856_v44 }
 0xa71   : > { %v6843_v55 = vpop.xlane.xlu0 %6842 }
 0xa72   : > { %v6863_v47 = vmul.f32 0.03125, %v6843_v55  ;;  %v6840_v56 = vpop.xlane.xlu1 %6839 }
 0xa73   : > { %v6862_v36 = vmul.f32 0.03125, %v6840_v56 }
 0xa74   : > { %v6871_v32 = vadd.f32 1e-05, %v6863_v47 }
 0xa75   : > { %v6870_v0 = vadd.f32 1e-05, %v6862_v36 }
 0xa76   : > { %8015 = vrsqrt.f32 %v6871_v32 }
 0xa77   : > { %8017 = vrsqrt.f32 %v6870_v0 }
 0xa79   : > { %v6849_v35 = vpop.xlane.xlu0 %6848 }
 0xa7a   : > { %v6865_v17 = vmul.f32 0.03125, %v6849_v35  ;;  %v6846_v52 = vpop.xlane.xlu1 %6845 }
 0xa7b   : > { %v6864_v19 = vmul.f32 0.03125, %v6846_v52 }
 0xa7c   : > { %v6873_v37 = vadd.f32 1e-05, %v6865_v17 }
 0xa7d   : > { %v6872_v48 = vadd.f32 1e-05, %v6864_v19  ;;  %v6855_v50 = vpop.xlane.xlu0 %6854 }
 0xa7e   : > { %8019 = vrsqrt.f32 %v6873_v37  ;;  %v6867_v59 = vmul.f32 0.03125, %v6855_v50  ;;  %v6852_v51 = vpop.xlane.xlu1 %6851 }
 0xa7f   : > { %8021 = vrsqrt.f32 %v6872_v48  ;;  %v6866_v33 = vmul.f32 0.03125, %v6852_v51 }
 0xa80   : > { %v8016_v5 = vpop.eup %8015  ;;  %v6875_v54 = vadd.f32 1e-05, %v6867_v59 }
 0xa81   : > { %v8018_v31 = vpop.eup %8017  ;;  %v6887_v24 = vmul.f32 %v8016_v5, %v9564_v2  ;;  %v6874_v6 = vadd.f32 1e-05, %v6866_v33 }
 0xa82   : > { %v6886_v40 = vmul.f32 %v8018_v31, %v9566_v43  ;;  %8023 = vrsqrt.f32 %v6875_v54 }
 0xa83   : > { %v6901_v34 = vmul.f32 %v7173_v10, %v6887_v24  ;;  %8025 = vrsqrt.f32 %v6874_v6 }
 0xa84   : > { %v6900_v63 = vmul.f32 %v7173_v10, %v6886_v40 }
 0xa85   : > { %v6915_v62 = vadd.f32 %v7174_v39, %v6901_v34 }
 0xa86   : > { %v6914_v13 = vadd.f32 %v7174_v39, %v6900_v63 }
 0xa87   : > { %6923 = vst.msk [vmem:[%s9614_s24 + $0x8] sm:$0xff] %vm524_vm0, %v6915_v62 }
 0xa88   : > { %v8020_v2 = vpop.eup %8019  ;;  %6922 = vst.msk [vmem:[%s9614_s24] sm:$0xff] %vm524_vm0, %v6914_v13 }
 0xa89   : > { %v8022_v18 = vpop.eup %8021  ;;  %v6889_v43 = vmul.f32 %v8020_v2, %v9574_v26 }
 0xa8a   : > { %v6888_v9 = vmul.f32 %v8022_v18, %v9576_v58 }
 0xa8b   : > { %v6903_v22 = vmul.f32 %v7173_v10, %v6889_v43 }
 0xa8c   : > { %v8024_v23 = vpop.eup %8023  ;;  %v6902_v38 = vmul.f32 %v7173_v10, %v6888_v9 }
 0xa8d   : > { %v8026_v12 = vpop.eup %8025  ;;  %v6917_v16 = vadd.f32 %v7174_v39, %v6903_v22  ;;  %v6891_v46 = vmul.f32 %v8024_v23, %v9582_v4 }
 0xa8e   : > { %v6916_v15 = vadd.f32 %v7174_v39, %v6902_v38  ;;  %v6890_v41 = vmul.f32 %v8026_v12, %v9585_v20 }
 0xa8f   : > { %6925 = vst.msk [vmem:[%s9614_s24 + $0x18] sm:$0xff] %vm524_vm0, %v6917_v16  ;;  %v6905_v11 = vmul.f32 %v7173_v10, %v6891_v46 }
 0xa90   : > { %6924 = vst.msk [vmem:[%s9614_s24 + $0x10] sm:$0xff] %vm524_vm0, %v6916_v15  ;;  %v6904_v26 = vmul.f32 %v7173_v10, %v6890_v41 }
 0xa91   : > { %v6919_v1 = vadd.f32 %v7174_v39, %v6905_v11 }
 0xa92   : > { %v6918_v58 = vadd.f32 %v7174_v39, %v6904_v26 }
 0xa93   : > { %6927 = vst.msk [vmem:[%s9614_s24 + $0x28] sm:$0xff] %vm524_vm0, %v6919_v1 }
 0xa94   : > { %6926 = vst.msk [vmem:[%s9614_s24 + $0x20] sm:$0xff] %vm524_vm0, %v6918_v58 }
 0xaa7   : > { %v6861_v8 = vpop.xlane.xlu0 %6860 }
 0xaa8   : > { %v6869_v60 = vmul.f32 0.03125, %v6861_v8  ;;  %v6858_v4 = vpop.xlane.xlu1 %6857 }
 0xaa9   : > { %v6868_v53 = vmul.f32 0.03125, %v6858_v4 }
 0xaaa   : > { %v6877_v45 = vadd.f32 1e-05, %v6869_v60 }
 0xaab   : > { %v6876_v20 = vadd.f32 1e-05, %v6868_v53 }
 0xaac   : > { %8027 = vrsqrt.f32 %v6877_v45 }
 0xaad   : > { %8029 = vrsqrt.f32 %v6876_v20 }
 0xab6   : > { %v8028_v25 = vpop.eup %8027 }
 0xab7   : > { %v8030_v49 = vpop.eup %8029  ;;  %v6893_v29 = vmul.f32 %v8028_v25, %v9594_v30 }
 0xab8   : > { %v6892_v7 = vmul.f32 %v8030_v49, %v9596_v57 }
 0xab9   : > { %v6907_v14 = vmul.f32 %v7173_v10, %v6893_v29 }
 0xaba   : > { %v6906_v42 = vmul.f32 %v7173_v10, %v6892_v7 }
 0xabb   : > { %v6921_v61 = vadd.f32 %v7174_v39, %v6907_v14 }
 0xabc   : > { %v6920_v28 = vadd.f32 %v7174_v39, %v6906_v42 }
 0xabd   : > { %6929 = vst.msk [vmem:[%s9614_s24 + $0x38] sm:$0xff] %vm524_vm0, %v6921_v61 }
 0xabe   : > { %6928 = vst.msk [vmem:[%s9614_s24 + $0x30] sm:$0xff] %vm524_vm0, %v6920_v28 }
 0xabf   : > { %8074 = shalt.err (!%p8071_p3)
}
 0xac0   : > { %s8075_s24 = scalar_lea.hbm %s9639_s21, 1024  ;;  %s8079_s20 = scalar_lea.hbm %s9750_s19, 3072 }
 0xac1   : > { %p8076_p4 = scmp.ne.s32.totalorder %s9639_s21, %s8075_s24  ;;  %p8080_p2 = scmp.lt.u32.totalorder %s9639_s21, %s9750_s19 }
 0xac2   : > { %p8081_p7 = scmp.lt.u32.totalorder %s8079_s20, %s8075_s24  ;;  %p8083_p10 = scmp.lt.u32.totalorder %s8075_s24, %s9639_s21 }
 0xac3   : > { %p8077_p5 = pnand %p8076_p4, %p9751_p11 }
 0xac4   : > { %p8082_p6 = por %p8081_p7, %p8080_p2 }
 0xac5   : > { %p8078_p0 = pneg %p8077_p5 }
 0xac6   : > { %p8084_p12 = por %p8083_p10, %p8082_p6 }
 0xac8   : > { %p8085_p8 = pnand %p8084_p12, %p8078_p0 }
 0xaca   : > { %8088 = shalt.err (!%p8085_p8)
}
 0xacb   : > { %s8144_s22 = smov 128   ;;  %s9752_s28 = scalar_lea.sflag [#allocation4], %s8323_s18 }
 0xacc   : > { %7812 = dma.vmem_to_hbm [thread:$0]  (%p9751_p11), %s9641_s14, 1024, %s9639_s21, %s9752_s28, %s8144_s22, %s8144_s22, %s8140_s27  }
 0xacd PF: > { %s9753_s29 = sld [smem:[#allocation8_spill]]  ;;  %p7823_p9 = scmp.ge.s32.totalorder %s8127_s16, 2 }
 0xace   : > { %p9754_p13 = scmp.ne.s32.totalorder %s9721_s26, 0 }
 0xad0   : > { %p7819_p1 = pnand %p7823_p9, %p9754_p13 }
 0xad3   : > { %s6959_s17 = sand.u32 1, %s9753_s29  }
 0xad4   : > { %s6960_s24 = scalar_lea.sflag [#allocation4], %s6959_s17 }
 0xad5   : > { %8110 = dma.done.wait (!%p7819_p1), %s6960_s24, 1024  }
 0xad6   : > { %8112 = vsyncadd (!%p7819_p1), %s6960_s24, 4294966272  ;;  %s9755_s16 = sld [smem:[#allocation10_spill]]  ;;  %s9756_s25 = sld [smem:[#allocation9_spill]] }
 0xad7   : > { %s9757_s15 = sld [smem:[#allocation11_spill]]  ;;  %s9758_s29 = smov %s8119_s30 }
 0xadc   : > { %p27_p3 = scmp.ge.s32.totalorder %s9755_s16, 5   ;;  %s9759_s30 = smov %s9756_s25 }
 0xade   :  { %29 = sbr.rel (!%p27_p3) target bundleno = 7 (0x7), region = 124 }
 0xae5   :  { %6965 = vsyncpa [#allocation3], 1 }
 0xae6   :  { %6967 = vsyncpa [#allocation3 + $0x1], 1 }
 0xae7   :  { %6968 = vsyncpa [#allocation4], 1 }
 0xae8   :  { %6970 = vsyncpa [#allocation4 + $0x1], 1 }

</bundles_post_ra>
